<compile_context>
chip_gen: v7x
topology: tpu7x:2x2x1
jax: 0.10.0
libtpu: 0.0.40
codegen_flags: <defaults>
</compile_context>

<pallas_src>
import jax
import jax.numpy as jnp
import numpy as np
from jax import lax
from jax.experimental import pallas as pl
from jax.experimental.pallas import tpu as pltpu

_EPS = 1e-5  # PyTorch BatchNorm2d default


def _fold_bn(bn):
    gamma, beta, mean, var = bn
    scale = gamma / jnp.sqrt(var + _EPS)
    bias = beta - mean * scale
    return scale.astype(jnp.float32), bias.astype(jnp.float32)


def _pick_row_tile(h, w, c):
    """Divisor TH of h: prefer TH*W >= 128 (MXU M dim), but cap the f32
    accumulator footprint at ~128 KiB so it stays resident in vregs."""
    cap = 128 * 1024
    divs = [d for d in range(1, h + 1) if h % d == 0]
    th = next((d for d in divs if d * w >= 128), h)
    while th > 1 and th * w * c * 4 > cap:
        th = max(d for d in divs if d < th)
    return th


def _make_kernel(H, W, c_in, c_mid, c_out, TH):
    n_tiles = H // TH
    K2 = 3 * c_mid + c_in
    unroll = n_tiles <= 4

    def kernel(x_ref, w1_ref, b1_ref, w2_ref, b2_ref, out_ref,
               xpad_ref, midpad_ref):
        f32 = jnp.float32
        bf16 = jnp.bfloat16

        # --- padded bf16 input scratch: one full-width interior store + row halos
        zrow_x = jnp.zeros((1, W + 2, c_in), bf16)
        xpad_ref[0:1, :, :] = zrow_x
        xpad_ref[H + 1:H + 2, :, :] = zrow_x
        zcol_x = jnp.zeros((H, 1, c_in), bf16)
        xpad_ref[1:H + 1, :, :] = jnp.concatenate(
            [zcol_x, x_ref[...], zcol_x], axis=1)

        # --- midpad: only the row halos are zeroed here; the interior (incl.
        #     its zero halo columns) is fully overwritten by pass 1 each step.
        zrow_m = jnp.zeros((1, W + 2, c_mid), bf16)
        midpad_ref[0:1, :, :] = zrow_m
        midpad_ref[H + 1:H + 2, :, :] = zrow_m

        # --- hoisted weight loads and bias broadcasts (out of the tile loops)
        w1f = [w1_ref[dy] for dy in range(3)]                       # (3*Cin, Cmid) bf16
        w2f = [w2_ref[0, 0:3 * c_mid, :], w2_ref[1],                # dy=1 carries shortcut
               w2_ref[2, 0:3 * c_mid, :]]
        b1v = jnp.broadcast_to(b1_ref[...], (TH * W, c_mid))
        b2v = jnp.broadcast_to(b2_ref[...], (TH * W, c_out))
        zcol_m = jnp.zeros((TH, 1, c_mid), bf16)

        def im2col(pad_ref, r0, dy):
            # dx lane-concatenation built at read time (no scatter stores)
            parts = [pad_ref[pl.ds(r0 + dy, TH), dx:dx + W, :] for dx in range(3)]
            return jnp.concatenate(parts, axis=-1)

        # --- pass 1: conv1 (BN scale pre-folded) + bias + ReLU -> bf16 midpad
        def pass1(t, carry):
            r0 = pl.multiple_of(t * TH, TH)
            acc = None
            for dy in range(3):
                lhs = im2col(xpad_ref, r0, dy).reshape(TH * W, 3 * c_in)
                part = jnp.dot(lhs, w1f[dy], preferred_element_type=f32)
                acc = part if acc is None else acc + part
            mid = jnp.maximum(acc + b1v, 0.0).astype(bf16).reshape(TH, W, c_mid)
            # single, unshifted full-width store (zero halo columns included)
            midpad_ref[pl.ds(r0 + 1, TH), :, :] = jnp.concatenate(
                [zcol_m, mid, zcol_m], axis=1)
            return carry

        lax.fori_loop(0, n_tiles, pass1, 0, unroll=unroll)

        # --- pass 2: conv2 + bias (+ shortcut fused into the dy=1 matmul) + ReLU
        def pass2(t, carry):
            r0 = pl.multiple_of(t * TH, TH)
            acc = None
            for dy in range(3):
                lhs3 = im2col(midpad_ref, r0, dy)
                if dy == 1:
                    # shortcut operand (x itself, contiguous read) on the K axis
                    xc = x_ref[pl.ds(r0, TH), :, :]
                    lhs = jnp.concatenate([lhs3, xc], axis=-1).reshape(TH * W, K2)
                else:
                    lhs = lhs3.reshape(TH * W, 3 * c_mid)
                part = jnp.dot(lhs, w2f[dy], preferred_element_type=f32)
                acc = part if acc is None else acc + part
            out = jnp.maximum(acc + b2v, 0.0)
            out_ref[pl.ds(r0, TH), :, :] = (
                out.reshape(TH, W, c_out).astype(out_ref.dtype))
            return carry

        lax.fori_loop(0, n_tiles, pass2, 0, unroll=unroll)

    return kernel


def basic_block_forward(x_nchw, params, *, stride=1):
    """BasicBlock forward. Input/output are NCHW float32."""
    if stride != 1:
        # TODO(synk): stride != 1 downsampling path not implemented in the kernel.
        raise NotImplementedError("only stride=1 is implemented")

    x = jnp.transpose(x_nchw, (0, 2, 3, 1)).astype(jnp.bfloat16)   # NHWC, bf16
    N, H, W, c_in = x.shape

    w1 = params['w1']                       # (3,3,Cin,Cmid)  HWIO
    w2 = params['w2']                       # (3,3,Cmid,Cout)
    c_mid = w1.shape[-1]
    c_out = w2.shape[-1]

    s1, b1 = _fold_bn(params['bn1'])
    s2, b2 = _fold_bn(params['bn2'])

    # fold BN scales into the conv weights (bias add stays in-kernel)
    w1cat = (w1 * s1.reshape(1, 1, 1, c_mid)).reshape(3, 3 * c_in, c_mid)
    w2cat = (w2 * s2.reshape(1, 1, 1, c_out)).reshape(3, 3 * c_mid, c_out)

    use_projection = 'w_sc' in params
    if use_projection:
        ss, bs = _fold_bn(params['bn_sc'])
        wsc = params['w_sc'].reshape(c_in, c_out) * ss.reshape(1, c_out)
        bias2 = (b2 + bs).reshape(1, c_out)
    else:
        wsc = jnp.eye(c_in, dtype=jnp.float32)        # identity shortcut, fused
        bias2 = b2.reshape(1, c_out)
    b1r = b1.reshape(1, c_mid)

    # stack the shortcut weights under w2's dy=1 block: K = 3*Cmid + Cin
    K2 = 3 * c_mid + c_in
    w2ext = jnp.zeros((3, K2, c_out), jnp.float32)
    w2ext = w2ext.at[:, :3 * c_mid, :].set(w2cat)
    w2ext = w2ext.at[1, 3 * c_mid:, :].set(wsc)

    w1cat = w1cat.astype(jnp.bfloat16)
    w2ext = w2ext.astype(jnp.bfloat16)

    TH = _pick_row_tile(H, W, max(c_mid, c_out))
    kernel = _make_kernel(H, W, c_in, c_mid, c_out, TH)

    in_specs = [
        pl.BlockSpec((None, H, W, c_in), lambda n: (n, 0, 0, 0)),
        pl.BlockSpec((3, 3 * c_in, c_mid), lambda n: (0, 0, 0)),
        pl.BlockSpec((1, c_mid), lambda n: (0, 0)),
        pl.BlockSpec((3, K2, c_out), lambda n: (0, 0, 0)),
        pl.BlockSpec((1, c_out), lambda n: (0, 0)),
    ]
    inputs = [x, w1cat, b1r, w2ext, bias2]

    # VMEM budget: double-buffered in/out blocks + weights + scratch + headroom,
    # capped at the physical per-core VMEM reported by the runtime.
    try:
        phys = int(getattr(pltpu.get_tpu_info(), "vmem_capacity_bytes", 64 << 20))
    except Exception:
        phys = 64 << 20
    est = (2 * H * W * c_in * 2
           + 2 * H * W * c_out * 4
           + 2 * (9 * c_in * c_mid + 3 * K2 * c_out + c_mid + c_out) * 2
           + (H + 2) * (W + 2) * (c_in + c_mid) * 2
           + (4 << 20))
    vmem_limit = int(min(max(est, 32 << 20), phys))

    out = pl.pallas_call(
        kernel,
        out_shape=jax.ShapeDtypeStruct((N, H, W, c_out), jnp.float32),
        grid_spec=pltpu.PrefetchScalarGridSpec(
            num_scalar_prefetch=0,
            grid=(N,),
            in_specs=in_specs,
            out_specs=pl.BlockSpec((None, H, W, c_out), lambda n: (n, 0, 0, 0)),
            scratch_shapes=[
                pltpu.VMEM((H + 2, W + 2, c_in), jnp.bfloat16),    # xpad
                pltpu.VMEM((H + 2, W + 2, c_mid), jnp.bfloat16),   # midpad
            ],
        ),
        compiler_params=pltpu.CompilerParams(
            dimension_semantics=("parallel",),
            vmem_limit_bytes=vmem_limit),
    )(*inputs)

    return jnp.transpose(out, (0, 3, 1, 2))  # back to NCHW


# ------------------------- parameter construction ---------------------------

def make_params(key, in_planes, planes):
    ks = jax.random.split(key, 6)

    def bn_params(k, c):
        ka, kb, kc, kd = jax.random.split(k, 4)
        gamma = 1.0 + 0.1 * jax.random.normal(ka, (c,), jnp.float32)
        beta = 0.1 * jax.random.normal(kb, (c,), jnp.float32)
        mean = 0.1 * jax.random.normal(kc, (c,), jnp.float32)
        var = 1.0 + 0.1 * jax.random.uniform(kd, (c,), jnp.float32)
        return gamma, beta, mean, var

    params = {
        'w1': 0.1 * jax.random.normal(ks[0], (3, 3, in_planes, planes), jnp.float32),
        'bn1': bn_params(ks[1], planes),
        'w2': 0.1 * jax.random.normal(ks[2], (3, 3, planes, planes), jnp.float32),
        'bn2': bn_params(ks[3], planes),
    }
    if in_planes != planes:  # projection shortcut (stride fixed at 1 here)
        params['w_sc'] = 0.1 * jax.random.normal(ks[4], (1, 1, in_planes, planes), jnp.float32)
        params['bn_sc'] = bn_params(ks[5], planes)
    return params


# ------------------------------ pure-JAX reference ---------------------------

def ref_forward(x_nchw, params):
    x = jnp.transpose(x_nchw, (0, 2, 3, 1)).astype(jnp.float32)

    def conv(inp, w):
        return lax.conv_general_dilated(
            inp, w, (1, 1), 'SAME',
            dimension_numbers=('NHWC', 'HWIO', 'NHWC'),
            precision=lax.Precision.HIGHEST)

    def bn_apply(y, bn):
        s, b = _fold_bn(bn)
        return y * s.reshape(1, 1, 1, -1) + b.reshape(1, 1, 1, -1)

    out = jax.nn.relu(bn_apply(conv(x, params['w1']), params['bn1']))
    out = bn_apply(conv(out, params['w2']), params['bn2'])
    if 'w_sc' in params:
        sc = bn_apply(conv(x, params['w_sc']), params['bn_sc'])
    else:
        sc = x
    out = jax.nn.relu(out + sc)
    return jnp.transpose(out, (0, 3, 1, 2))


if __name__ == "__main__":
    # Tolerances are loosened vs. the f32/HIGHEST reference because the kernel
    # stores weights AND activations in bf16 and uses single-pass MXU matmuls
    # (f32 accumulation); error grows mildly with K = 3*C at deeper layers.
    ATOL = RTOL = 2e-2

    # Case 1: identity shortcut (in_planes == planes, stride=1)
    x1 = jax.random.normal(jax.random.PRNGKey(0), (2, 8, 16, 16), jnp.float32)   # NCHW
    p1 = make_params(jax.random.PRNGKey(42), in_planes=8, planes=8)
    out1 = basic_block_forward(x1, p1)
    jax.block_until_ready(out1)
    np.testing.assert_allclose(np.asarray(out1), np.asarray(ref_forward(x1, p1)),
                               atol=ATOL, rtol=RTOL)

    # Case 2: 1x1-conv + BN projection shortcut (in_planes != planes, stride=1)
    x2 = jax.random.normal(jax.random.PRNGKey(1), (2, 4, 16, 16), jnp.float32)   # NCHW
    p2 = make_params(jax.random.PRNGKey(7), in_planes=4, planes=8)
    out2 = basic_block_forward(x2, p2)
    jax.block_until_ready(out2)
    np.testing.assert_allclose(np.asarray(out2), np.asarray(ref_forward(x2, p2)),
                               atol=ATOL, rtol=RTOL)

    print("KERNEL_OK")
</pallas_src>

<mosaic_0001>
module attributes {stable_mosaic.version = 11 : i64} {
  func.func @kernel(%arg0: i32, %arg1: memref<1x16x16x8xbf16, #tpu.memory_space<vmem>>, %arg2: memref<3x24x8xbf16, #tpu.memory_space<vmem>>, %arg3: memref<1x8xf32, #tpu.memory_space<vmem>>, %arg4: memref<3x32x8xbf16, #tpu.memory_space<vmem>>, %arg5: memref<1x8xf32, #tpu.memory_space<vmem>>, %arg6: memref<1x16x16x8xf32, #tpu.memory_space<vmem>>, %arg7: memref<18x18x8xbf16, #tpu.memory_space<vmem>>, %arg8: memref<18x18x8xbf16, #tpu.memory_space<vmem>>) attributes {dimension_semantics = [#tpu.dimension_semantics<parallel>], iteration_bounds = array<i64: 2>, scalar_prefetch = 0 : i64, scratch_operands = 2 : i64, tpu.core_type = #tpu.core_type<tc>, window_params = [{transform_indices = @transform_0, window_bounds = array<i64: 1, 16, 16, 8>}, {pipeline_mode = #tpu.pipeline_mode<synchronous>, transform_indices = @transform_1, window_bounds = array<i64: 3, 24, 8>}, {pipeline_mode = #tpu.pipeline_mode<synchronous>, transform_indices = @transform_2, window_bounds = array<i64: 1, 8>}, {pipeline_mode = #tpu.pipeline_mode<synchronous>, transform_indices = @transform_3, window_bounds = array<i64: 3, 32, 8>}, {pipeline_mode = #tpu.pipeline_mode<synchronous>, transform_indices = @transform_4, window_bounds = array<i64: 1, 8>}, {transform_indices = @transform_5, window_bounds = array<i64: 1, 16, 16, 8>}]} {
    %cst = arith.constant 0.000000e+00 : bf16
    %0 = vector.broadcast %cst : bf16 to vector<1x18x8xbf16>
    %c0 = arith.constant 0 : index
    %c0_0 = arith.constant 0 : index
    %c0_1 = arith.constant 0 : index
    %1 = vector.load %arg7[%c0, %c0_0, %c0_1] : memref<18x18x8xbf16, #tpu.memory_space<vmem>>, vector<1x18x8xbf16>
    tpu.vector_store %arg7[%c0, %c0_0, %c0_1], %0 {strides = array<i32>} : memref<18x18x8xbf16, #tpu.memory_space<vmem>>, vector<1x18x8xbf16>,
    %c17 = arith.constant 17 : index
    %c0_2 = arith.constant 0 : index
    %c0_3 = arith.constant 0 : index
    %2 = vector.load %arg7[%c17, %c0_2, %c0_3] : memref<18x18x8xbf16, #tpu.memory_space<vmem>>, vector<1x18x8xbf16>
    tpu.vector_store %arg7[%c17, %c0_2, %c0_3], %0 {strides = array<i32>} : memref<18x18x8xbf16, #tpu.memory_space<vmem>>, vector<1x18x8xbf16>,
    %cst_4 = arith.constant 0.000000e+00 : bf16
    %3 = vector.broadcast %cst_4 : bf16 to vector<16x1x8xbf16>
    %c0_5 = arith.constant 0 : index
    %c0_6 = arith.constant 0 : index
    %c0_7 = arith.constant 0 : index
    %c0_8 = arith.constant 0 : index
    %4 = vector.load %arg1[%c0_5, %c0_6, %c0_7, %c0_8] : memref<1x16x16x8xbf16, #tpu.memory_space<vmem>>, vector<1x16x16x8xbf16>
    %5 = vector.shape_cast %4 : vector<1x16x16x8xbf16> to vector<16x16x8xbf16>
    %6 = tpu.concatenate %3, %5, %3 in 1 : vector<16x1x8xbf16>, vector<16x16x8xbf16>, vector<16x1x8xbf16> -> vector<16x18x8xbf16>
    %c1 = arith.constant 1 : index
    %c0_9 = arith.constant 0 : index
    %c0_10 = arith.constant 0 : index
    %7 = vector.load %arg7[%c1, %c0_9, %c0_10] : memref<18x18x8xbf16, #tpu.memory_space<vmem>>, vector<16x18x8xbf16>
    tpu.vector_store %arg7[%c1, %c0_9, %c0_10], %6 {strides = array<i32>} : memref<18x18x8xbf16, #tpu.memory_space<vmem>>, vector<16x18x8xbf16>,
    %cst_11 = arith.constant 0.000000e+00 : bf16
    %8 = vector.broadcast %cst_11 : bf16 to vector<1x18x8xbf16>
    %c0_12 = arith.constant 0 : index
    %c0_13 = arith.constant 0 : index
    %c0_14 = arith.constant 0 : index
    %9 = vector.load %arg8[%c0_12, %c0_13, %c0_14] : memref<18x18x8xbf16, #tpu.memory_space<vmem>>, vector<1x18x8xbf16>
    tpu.vector_store %arg8[%c0_12, %c0_13, %c0_14], %8 {strides = array<i32>} : memref<18x18x8xbf16, #tpu.memory_space<vmem>>, vector<1x18x8xbf16>,
    %c17_15 = arith.constant 17 : index
    %c0_16 = arith.constant 0 : index
    %c0_17 = arith.constant 0 : index
    %10 = vector.load %arg8[%c17_15, %c0_16, %c0_17] : memref<18x18x8xbf16, #tpu.memory_space<vmem>>, vector<1x18x8xbf16>
    tpu.vector_store %arg8[%c17_15, %c0_16, %c0_17], %8 {strides = array<i32>} : memref<18x18x8xbf16, #tpu.memory_space<vmem>>, vector<1x18x8xbf16>,
    %c0_18 = arith.constant 0 : index
    %c0_19 = arith.constant 0 : index
    %c0_20 = arith.constant 0 : index
    %11 = vector.load %arg2[%c0_18, %c0_19, %c0_20] : memref<3x24x8xbf16, #tpu.memory_space<vmem>>, vector<1x24x8xbf16>
    %12 = vector.shape_cast %11 : vector<1x24x8xbf16> to vector<24x8xbf16>
    %c1_21 = arith.constant 1 : index
    %c0_22 = arith.constant 0 : index
    %c0_23 = arith.constant 0 : index
    %13 = vector.load %arg2[%c1_21, %c0_22, %c0_23] : memref<3x24x8xbf16, #tpu.memory_space<vmem>>, vector<1x24x8xbf16>
    %14 = vector.shape_cast %13 : vector<1x24x8xbf16> to vector<24x8xbf16>
    %c2 = arith.constant 2 : index
    %c0_24 = arith.constant 0 : index
    %c0_25 = arith.constant 0 : index
    %15 = vector.load %arg2[%c2, %c0_24, %c0_25] : memref<3x24x8xbf16, #tpu.memory_space<vmem>>, vector<1x24x8xbf16>
    %16 = vector.shape_cast %15 : vector<1x24x8xbf16> to vector<24x8xbf16>
    %c0_26 = arith.constant 0 : index
    %c0_27 = arith.constant 0 : index
    %c0_28 = arith.constant 0 : index
    %17 = vector.load %arg4[%c0_26, %c0_27, %c0_28] : memref<3x32x8xbf16, #tpu.memory_space<vmem>>, vector<1x24x8xbf16>
    %18 = vector.shape_cast %17 : vector<1x24x8xbf16> to vector<24x8xbf16>
    %c1_29 = arith.constant 1 : index
    %c0_30 = arith.constant 0 : index
    %c0_31 = arith.constant 0 : index
    %19 = vector.load %arg4[%c1_29, %c0_30, %c0_31] : memref<3x32x8xbf16, #tpu.memory_space<vmem>>, vector<1x32x8xbf16>
    %20 = vector.shape_cast %19 : vector<1x32x8xbf16> to vector<32x8xbf16>
    %c2_32 = arith.constant 2 : index
    %c0_33 = arith.constant 0 : index
    %c0_34 = arith.constant 0 : index
    %21 = vector.load %arg4[%c2_32, %c0_33, %c0_34] : memref<3x32x8xbf16, #tpu.memory_space<vmem>>, vector<1x24x8xbf16>
    %22 = vector.shape_cast %21 : vector<1x24x8xbf16> to vector<24x8xbf16>
    %c0_35 = arith.constant 0 : index
    %c0_36 = arith.constant 0 : index
    %23 = vector.load %arg3[%c0_35, %c0_36] : memref<1x8xf32, #tpu.memory_space<vmem>>, vector<1x8xf32>
    %24 = vector.shape_cast %23 : vector<1x8xf32> to vector<1x8xf32>
    %25 = vector.broadcast %24 : vector<1x8xf32> to vector<128x8xf32>
    %c0_37 = arith.constant 0 : index
    %c0_38 = arith.constant 0 : index
    %26 = vector.load %arg5[%c0_37, %c0_38] : memref<1x8xf32, #tpu.memory_space<vmem>>, vector<1x8xf32>
    %27 = vector.shape_cast %26 : vector<1x8xf32> to vector<1x8xf32>
    %28 = vector.broadcast %27 : vector<1x8xf32> to vector<128x8xf32>
    %cst_39 = arith.constant 0.000000e+00 : bf16
    %29 = vector.broadcast %cst_39 : bf16 to vector<8x1x8xbf16>
    %c0_i32 = arith.constant 0 : i32
    %c8_i32 = arith.constant 8 : i32
    %30 = arith.muli %c0_i32, %c8_i32 : i32
    %31 = tpu.assume_multiple %30, 8 : i32
    %c0_i32_40 = arith.constant 0 : i32
    %32 = arith.addi %31, %c0_i32_40 : i32
    %33 = arith.index_cast %32 : i32 to index
    %c0_41 = arith.constant 0 : index
    %c0_42 = arith.constant 0 : index
    %34 = vector.load %arg7[%33, %c0_41, %c0_42] : memref<18x18x8xbf16, #tpu.memory_space<vmem>>, vector<8x16x8xbf16>
    %c0_i32_43 = arith.constant 0 : i32
    %35 = arith.addi %31, %c0_i32_43 : i32
    %36 = arith.index_cast %35 : i32 to index
    %c1_44 = arith.constant 1 : index
    %c0_45 = arith.constant 0 : index
    %37 = vector.load %arg7[%36, %c1_44, %c0_45] : memref<18x18x8xbf16, #tpu.memory_space<vmem>>, vector<8x16x8xbf16>
    %c0_i32_46 = arith.constant 0 : i32
    %38 = arith.addi %31, %c0_i32_46 : i32
    %39 = arith.index_cast %38 : i32 to index
    %c2_47 = arith.constant 2 : index
    %c0_48 = arith.constant 0 : index
    %40 = vector.load %arg7[%39, %c2_47, %c0_48] : memref<18x18x8xbf16, #tpu.memory_space<vmem>>, vector<8x16x8xbf16>
    %41 = tpu.concatenate %34, %37, %40 in 2 : vector<8x16x8xbf16>, vector<8x16x8xbf16>, vector<8x16x8xbf16> -> vector<8x16x24xbf16>
    %42 = vector.shape_cast %41 : vector<8x16x24xbf16> to vector<128x24xbf16>
    %cst_49 = arith.constant dense<0.000000e+00> : vector<128x8xf32>
    %43 = tpu.matmul %42, %12, %cst_49 {dimension_numbers = #tpu.dot_dimension_numbers<[1], [0], [0], [1], [0, 0, 1, 1], [], []>} : vector<128x24xbf16>, vector<24x8xbf16>, vector<128x8xf32> -> vector<128x8xf32>
    %c1_i32 = arith.constant 1 : i32
    %44 = arith.addi %31, %c1_i32 : i32
    %45 = arith.index_cast %44 : i32 to index
    %c0_50 = arith.constant 0 : index
    %c0_51 = arith.constant 0 : index
    %46 = vector.load %arg7[%45, %c0_50, %c0_51] : memref<18x18x8xbf16, #tpu.memory_space<vmem>>, vector<8x16x8xbf16>
    %c1_i32_52 = arith.constant 1 : i32
    %47 = arith.addi %31, %c1_i32_52 : i32
    %48 = arith.index_cast %47 : i32 to index
    %c1_53 = arith.constant 1 : index
    %c0_54 = arith.constant 0 : index
    %49 = vector.load %arg7[%48, %c1_53, %c0_54] : memref<18x18x8xbf16, #tpu.memory_space<vmem>>, vector<8x16x8xbf16>
    %c1_i32_55 = arith.constant 1 : i32
    %50 = arith.addi %31, %c1_i32_55 : i32
    %51 = arith.index_cast %50 : i32 to index
    %c2_56 = arith.constant 2 : index
    %c0_57 = arith.constant 0 : index
    %52 = vector.load %arg7[%51, %c2_56, %c0_57] : memref<18x18x8xbf16, #tpu.memory_space<vmem>>, vector<8x16x8xbf16>
    %53 = tpu.concatenate %46, %49, %52 in 2 : vector<8x16x8xbf16>, vector<8x16x8xbf16>, vector<8x16x8xbf16> -> vector<8x16x24xbf16>
    %54 = vector.shape_cast %53 : vector<8x16x24xbf16> to vector<128x24xbf16>
    %cst_58 = arith.constant dense<0.000000e+00> : vector<128x8xf32>
    %55 = tpu.matmul %54, %14, %cst_58 {dimension_numbers = #tpu.dot_dimension_numbers<[1], [0], [0], [1], [0, 0, 1, 1], [], []>} : vector<128x24xbf16>, vector<24x8xbf16>, vector<128x8xf32> -> vector<128x8xf32>
    %56 = arith.addf %43, %55 : vector<128x8xf32>
    %c2_i32 = arith.constant 2 : i32
    %57 = arith.addi %31, %c2_i32 : i32
    %58 = arith.index_cast %57 : i32 to index
    %c0_59 = arith.constant 0 : index
    %c0_60 = arith.constant 0 : index
    %59 = vector.load %arg7[%58, %c0_59, %c0_60] : memref<18x18x8xbf16, #tpu.memory_space<vmem>>, vector<8x16x8xbf16>
    %c2_i32_61 = arith.constant 2 : i32
    %60 = arith.addi %31, %c2_i32_61 : i32
    %61 = arith.index_cast %60 : i32 to index
    %c1_62 = arith.constant 1 : index
    %c0_63 = arith.constant 0 : index
    %62 = vector.load %arg7[%61, %c1_62, %c0_63] : memref<18x18x8xbf16, #tpu.memory_space<vmem>>, vector<8x16x8xbf16>
    %c2_i32_64 = arith.constant 2 : i32
    %63 = arith.addi %31, %c2_i32_64 : i32
    %64 = arith.index_cast %63 : i32 to index
    %c2_65 = arith.constant 2 : index
    %c0_66 = arith.constant 0 : index
    %65 = vector.load %arg7[%64, %c2_65, %c0_66] : memref<18x18x8xbf16, #tpu.memory_space<vmem>>, vector<8x16x8xbf16>
    %66 = tpu.concatenate %59, %62, %65 in 2 : vector<8x16x8xbf16>, vector<8x16x8xbf16>, vector<8x16x8xbf16> -> vector<8x16x24xbf16>
    %67 = vector.shape_cast %66 : vector<8x16x24xbf16> to vector<128x24xbf16>
    %cst_67 = arith.constant dense<0.000000e+00> : vector<128x8xf32>
    %68 = tpu.matmul %67, %16, %cst_67 {dimension_numbers = #tpu.dot_dimension_numbers<[1], [0], [0], [1], [0, 0, 1, 1], [], []>} : vector<128x24xbf16>, vector<24x8xbf16>, vector<128x8xf32> -> vector<128x8xf32>
    %69 = arith.addf %56, %68 : vector<128x8xf32>
    %70 = arith.addf %69, %25 : vector<128x8xf32>
    %cst_68 = arith.constant 0.000000e+00 : f32
    %71 = vector.broadcast %cst_68 : f32 to vector<128x8xf32>
    %72 = arith.maximumf %70, %71 : vector<128x8xf32>
    %73 = arith.truncf %72 : vector<128x8xf32> to vector<128x8xbf16>
    %74 = vector.shape_cast %73 : vector<128x8xbf16> to vector<8x16x8xbf16>
    %75 = tpu.concatenate %29, %74, %29 in 1 : vector<8x1x8xbf16>, vector<8x16x8xbf16>, vector<8x1x8xbf16> -> vector<8x18x8xbf16>
    %c1_i32_69 = arith.constant 1 : i32
    %76 = arith.addi %31, %c1_i32_69 : i32
    %77 = arith.index_cast %76 : i32 to index
    %c0_70 = arith.constant 0 : index
    %c0_71 = arith.constant 0 : index
    %78 = vector.load %arg8[%77, %c0_70, %c0_71] : memref<18x18x8xbf16, #tpu.memory_space<vmem>>, vector<8x18x8xbf16>
    tpu.vector_store %arg8[%77, %c0_70, %c0_71], %75 {strides = array<i32>} : memref<18x18x8xbf16, #tpu.memory_space<vmem>>, vector<8x18x8xbf16>,
    %c1_i32_72 = arith.constant 1 : i32
    %c8_i32_73 = arith.constant 8 : i32
    %79 = arith.muli %c1_i32_72, %c8_i32_73 : i32
    %80 = tpu.assume_multiple %79, 8 : i32
    %c0_i32_74 = arith.constant 0 : i32
    %81 = arith.addi %80, %c0_i32_74 : i32
    %82 = arith.index_cast %81 : i32 to index
    %c0_75 = arith.constant 0 : index
    %c0_76 = arith.constant 0 : index
    %83 = vector.load %arg7[%82, %c0_75, %c0_76] : memref<18x18x8xbf16, #tpu.memory_space<vmem>>, vector<8x16x8xbf16>
    %c0_i32_77 = arith.constant 0 : i32
    %84 = arith.addi %80, %c0_i32_77 : i32
    %85 = arith.index_cast %84 : i32 to index
    %c1_78 = arith.constant 1 : index
    %c0_79 = arith.constant 0 : index
    %86 = vector.load %arg7[%85, %c1_78, %c0_79] : memref<18x18x8xbf16, #tpu.memory_space<vmem>>, vector<8x16x8xbf16>
    %c0_i32_80 = arith.constant 0 : i32
    %87 = arith.addi %80, %c0_i32_80 : i32
    %88 = arith.index_cast %87 : i32 to index
    %c2_81 = arith.constant 2 : index
    %c0_82 = arith.constant 0 : index
    %89 = vector.load %arg7[%88, %c2_81, %c0_82] : memref<18x18x8xbf16, #tpu.memory_space<vmem>>, vector<8x16x8xbf16>
    %90 = tpu.concatenate %83, %86, %89 in 2 : vector<8x16x8xbf16>, vector<8x16x8xbf16>, vector<8x16x8xbf16> -> vector<8x16x24xbf16>
    %91 = vector.shape_cast %90 : vector<8x16x24xbf16> to vector<128x24xbf16>
    %cst_83 = arith.constant dense<0.000000e+00> : vector<128x8xf32>
    %92 = tpu.matmul %91, %12, %cst_83 {dimension_numbers = #tpu.dot_dimension_numbers<[1], [0], [0], [1], [0, 0, 1, 1], [], []>} : vector<128x24xbf16>, vector<24x8xbf16>, vector<128x8xf32> -> vector<128x8xf32>
    %c1_i32_84 = arith.constant 1 : i32
    %93 = arith.addi %80, %c1_i32_84 : i32
    %94 = arith.index_cast %93 : i32 to index
    %c0_85 = arith.constant 0 : index
    %c0_86 = arith.constant 0 : index
    %95 = vector.load %arg7[%94, %c0_85, %c0_86] : memref<18x18x8xbf16, #tpu.memory_space<vmem>>, vector<8x16x8xbf16>
    %c1_i32_87 = arith.constant 1 : i32
    %96 = arith.addi %80, %c1_i32_87 : i32
    %97 = arith.index_cast %96 : i32 to index
    %c1_88 = arith.constant 1 : index
    %c0_89 = arith.constant 0 : index
    %98 = vector.load %arg7[%97, %c1_88, %c0_89] : memref<18x18x8xbf16, #tpu.memory_space<vmem>>, vector<8x16x8xbf16>
    %c1_i32_90 = arith.constant 1 : i32
    %99 = arith.addi %80, %c1_i32_90 : i32
    %100 = arith.index_cast %99 : i32 to index
    %c2_91 = arith.constant 2 : index
    %c0_92 = arith.constant 0 : index
    %101 = vector.load %arg7[%100, %c2_91, %c0_92] : memref<18x18x8xbf16, #tpu.memory_space<vmem>>, vector<8x16x8xbf16>
    %102 = tpu.concatenate %95, %98, %101 in 2 : vector<8x16x8xbf16>, vector<8x16x8xbf16>, vector<8x16x8xbf16> -> vector<8x16x24xbf16>
    %103 = vector.shape_cast %102 : vector<8x16x24xbf16> to vector<128x24xbf16>
    %cst_93 = arith.constant dense<0.000000e+00> : vector<128x8xf32>
    %104 = tpu.matmul %103, %14, %cst_93 {dimension_numbers = #tpu.dot_dimension_numbers<[1], [0], [0], [1], [0, 0, 1, 1], [], []>} : vector<128x24xbf16>, vector<24x8xbf16>, vector<128x8xf32> -> vector<128x8xf32>
    %105 = arith.addf %92, %104 : vector<128x8xf32>
    %c2_i32_94 = arith.constant 2 : i32
    %106 = arith.addi %80, %c2_i32_94 : i32
    %107 = arith.index_cast %106 : i32 to index
    %c0_95 = arith.constant 0 : index
    %c0_96 = arith.constant 0 : index
    %108 = vector.load %arg7[%107, %c0_95, %c0_96] : memref<18x18x8xbf16, #tpu.memory_space<vmem>>, vector<8x16x8xbf16>
    %c2_i32_97 = arith.constant 2 : i32
    %109 = arith.addi %80, %c2_i32_97 : i32
    %110 = arith.index_cast %109 : i32 to index
    %c1_98 = arith.constant 1 : index
    %c0_99 = arith.constant 0 : index
    %111 = vector.load %arg7[%110, %c1_98, %c0_99] : memref<18x18x8xbf16, #tpu.memory_space<vmem>>, vector<8x16x8xbf16>
    %c2_i32_100 = arith.constant 2 : i32
    %112 = arith.addi %80, %c2_i32_100 : i32
    %113 = arith.index_cast %112 : i32 to index
    %c2_101 = arith.constant 2 : index
    %c0_102 = arith.constant 0 : index
    %114 = vector.load %arg7[%113, %c2_101, %c0_102] : memref<18x18x8xbf16, #tpu.memory_space<vmem>>, vector<8x16x8xbf16>
    %115 = tpu.concatenate %108, %111, %114 in 2 : vector<8x16x8xbf16>, vector<8x16x8xbf16>, vector<8x16x8xbf16> -> vector<8x16x24xbf16>
    %116 = vector.shape_cast %115 : vector<8x16x24xbf16> to vector<128x24xbf16>
    %cst_103 = arith.constant dense<0.000000e+00> : vector<128x8xf32>
    %117 = tpu.matmul %116, %16, %cst_103 {dimension_numbers = #tpu.dot_dimension_numbers<[1], [0], [0], [1], [0, 0, 1, 1], [], []>} : vector<128x24xbf16>, vector<24x8xbf16>, vector<128x8xf32> -> vector<128x8xf32>
    %118 = arith.addf %105, %117 : vector<128x8xf32>
    %119 = arith.addf %118, %25 : vector<128x8xf32>
    %cst_104 = arith.constant 0.000000e+00 : f32
    %120 = vector.broadcast %cst_104 : f32 to vector<128x8xf32>
    %121 = arith.maximumf %119, %120 : vector<128x8xf32>
    %122 = arith.truncf %121 : vector<128x8xf32> to vector<128x8xbf16>
    %123 = vector.shape_cast %122 : vector<128x8xbf16> to vector<8x16x8xbf16>
    %124 = tpu.concatenate %29, %123, %29 in 1 : vector<8x1x8xbf16>, vector<8x16x8xbf16>, vector<8x1x8xbf16> -> vector<8x18x8xbf16>
    %c1_i32_105 = arith.constant 1 : i32
    %125 = arith.addi %80, %c1_i32_105 : i32
    %126 = arith.index_cast %125 : i32 to index
    %c0_106 = arith.constant 0 : index
    %c0_107 = arith.constant 0 : index
    %127 = vector.load %arg8[%126, %c0_106, %c0_107] : memref<18x18x8xbf16, #tpu.memory_space<vmem>>, vector<8x18x8xbf16>
    tpu.vector_store %arg8[%126, %c0_106, %c0_107], %124 {strides = array<i32>} : memref<18x18x8xbf16, #tpu.memory_space<vmem>>, vector<8x18x8xbf16>,
    %c2_i32_108 = arith.constant 2 : i32
    %c0_i32_109 = arith.constant 0 : i32
    %c8_i32_110 = arith.constant 8 : i32
    %128 = arith.muli %c0_i32_109, %c8_i32_110 : i32
    %129 = tpu.assume_multiple %128, 8 : i32
    %c0_i32_111 = arith.constant 0 : i32
    %130 = arith.addi %129, %c0_i32_111 : i32
    %131 = arith.index_cast %130 : i32 to index
    %c0_112 = arith.constant 0 : index
    %c0_113 = arith.constant 0 : index
    %132 = vector.load %arg8[%131, %c0_112, %c0_113] : memref<18x18x8xbf16, #tpu.memory_space<vmem>>, vector<8x16x8xbf16>
    %c0_i32_114 = arith.constant 0 : i32
    %133 = arith.addi %129, %c0_i32_114 : i32
    %134 = arith.index_cast %133 : i32 to index
    %c1_115 = arith.constant 1 : index
    %c0_116 = arith.constant 0 : index
    %135 = vector.load %arg8[%134, %c1_115, %c0_116] : memref<18x18x8xbf16, #tpu.memory_space<vmem>>, vector<8x16x8xbf16>
    %c0_i32_117 = arith.constant 0 : i32
    %136 = arith.addi %129, %c0_i32_117 : i32
    %137 = arith.index_cast %136 : i32 to index
    %c2_118 = arith.constant 2 : index
    %c0_119 = arith.constant 0 : index
    %138 = vector.load %arg8[%137, %c2_118, %c0_119] : memref<18x18x8xbf16, #tpu.memory_space<vmem>>, vector<8x16x8xbf16>
    %139 = tpu.concatenate %132, %135, %138 in 2 : vector<8x16x8xbf16>, vector<8x16x8xbf16>, vector<8x16x8xbf16> -> vector<8x16x24xbf16>
    %140 = vector.shape_cast %139 : vector<8x16x24xbf16> to vector<128x24xbf16>
    %cst_120 = arith.constant dense<0.000000e+00> : vector<128x8xf32>
    %141 = tpu.matmul %140, %18, %cst_120 {dimension_numbers = #tpu.dot_dimension_numbers<[1], [0], [0], [1], [0, 0, 1, 1], [], []>} : vector<128x24xbf16>, vector<24x8xbf16>, vector<128x8xf32> -> vector<128x8xf32>
    %c1_i32_121 = arith.constant 1 : i32
    %142 = arith.addi %129, %c1_i32_121 : i32
    %143 = arith.index_cast %142 : i32 to index
    %c0_122 = arith.constant 0 : index
    %c0_123 = arith.constant 0 : index
    %144 = vector.load %arg8[%143, %c0_122, %c0_123] : memref<18x18x8xbf16, #tpu.memory_space<vmem>>, vector<8x16x8xbf16>
    %c1_i32_124 = arith.constant 1 : i32
    %145 = arith.addi %129, %c1_i32_124 : i32
    %146 = arith.index_cast %145 : i32 to index
    %c1_125 = arith.constant 1 : index
    %c0_126 = arith.constant 0 : index
    %147 = vector.load %arg8[%146, %c1_125, %c0_126] : memref<18x18x8xbf16, #tpu.memory_space<vmem>>, vector<8x16x8xbf16>
    %c1_i32_127 = arith.constant 1 : i32
    %148 = arith.addi %129, %c1_i32_127 : i32
    %149 = arith.index_cast %148 : i32 to index
    %c2_128 = arith.constant 2 : index
    %c0_129 = arith.constant 0 : index
    %150 = vector.load %arg8[%149, %c2_128, %c0_129] : memref<18x18x8xbf16, #tpu.memory_space<vmem>>, vector<8x16x8xbf16>
    %151 = tpu.concatenate %144, %147, %150 in 2 : vector<8x16x8xbf16>, vector<8x16x8xbf16>, vector<8x16x8xbf16> -> vector<8x16x24xbf16>
    %c0_130 = arith.constant 0 : index
    %152 = arith.index_cast %129 : i32 to index
    %c0_131 = arith.constant 0 : index
    %c0_132 = arith.constant 0 : index
    %153 = vector.load %arg1[%c0_130, %152, %c0_131, %c0_132] : memref<1x16x16x8xbf16, #tpu.memory_space<vmem>>, vector<1x8x16x8xbf16>
    %154 = vector.shape_cast %153 : vector<1x8x16x8xbf16> to vector<8x16x8xbf16>
    %155 = tpu.concatenate %151, %154 in 2 : vector<8x16x24xbf16>, vector<8x16x8xbf16> -> vector<8x16x32xbf16>
    %156 = vector.shape_cast %155 : vector<8x16x32xbf16> to vector<128x32xbf16>
    %cst_133 = arith.constant dense<0.000000e+00> : vector<128x8xf32>
    %157 = tpu.matmul %156, %20, %cst_133 {dimension_numbers = #tpu.dot_dimension_numbers<[1], [0], [0], [1], [0, 0, 1, 1], [], []>} : vector<128x32xbf16>, vector<32x8xbf16>, vector<128x8xf32> -> vector<128x8xf32>
    %158 = arith.addf %141, %157 : vector<128x8xf32>
    %c2_i32_134 = arith.constant 2 : i32
    %159 = arith.addi %129, %c2_i32_134 : i32
    %160 = arith.index_cast %159 : i32 to index
    %c0_135 = arith.constant 0 : index
    %c0_136 = arith.constant 0 : index
    %161 = vector.load %arg8[%160, %c0_135, %c0_136] : memref<18x18x8xbf16, #tpu.memory_space<vmem>>, vector<8x16x8xbf16>
    %c2_i32_137 = arith.constant 2 : i32
    %162 = arith.addi %129, %c2_i32_137 : i32
    %163 = arith.index_cast %162 : i32 to index
    %c1_138 = arith.constant 1 : index
    %c0_139 = arith.constant 0 : index
    %164 = vector.load %arg8[%163, %c1_138, %c0_139] : memref<18x18x8xbf16, #tpu.memory_space<vmem>>, vector<8x16x8xbf16>
    %c2_i32_140 = arith.constant 2 : i32
    %165 = arith.addi %129, %c2_i32_140 : i32
    %166 = arith.index_cast %165 : i32 to index
    %c2_141 = arith.constant 2 : index
    %c0_142 = arith.constant 0 : index
    %167 = vector.load %arg8[%166, %c2_141, %c0_142] : memref<18x18x8xbf16, #tpu.memory_space<vmem>>, vector<8x16x8xbf16>
    %168 = tpu.concatenate %161, %164, %167 in 2 : vector<8x16x8xbf16>, vector<8x16x8xbf16>, vector<8x16x8xbf16> -> vector<8x16x24xbf16>
    %169 = vector.shape_cast %168 : vector<8x16x24xbf16> to vector<128x24xbf16>
    %cst_143 = arith.constant dense<0.000000e+00> : vector<128x8xf32>
    %170 = tpu.matmul %169, %22, %cst_143 {dimension_numbers = #tpu.dot_dimension_numbers<[1], [0], [0], [1], [0, 0, 1, 1], [], []>} : vector<128x24xbf16>, vector<24x8xbf16>, vector<128x8xf32> -> vector<128x8xf32>
    %171 = arith.addf %158, %170 : vector<128x8xf32>
    %172 = arith.addf %171, %28 : vector<128x8xf32>
    %cst_144 = arith.constant 0.000000e+00 : f32
    %173 = vector.broadcast %cst_144 : f32 to vector<128x8xf32>
    %174 = arith.maximumf %172, %173 : vector<128x8xf32>
    %175 = vector.shape_cast %174 : vector<128x8xf32> to vector<8x16x8xf32>
    %c0_145 = arith.constant 0 : index
    %176 = arith.index_cast %129 : i32 to index
    %c0_146 = arith.constant 0 : index
    %c0_147 = arith.constant 0 : index
    %177 = vector.load %arg6[%c0_145, %176, %c0_146, %c0_147] : memref<1x16x16x8xf32, #tpu.memory_space<vmem>>, vector<1x8x16x8xf32>
    %178 = vector.shape_cast %177 : vector<1x8x16x8xf32> to vector<8x16x8xf32>
    %179 = vector.shape_cast %175 : vector<8x16x8xf32> to vector<1x8x16x8xf32>
    tpu.vector_store %arg6[%c0_145, %176, %c0_146, %c0_147], %179 {strides = array<i32>} : memref<1x16x16x8xf32, #tpu.memory_space<vmem>>, vector<1x8x16x8xf32>,
    %c1_i32_148 = arith.constant 1 : i32
    %c8_i32_149 = arith.constant 8 : i32
    %180 = arith.muli %c1_i32_148, %c8_i32_149 : i32
    %181 = tpu.assume_multiple %180, 8 : i32
    %c0_i32_150 = arith.constant 0 : i32
    %182 = arith.addi %181, %c0_i32_150 : i32
    %183 = arith.index_cast %182 : i32 to index
    %c0_151 = arith.constant 0 : index
    %c0_152 = arith.constant 0 : index
    %184 = vector.load %arg8[%183, %c0_151, %c0_152] : memref<18x18x8xbf16, #tpu.memory_space<vmem>>, vector<8x16x8xbf16>
    %c0_i32_153 = arith.constant 0 : i32
    %185 = arith.addi %181, %c0_i32_153 : i32
    %186 = arith.index_cast %185 : i32 to index
    %c1_154 = arith.constant 1 : index
    %c0_155 = arith.constant 0 : index
    %187 = vector.load %arg8[%186, %c1_154, %c0_155] : memref<18x18x8xbf16, #tpu.memory_space<vmem>>, vector<8x16x8xbf16>
    %c0_i32_156 = arith.constant 0 : i32
    %188 = arith.addi %181, %c0_i32_156 : i32
    %189 = arith.index_cast %188 : i32 to index
    %c2_157 = arith.constant 2 : index
    %c0_158 = arith.constant 0 : index
    %190 = vector.load %arg8[%189, %c2_157, %c0_158] : memref<18x18x8xbf16, #tpu.memory_space<vmem>>, vector<8x16x8xbf16>
    %191 = tpu.concatenate %184, %187, %190 in 2 : vector<8x16x8xbf16>, vector<8x16x8xbf16>, vector<8x16x8xbf16> -> vector<8x16x24xbf16>
    %192 = vector.shape_cast %191 : vector<8x16x24xbf16> to vector<128x24xbf16>
    %cst_159 = arith.constant dense<0.000000e+00> : vector<128x8xf32>
    %193 = tpu.matmul %192, %18, %cst_159 {dimension_numbers = #tpu.dot_dimension_numbers<[1], [0], [0], [1], [0, 0, 1, 1], [], []>} : vector<128x24xbf16>, vector<24x8xbf16>, vector<128x8xf32> -> vector<128x8xf32>
    %c1_i32_160 = arith.constant 1 : i32
    %194 = arith.addi %181, %c1_i32_160 : i32
    %195 = arith.index_cast %194 : i32 to index
    %c0_161 = arith.constant 0 : index
    %c0_162 = arith.constant 0 : index
    %196 = vector.load %arg8[%195, %c0_161, %c0_162] : memref<18x18x8xbf16, #tpu.memory_space<vmem>>, vector<8x16x8xbf16>
    %c1_i32_163 = arith.constant 1 : i32
    %197 = arith.addi %181, %c1_i32_163 : i32
    %198 = arith.index_cast %197 : i32 to index
    %c1_164 = arith.constant 1 : index
    %c0_165 = arith.constant 0 : index
    %199 = vector.load %arg8[%198, %c1_164, %c0_165] : memref<18x18x8xbf16, #tpu.memory_space<vmem>>, vector<8x16x8xbf16>
    %c1_i32_166 = arith.constant 1 : i32
    %200 = arith.addi %181, %c1_i32_166 : i32
    %201 = arith.index_cast %200 : i32 to index
    %c2_167 = arith.constant 2 : index
    %c0_168 = arith.constant 0 : index
    %202 = vector.load %arg8[%201, %c2_167, %c0_168] : memref<18x18x8xbf16, #tpu.memory_space<vmem>>, vector<8x16x8xbf16>
    %203 = tpu.concatenate %196, %199, %202 in 2 : vector<8x16x8xbf16>, vector<8x16x8xbf16>, vector<8x16x8xbf16> -> vector<8x16x24xbf16>
    %c0_169 = arith.constant 0 : index
    %204 = arith.index_cast %181 : i32 to index
    %c0_170 = arith.constant 0 : index
    %c0_171 = arith.constant 0 : index
    %205 = vector.load %arg1[%c0_169, %204, %c0_170, %c0_171] : memref<1x16x16x8xbf16, #tpu.memory_space<vmem>>, vector<1x8x16x8xbf16>
    %206 = vector.shape_cast %205 : vector<1x8x16x8xbf16> to vector<8x16x8xbf16>
    %207 = tpu.concatenate %203, %206 in 2 : vector<8x16x24xbf16>, vector<8x16x8xbf16> -> vector<8x16x32xbf16>
    %208 = vector.shape_cast %207 : vector<8x16x32xbf16> to vector<128x32xbf16>
    %cst_172 = arith.constant dense<0.000000e+00> : vector<128x8xf32>
    %209 = tpu.matmul %208, %20, %cst_172 {dimension_numbers = #tpu.dot_dimension_numbers<[1], [0], [0], [1], [0, 0, 1, 1], [], []>} : vector<128x32xbf16>, vector<32x8xbf16>, vector<128x8xf32> -> vector<128x8xf32>
    %210 = arith.addf %193, %209 : vector<128x8xf32>
    %c2_i32_173 = arith.constant 2 : i32
    %211 = arith.addi %181, %c2_i32_173 : i32
    %212 = arith.index_cast %211 : i32 to index
    %c0_174 = arith.constant 0 : index
    %c0_175 = arith.constant 0 : index
    %213 = vector.load %arg8[%212, %c0_174, %c0_175] : memref<18x18x8xbf16, #tpu.memory_space<vmem>>, vector<8x16x8xbf16>
    %c2_i32_176 = arith.constant 2 : i32
    %214 = arith.addi %181, %c2_i32_176 : i32
    %215 = arith.index_cast %214 : i32 to index
    %c1_177 = arith.constant 1 : index
    %c0_178 = arith.constant 0 : index
    %216 = vector.load %arg8[%215, %c1_177, %c0_178] : memref<18x18x8xbf16, #tpu.memory_space<vmem>>, vector<8x16x8xbf16>
    %c2_i32_179 = arith.constant 2 : i32
    %217 = arith.addi %181, %c2_i32_179 : i32
    %218 = arith.index_cast %217 : i32 to index
    %c2_180 = arith.constant 2 : index
    %c0_181 = arith.constant 0 : index
    %219 = vector.load %arg8[%218, %c2_180, %c0_181] : memref<18x18x8xbf16, #tpu.memory_space<vmem>>, vector<8x16x8xbf16>
    %220 = tpu.concatenate %213, %216, %219 in 2 : vector<8x16x8xbf16>, vector<8x16x8xbf16>, vector<8x16x8xbf16> -> vector<8x16x24xbf16>
    %221 = vector.shape_cast %220 : vector<8x16x24xbf16> to vector<128x24xbf16>
    %cst_182 = arith.constant dense<0.000000e+00> : vector<128x8xf32>
    %222 = tpu.matmul %221, %22, %cst_182 {dimension_numbers = #tpu.dot_dimension_numbers<[1], [0], [0], [1], [0, 0, 1, 1], [], []>} : vector<128x24xbf16>, vector<24x8xbf16>, vector<128x8xf32> -> vector<128x8xf32>
    %223 = arith.addf %210, %222 : vector<128x8xf32>
    %224 = arith.addf %223, %28 : vector<128x8xf32>
    %cst_183 = arith.constant 0.000000e+00 : f32
    %225 = vector.broadcast %cst_183 : f32 to vector<128x8xf32>
    %226 = arith.maximumf %224, %225 : vector<128x8xf32>
    %227 = vector.shape_cast %226 : vector<128x8xf32> to vector<8x16x8xf32>
    %c0_184 = arith.constant 0 : index
    %228 = arith.index_cast %181 : i32 to index
    %c0_185 = arith.constant 0 : index
    %c0_186 = arith.constant 0 : index
    %229 = vector.load %arg6[%c0_184, %228, %c0_185, %c0_186] : memref<1x16x16x8xf32, #tpu.memory_space<vmem>>, vector<1x8x16x8xf32>
    %230 = vector.shape_cast %229 : vector<1x8x16x8xf32> to vector<8x16x8xf32>
    %231 = vector.shape_cast %227 : vector<8x16x8xf32> to vector<1x8x16x8xf32>
    tpu.vector_store %arg6[%c0_184, %228, %c0_185, %c0_186], %231 {strides = array<i32>} : memref<1x16x16x8xf32, #tpu.memory_space<vmem>>, vector<1x8x16x8xf32>,
    %c2_i32_187 = arith.constant 2 : i32
    return
  }
  func.func @transform_0(%arg0: i32) -> (i32, i32, i32, i32) {
    %c0_i32 = arith.constant 0 : i32
    %c0_i32_0 = arith.constant 0 : i32
    %c0_i32_1 = arith.constant 0 : i32
    %c0_i32_2 = arith.constant 0 : i32
    return %arg0, %c0_i32, %c0_i32_0, %c0_i32_1 : i32, i32, i32, i32
  }
  func.func @transform_1(%arg0: i32) -> (i32, i32, i32) {
    %c0_i32 = arith.constant 0 : i32
    %c0_i32_0 = arith.constant 0 : i32
    %c0_i32_1 = arith.constant 0 : i32
    %c0_i32_2 = arith.constant 0 : i32
    return %c0_i32, %c0_i32_0, %c0_i32_1 : i32, i32, i32
  }
  func.func @transform_2(%arg0: i32) -> (i32, i32) {
    %c0_i32 = arith.constant 0 : i32
    %c0_i32_0 = arith.constant 0 : i32
    %c0_i32_1 = arith.constant 0 : i32
    return %c0_i32, %c0_i32_0 : i32, i32
  }
  func.func @transform_3(%arg0: i32) -> (i32, i32, i32) {
    %c0_i32 = arith.constant 0 : i32
    %c0_i32_0 = arith.constant 0 : i32
    %c0_i32_1 = arith.constant 0 : i32
    %c0_i32_2 = arith.constant 0 : i32
    return %c0_i32, %c0_i32_0, %c0_i32_1 : i32, i32, i32
  }
  func.func @transform_4(%arg0: i32) -> (i32, i32) {
    %c0_i32 = arith.constant 0 : i32
    %c0_i32_0 = arith.constant 0 : i32
    %c0_i32_1 = arith.constant 0 : i32
    return %c0_i32, %c0_i32_0 : i32, i32
  }
  func.func @transform_5(%arg0: i32) -> (i32, i32, i32, i32) {
    %c0_i32 = arith.constant 0 : i32
    %c0_i32_0 = arith.constant 0 : i32
    %c0_i32_1 = arith.constant 0 : i32
    %c0_i32_2 = arith.constant 0 : i32
    return %arg0, %c0_i32, %c0_i32_0, %c0_i32_1 : i32, i32, i32, i32
  }
}

</mosaic_0001>

<bundles_post_ra>
// kernel: tpu_custom_call.1
= control target key start
LH: loop header
LB: loop body
LE: loop exit
PB: predicated region body
PF: predicated region fallthrough
CT: control target
= control target key end

     0   :  { %s8267_s18 = smov 0   ;;  %s10718_s0 = inlined_call_operand.vmem [shape: bf16[2,16,16,8], index: 0, kind: input, shape index: {}]   ;;  %s10719_s1 = inlined_call_operand.vmem [shape: bf16[3,24,8], index: 1, kind: input, shape index: {}]   ;;  %s10720_s2 = inlined_call_operand.vmem [shape: f32[1,8], index: 2, kind: input, shape index: {}]   ;;  %s10721_s3 = inlined_call_operand.vmem [shape: bf16[3,32,8], index: 3, kind: input, shape index: {}]   ;;  %s10722_s4 = inlined_call_operand.vmem [shape: f32[1,8], index: 4, kind: input, shape index: {}]   ;;  %s10723_s5 = inlined_call_operand.vmem [shape: f32[2,16,16,8], index: 5, kind: output, shape index: {}]  }
   0x1 LB: > { %s6805_s19 = sadd.s32 4294967295, %s8231_s18   ;;  %p6809_p0 = scmp.ge.s32.totalorder %s8231_s18, 1  ;;  %s8231_s18 = sphi %s8267_s18, %s15_s18  }
   0x2   : > { %p187_p1 = scmp.lt.s32.totalorder %s8231_s18, 3 }
   0x4   : > { %p188_p2 = pnand %p6809_p0, %p187_p1 }
   0x6   : > { %191 = sbr.rel (%p188_p2) target bundleno = 1137 (0x471), region = 40 }
   0xd   : > { %p215_p3 = scmp.lt.s32.totalorder %s6805_s19, 1  ;;  %vm226_vm0 = vcmask 60416   ;;  %vm229_vm1 = vcmask 57344   ;;  %vm492_vm2 = vsmask.f32 256  ;;  %v8233_v0 = vmov 0  }
   0xe   : > { %227 = vst.msk [vmem:[#allocation2] sm:$0xf] %vm226_vm0, %v8233_v0  ;;  %228 = vst.msk [vmem:[#allocation2 + $0x4] sm:$0xf] %vm226_vm0, %v8233_v0  ;;  %vm491_vm3 = vcmask 1040384   ;;  %v10763_v5 = vmov 0 }
   0xf   : > { %s10870_s19 = smov (!%p215_p3, %s6805_s19), 1  ;;  %230 = vst.msk [vmem:[#allocation2 + $0x8] sm:$0x1] %vm229_vm1, %v8233_v0  ;;  %234 = vst.msk [vmem:[#allocation2 + $0xd4] sm:$0x1] %vm229_vm1, %v8233_v0  ;;  %vm1031_vm5 = vcmask 1046528  }
  0x10   : > { %232 = vst.msk [vmem:[#allocation2 + $0xcc] sm:$0xf] %vm226_vm0, %v8233_v0  ;;  %233 = vst.msk [vmem:[#allocation2 + $0xd0] sm:$0xf] %vm226_vm0, %v8233_v0  ;;  %s7387_s20 = sshll.u32 %s10870_s19, 7  ;;  %s8234_s24 = smov 16  }
  0x11   : > { %751 = vst.msk [vmem:[#allocation3] sm:$0xf] %vm226_vm0, %v8233_v0  ;;  %752 = vst.msk [vmem:[#allocation3 + $0x4] sm:$0xf] %vm226_vm0, %v8233_v0  ;;  %s8293_s23 = scalar_lea.vmem %s10718_s0, %s7387_s20  ;;  %vm894_vm6 = vsmask.f32 7424 }
  0x12   : > { %753 = vst.msk [vmem:[#allocation3 + $0x8] sm:$0x1] %vm229_vm1, %v8233_v0  ;;  %757 = vst.msk [vmem:[#allocation3 + $0xd4] sm:$0x1] %vm229_vm1, %v8233_v0  ;;  %v7899_v1 = vld [vmem:[%s8293_s23 + $0x8] sm:$0xff]   ;;  %v7903_v2 = vld [vmem:[%s8293_s23] sm:$0xff]  }
  0x13   : > { %755 = vst.msk [vmem:[#allocation3 + $0xcc] sm:$0xf] %vm226_vm0, %v8233_v0  ;;  %756 = vst.msk [vmem:[#allocation3 + $0xd0] sm:$0xf] %vm226_vm0, %v8233_v0  ;;  %v355_v3 = vshrl.u32 %v7899_v1, 16  ;;  %v358_v4 = vshll.u32 %v7899_v1, 16 }
  0x14   : > { %vm8298_vm4 = vmand %vm491_vm3, %vm492_vm2  ;;  %v348_v6 = vshrl.u32 %v7903_v2, 16  ;;  %v351_v7 = vshll.u32 %v7903_v2, 16  ;;  %v7907_v8 = vld [vmem:[%s8293_s23 + $0x18] sm:$0xff]   ;;  %v7911_v9 = vld [vmem:[%s8293_s23 + $0x40] sm:$0xff]   ;;  %s8235_s25 = smov 8   ;;  %vm1072_vm7 = vcmask 64512  }
  0x15   : > { %v10764_v5 = vsel %vm8298_vm4, 4294967295, %v10763_v5  ;;  %v357_v10 = vrot.slane %v355_v3, 7  ;;  %v7915_v11 = vld [vmem:[%s8293_s23 + $0x48] sm:$0xff]   ;;  %v369_v13 = vshrl.u32 %v7907_v8, 16  ;;  %v372_v14 = vshll.u32 %v7907_v8, 16  ;;  %v7919_v36 = vld [vmem:[%s8293_s23 + $0x10] sm:$0xff]  }
  0x16   : > { %10765 = vst [vmem:[#allocation4_spill] sm:$0xff] %v10764_v5  ;;  %v350_v12 = vrot.slane %v348_v6, 7  ;;  %v404_v15 = vshrl.u32 %v7911_v9, 16  ;;  %v407_v18 = vshll.u32 %v7911_v9, 16  ;;  %v411_v19 = vshrl.u32 %v7915_v11, 16  ;;  %v8332_v49 = vld [vmem:[%s8293_s23 + $0x50] sm:$0xff]  }
  0x17   : > { %v360_v16 = vor.u32 %v358_v4, %v357_v10  ;;  %v511_v17 = vsel %vm8298_vm4, %v357_v10, 0  ;;  %v371_v23 = vrot.slane %v369_v13, 7  ;;  %v414_v40 = vshll.u32 %v7915_v11, 16  ;;  %v8342_v54 = vld [vmem:[%s8293_s23 + $0x58] sm:$0xff]   ;;  %s8236_s11 = smov 24   ;;  %s7388_s7 = sshll.u32 %s10870_s19, 8 }
  0x18   : > { %v6835_v20 = vcombine.low %v511_v17, %v511_v17  ;;  %v353_v21 = vor.u32 %v351_v7, %v350_v12  ;;  %v510_v22 = vsel %vm8298_vm4, %v350_v12, 0  ;;  %v406_v26 = vrot.slane %v404_v15, 7  ;;  %s10618_s10 = scalar_lea.vmem %s10723_s5, %s7388_s7 }
  0x19   : > { %v495_v24 = vsel %vm8298_vm4, 0, %v360_v16  ;;  %v6832_v25 = vcombine.low %v510_v22, %v510_v22  ;;  %v413_v27 = vrot.slane %v411_v19, 7  ;;  %v374_v31 = vor.u32 %v372_v14, %v371_v23 }
  0x1a   : > { %v6833_v28 = vcombine.low %v495_v24, %v495_v24  ;;  %v6834_v29 = vcombine.high %v495_v24, %v495_v24  ;;  %708 = vst.msk [vmem:[#allocation2 + $0x20] sm:$0x1] %vm229_vm1, %v6835_v20  ;;  %v494_v30 = vsel %vm8298_vm4, 0, %v353_v21  ;;  %v513_v34 = vsel %vm8298_vm4, %v371_v23, 0 }
  0x1b   : > { %v6830_v32 = vcombine.low %v494_v30, %v494_v30  ;;  %v6831_v33 = vcombine.high %v494_v30, %v494_v30  ;;  %705 = vst.msk [vmem:[#allocation2 + $0x14] sm:$0x1] %vm229_vm1, %v6832_v25  ;;  %v409_v35 = vor.u32 %v407_v18, %v406_v26  ;;  %v497_v37 = vsel %vm8298_vm4, 0, %v374_v31 }
  0x1c   : > { %706 = vst.msk [vmem:[#allocation2 + $0x18] sm:$0xf] %vm226_vm0, %v6833_v28  ;;  %707 = vst.msk [vmem:[#allocation2 + $0x1c] sm:$0xf] %vm226_vm0, %v6834_v29  ;;  %v6841_v38 = vcombine.low %v513_v34, %v513_v34  ;;  %v518_v39 = vsel %vm8298_vm4, %v406_v26, 0  ;;  %v6839_v41 = vcombine.low %v497_v37, %v497_v37  ;;  %v6840_v42 = vcombine.high %v497_v37, %v497_v37 }
  0x1d   : > { %703 = vst.msk [vmem:[#allocation2 + $0xc] sm:$0xf] %vm226_vm0, %v6830_v32  ;;  %704 = vst.msk [vmem:[#allocation2 + $0x10] sm:$0xf] %vm226_vm0, %v6831_v33  ;;  %v502_v43 = vsel %vm8298_vm4, 0, %v409_v35  ;;  %v6856_v44 = vcombine.low %v518_v39, %v518_v39  ;;  %v416_v47 = vor.u32 %v414_v40, %v413_v27  ;;  %v519_v48 = vsel %vm8298_vm4, %v413_v27, 0 }
  0x1e   : > { %714 = vst.msk [vmem:[#allocation2 + $0x38] sm:$0x1] %vm229_vm1, %v6841_v38  ;;  %v6854_v45 = vcombine.low %v502_v43, %v502_v43  ;;  %v6855_v46 = vcombine.high %v502_v43, %v502_v43  ;;  %v6859_v50 = vcombine.low %v519_v48, %v519_v48  ;;  %v362_v51 = vshrl.u32 %v7919_v36, 16 }
  0x1f   : > { %712 = vst.msk [vmem:[#allocation2 + $0x30] sm:$0xf] %vm226_vm0, %v6839_v41  ;;  %713 = vst.msk [vmem:[#allocation2 + $0x34] sm:$0xf] %vm226_vm0, %v6840_v42  ;;  %v365_v52 = vshll.u32 %v7919_v36, 16  ;;  %v503_v53 = vsel %vm8298_vm4, 0, %v416_v47 }
  0x20   : > { %729 = vst.msk [vmem:[#allocation2 + $0x74] sm:$0x1] %vm229_vm1, %v6856_v44  ;;  %v6857_v56 = vcombine.low %v503_v53, %v503_v53  ;;  %v6858_v57 = vcombine.high %v503_v53, %v503_v53  ;;  %732 = vst.msk [vmem:[#allocation2 + $0x80] sm:$0x1] %vm229_vm1, %v6859_v50  ;;  %v364_v58 = vrot.slane %v362_v51, 7  ;;  %v418_v60 = vshrl.u32 %v8332_v49, 16 }
  0x21   : > { %727 = vst.msk [vmem:[#allocation2 + $0x6c] sm:$0xf] %vm226_vm0, %v6854_v45  ;;  %728 = vst.msk [vmem:[#allocation2 + $0x70] sm:$0xf] %vm226_vm0, %v6855_v46  ;;  %v421_v7 = vshll.u32 %v8332_v49, 16  ;;  %v425_v11 = vshrl.u32 %v8342_v54, 16 }
  0x22   : > { %v8344_v55 = vld [vmem:[#allocation2 + $0x20] ss:$0 sps:$4 sm:$0x11]   ;;  %v7904_v59 = vld [vmem:[#allocation2 + $0x14] ss:$0 sps:$4 sm:$0x11]   ;;  %v367_v63 = vor.u32 %v365_v52, %v364_v58 }
  0x23   : > { %v8348_v61 = vld [vmem:[#allocation2 + $0x1c] sm:$0xf]  ;;  %v1135_v62 = vld [vmem:[#allocation2 + $0x18] sm:$0xe]  ;;  %730 = vst.msk [vmem:[#allocation2 + $0x78] sm:$0xf] %vm226_vm0, %v6857_v56 }
  0x24   : > { %731 = vst.msk [vmem:[#allocation2 + $0x7c] sm:$0xf] %vm226_vm0, %v6858_v57  ;;  %v512_v0 = vsel %vm8298_vm4, %v364_v58, 0  ;;  %v6934_v1 = vcombine.low %v1135_v62, %v8348_v61  ;;  %v1346_v2 = vrot.slane %v8344_v55, 1  ;;  %v1111_v3 = vld [vmem:[#allocation2 + $0x10] sm:$0xf] }
  0x25   : > { %v1134_v4 = vld [vmem:[#allocation2 + $0xc] sm:$0xe]  ;;  %v6838_v6 = vcombine.low %v512_v0, %v512_v0  ;;  %v1343_v9 = vrot.slane %v7904_v59, 1  ;;  %v1214_v14 = vshll.u32 %v7904_v59, 16  ;;  %v496_v15 = vsel %vm8298_vm4, 0, %v367_v63 }
  0x26   : > { %v6933_v8 = vcombine.low %v1134_v4, %v1111_v3  ;;  %v1110_v10 = vld [vmem:[#allocation2 + $0xc] sm:$0xf]  ;;  %v1345_v12 = vrot.slane %v6934_v1, 1  ;;  %v8358_v13 = vld [vmem:[#allocation2 + $0x34] sm:$0xf]  ;;  %v8363_v16 = vrot.slane %v418_v60, 7  ;;  %v6836_v21 = vcombine.low %v496_v15, %v496_v15 }
  0x27   : > { %711 = vst.msk [vmem:[#allocation2 + $0x2c] sm:$0x1] %vm229_vm1, %v6838_v6  ;;  %v8365_v18 = vcombine.low %v1110_v10, %v1111_v3  ;;  %v1137_v19 = vld [vmem:[#allocation2 + $0x30] sm:$0xe]  ;;  %v6837_v22 = vcombine.high %v496_v15, %v496_v15  ;;  %v428_v35 = vshll.u32 %v8342_v54, 16  ;;  %v1216_v46 = vrot.slane %v1214_v14, 1 }
  0x28   : > { %v1342_v17 = vrot.slane %v6933_v8, 1  ;;  %v8367_v20 = vld [vmem:[#allocation2 + $0x38] ss:$0 sps:$4 sm:$0x11]   ;;  %v1347_v23 = vsel %vm1031_vm5, %v1345_v12, %v1346_v2  ;;  %v6936_v24 = vcombine.low %v1137_v19, %v8358_v13  ;;  %v2668_v25 = vld [vmem:[#allocation2 + $0x6c] sm:$0xf]  ;;  %v423_v49 = vor.u32 %v421_v7, %v8363_v16 }
  0x29   : > { %v2669_v26 = vld [vmem:[#allocation2 + $0x70] sm:$0xf]  ;;  %1368 = vrot.lane.b32.xlu0 %v1347_v23, %s8234_s24  ;;  %v1352_v28 = vrot.slane %v8367_v20, 1  ;;  %v2692_v29 = vld [vmem:[#allocation2 + $0x6c] sm:$0xe]  ;;  %v1207_v34 = vshrl.u32 %v8365_v18, 16 }
  0x2a   : > { %v1344_v27 = vsel %vm1031_vm5, %v1342_v17, %v1343_v9  ;;  %v7913_v30 = vld [vmem:[#allocation2 + $0x74] ss:$0 sps:$4 sm:$0x11]   ;;  %709 = vst.msk [vmem:[#allocation2 + $0x24] sm:$0xf] %vm226_vm0, %v6836_v21  ;;  %v1351_v31 = vrot.slane %v6936_v24, 1  ;;  %v7059_v32 = vcombine.low %v2692_v29, %v2669_v26  ;;  %v8379_v37 = vcombine.low %v2668_v25, %v2669_v26 }
  0x2b   : > { %710 = vst.msk [vmem:[#allocation2 + $0x28] sm:$0xf] %vm226_vm0, %v6837_v22  ;;  %1366 = vrot.lane.b32.xlu1 %v1344_v27, %s8234_s24  ;;  %v2671_v33 = vld [vmem:[#allocation2 + $0x7c] sm:$0xf]  ;;  %v1112_v36 = vld [vmem:[#allocation2 + $0x18] sm:$0xf] }
  0x2c   : > { %v2901_v38 = vrot.slane %v7913_v30, 1  ;;  %v2670_v39 = vld [vmem:[#allocation2 + $0x78] sm:$0xf]  ;;  %v1209_v41 = vshll.u32 %v8365_v18, 16  ;;  %v1353_v42 = vsel %vm1031_vm5, %v1351_v31, %v1352_v28  ;;  %v2900_v43 = vrot.slane %v7059_v32, 1 }
  0x2d   : > { %v2693_v40 = vld [vmem:[#allocation2 + $0x78] sm:$0xe]  ;;  %v7917_v44 = vld [vmem:[#allocation2 + $0x80] ss:$0 sps:$4 sm:$0x11]   ;;  %1372 = vrot.lane.b32.xlu0 %v1353_v42, %s8234_s24  ;;  %v2765_v53 = vshrl.u32 %v8379_v37, 16  ;;  %v8390_v60 = vcombine.low %v1112_v36, %v8348_v61  ;;  %v8392_v62 = vcombine.low %v2670_v39, %v2671_v33 }
  0x2e   : > { %v7060_v45 = vcombine.low %v2693_v40, %v2671_v33  ;;  %v1211_v47 = vrot.slane %v1209_v41, 1  ;;  %v7921_v48 = vld [vmem:[#allocation2 + $0x2c] ss:$0 sps:$4 sm:$0x11]   ;;  %v2902_v50 = vsel %vm1031_vm5, %v2900_v43, %v2901_v38  ;;  %v2904_v52 = vrot.slane %v7917_v44, 1 }
  0x2f   : > { %2924 = vrot.lane.b32.xlu1 %v2902_v50, %s8234_s24  ;;  %v1349_v57 = vrot.slane %v7921_v48, 1  ;;  %v2767_v58 = vshll.u32 %v8379_v37, 16  ;;  %v2772_v59 = vshll.u32 %v7913_v30, 16  ;;  %v504_v61 = vsel %vm8298_vm4, 0, %v423_v49  ;;  %v1116_v19 = vld [vmem:[#allocation2 + $0x30] sm:$0xf] }
  0x30   : > { %v2903_v51 = vrot.slane %v7060_v45, 1  ;;  %v1212_v56 = vor.u32 %v1211_v47, %v1207_v34  ;;  %v520_v9 = vsel %vm8298_vm4, %v8363_v16, 0  ;;  %v2777_v10 = vshrl.u32 %v8392_v62, 16  ;;  %v7931_v34 = vld [vmem:[%s8293_s23 + $0x60] sm:$0xff]  }
  0x31   : > { %v1114_v0 = vld [vmem:[#allocation2 + $0x24] sm:$0xf]  ;;  %v2769_v7 = vrot.slane %v2767_v58, 1  ;;  %v2774_v8 = vrot.slane %v2772_v59, 1  ;;  %v6860_v15 = vcombine.low %v504_v61, %v504_v61  ;;  %v6861_v17 = vcombine.high %v504_v61, %v504_v61 }
  0x32   : > { %v2905_v63 = vsel %vm1031_vm5, %v2903_v51, %v2904_v52  ;;  %v1115_v1 = vld [vmem:[#allocation2 + $0x28] sm:$0xf]  ;;  %v1136_v2 = vld [vmem:[#allocation2 + $0x24] sm:$0xe]  ;;  %v1217_v3 = vsel %vm894_vm6, %v1212_v56, %v1216_v46  ;;  %v6862_v21 = vcombine.low %v520_v9, %v520_v9  ;;  %v2779_v22 = vshll.u32 %v8392_v62, 16 }
  0x33   : > { %v8396_v4 = vcombine.low %v1114_v0, %v1115_v1  ;;  %v6935_v6 = vcombine.low %v1136_v2, %v1115_v1  ;;  %1302 = vrot.lane.b32.xlu0 %v1217_v3, %s8235_s25  ;;  %2926 = vrot.lane.b32.xlu1 %v2905_v63, %s8234_s24  ;;  %v2770_v14 = vor.u32 %v2769_v7, %v2765_v53  ;;  %v2784_v23 = vshll.u32 %v7917_v44, 16  ;;  %v7934_v7 = vld [vmem:[%s8293_s23 + $0x20] sm:$0xff]  }
  0x34   : > { %v427_v24 = vrot.slane %v425_v11, 7  ;;  %733 = vst.msk [vmem:[#allocation2 + $0x84] sm:$0xf] %vm226_vm0, %v6860_v15  ;;  %734 = vst.msk [vmem:[#allocation2 + $0x88] sm:$0xf] %vm226_vm0, %v6861_v17  ;;  %v2781_v28 = vrot.slane %v2779_v22, 1  ;;  %v8420_v30 = vcombine.low %v1116_v19, %v8358_v13 }
  0x35   : > { %v1348_v12 = vrot.slane %v6935_v6, 1  ;;  %v2775_v16 = vsel %vm894_vm6, %v2770_v14, %v2774_v8  ;;  %v1231_v26 = vshrl.u32 %v8396_v4, 16  ;;  %v1233_v27 = vshll.u32 %v8396_v4, 16  ;;  %735 = vst.msk [vmem:[#allocation2 + $0x8c] sm:$0x1] %vm229_vm1, %v6862_v21 }
  0x36   : > { %v2786_v54 = vrot.slane %v2784_v23, 1  ;;  %v430_v11 = vor.u32 %v428_v35, %v427_v24  ;;  %v521_v29 = vsel %vm8298_vm4, %v427_v24, 0  ;;  %v1238_v33 = vshll.u32 %v7921_v48, 16 }
  0x37   : > { %v1350_v25 = vsel %vm1031_vm5, %v1348_v12, %v1349_v57  ;;  %2860 = vrot.lane.b32.xlu0 %v2775_v16, %s8235_s25  ;;  %v6865_v31 = vcombine.low %v521_v29, %v521_v29  ;;  %v1235_v32 = vrot.slane %v1233_v27, 1  ;;  %v2782_v36 = vor.u32 %v2781_v28, %v2777_v10  ;;  %v7938_v29 = vld [vmem:[%s8293_s23 + $0x28] sm:$0xff]  }
  0x38   : > { %1370 = vrot.lane.b32.xlu1 %v1350_v25, %s8234_s24  ;;  %v505_v38 = vsel %vm8298_vm4, 0, %v430_v11  ;;  %v1221_v39 = vshll.u32 %v8390_v60, 16  ;;  %v1240_v42 = vrot.slane %v1238_v33, 1  ;;  %v1219_v43 = vshrl.u32 %v8390_v60, 16 }
  0x39   : > { %v6863_v40 = vcombine.low %v505_v38, %v505_v38  ;;  %v6864_v35 = vcombine.high %v505_v38, %v505_v38  ;;  %738 = vst.msk [vmem:[#allocation2 + $0x98] sm:$0x1] %vm229_vm1, %v6865_v31  ;;  %v1236_v41 = vor.u32 %v1235_v32, %v1231_v26  ;;  %v2787_v13 = vsel %vm894_vm6, %v2782_v36, %v2786_v54  ;;  %v7941_v31 = vld [vmem:[%s8293_s23 + $0x68] sm:$0xff]  }
  0x3a   : > { %v1223_v44 = vrot.slane %v1221_v39, 1  ;;  %v1226_v45 = vshll.u32 %v8344_v55, 16  ;;  %v1243_v46 = vshrl.u32 %v8420_v30, 16  ;;  %v1245_v47 = vshll.u32 %v8420_v30, 16  ;;  %v8005_v38 = vld [vmem:[%s10719_s1 + $0xc] sm:$0xff]  }
  0x3b   : > { %2862 = vrot.lane.b32.xlu0 %v2787_v13, %s8235_s25  ;;  %736 = vst.msk [vmem:[#allocation2 + $0x90] sm:$0xf] %vm226_vm0, %v6863_v40  ;;  %737 = vst.msk [vmem:[#allocation2 + $0x94] sm:$0xf] %vm226_vm0, %v6864_v35  ;;  %v1250_v48 = vshll.u32 %v8367_v20, 16  ;;  %v432_v49 = vshrl.u32 %v7931_v34, 16  ;;  %v1241_v53 = vsel %vm894_vm6, %v1236_v41, %v1240_v42  ;;  %7569 = vmatprep.subr.bf16.mxu1 %v8005_v38 }
  0x3c   : > { %v2672_v50 = vld [vmem:[#allocation2 + $0x84] sm:$0xf]  ;;  %v2673_v51 = vld [vmem:[#allocation2 + $0x88] sm:$0xf]  ;;  %v1247_v58 = vrot.slane %v1245_v47, 1  ;;  %v1228_v59 = vrot.slane %v1226_v45, 1  ;;  %v1224_v61 = vor.u32 %v1223_v44, %v1219_v43  ;;  %7509 = vmatprep.subr.bf16.mxu0 %v8005_v38  ;;  %7570 = vmatpush3.bf16.msra.mxu1 %v8005_v38 }
  0x3d   : > { %v2694_v52 = vld [vmem:[#allocation2 + $0x84] sm:$0xe]  ;;  %v8438_v55 = vcombine.low %v2672_v50, %v2673_v51  ;;  %v7925_v56 = vld [vmem:[#allocation2 + $0x8c] ss:$0 sps:$4 sm:$0x11]   ;;  %v1252_v63 = vrot.slane %v1250_v48, 1  ;;  %7510 = vmatpush3.bf16.msra.mxu0 %v8005_v38 }
  0x3e   : > { %v7061_v57 = vcombine.low %v2694_v52, %v2673_v51  ;;  %v434_v0 = vrot.slane %v432_v49, 7  ;;  %v435_v1 = vshll.u32 %v7931_v34, 16  ;;  %v2907_v3 = vrot.slane %v7925_v56, 1  ;;  %v7945_v42 = vld [vmem:[%s8293_s23 + $0x70] sm:$0xff]  }
  0x3f   : > { %1306 = vrot.lane.b32.xlu0 %v1241_v53, %s8235_s25  ;;  %v1248_v20 = vor.u32 %v1247_v58, %v1243_v46  ;;  %v2789_v6 = vshrl.u32 %v8438_v55, 16  ;;  %v2791_v9 = vshll.u32 %v8438_v55, 16  ;;  %v2796_v15 = vshll.u32 %v7925_v56, 16 }
  0x40   : > { %v2906_v2 = vrot.slane %v7061_v57, 1  ;;  %v7929_v8 = vld [vmem:[#allocation2 + $0x98] ss:$0 sps:$4 sm:$0x11]   ;;  %v437_v10 = vor.u32 %v435_v1, %v434_v0  ;;  %v522_v17 = vsel %vm8298_vm4, %v434_v0, 0  ;;  %v1229_v27 = vsel %vm894_vm6, %v1224_v61, %v1228_v59  ;;  %v7948_v59 = vld [vmem:[%s8293_s23 + $0x30] sm:$0xff]  }
  0x41   : > { %v1253_v14 = vsel %vm894_vm6, %v1248_v20, %v1252_v63  ;;  %v6868_v23 = vcombine.low %v522_v17, %v522_v17  ;;  %v2910_v16 = vrot.slane %v7929_v8, 1  ;;  %v2793_v26 = vrot.slane %v2791_v9, 1 }
  0x42   : > { %v2908_v12 = vsel %vm1031_vm5, %v2906_v2, %v2907_v3  ;;  %v2674_v19 = vld [vmem:[#allocation2 + $0x90] sm:$0xf]  ;;  %v2675_v21 = vld [vmem:[#allocation2 + $0x94] sm:$0xf]  ;;  %v2808_v28 = vshll.u32 %v7929_v8, 16  ;;  %v506_v54 = vsel %vm8298_vm4, 0, %v437_v10 }
  0x43   : > { %2928 = vrot.lane.b32.xlu1 %v2908_v12, %s8234_s24  ;;  %v2695_v22 = vld [vmem:[#allocation2 + $0x90] sm:$0xe]  ;;  %v8449_v24 = vcombine.low %v2674_v19, %v2675_v21  ;;  %1308 = vrot.lane.b32.xlu0 %v1253_v14, %s8235_s25  ;;  %741 = vst.msk [vmem:[#allocation2 + $0xa4] sm:$0x1] %vm229_vm1, %v6868_v23  ;;  %v376_v11 = vshrl.u32 %v7934_v7, 16  ;;  %v2798_v33 = vrot.slane %v2796_v15, 1  ;;  %v2794_v39 = vor.u32 %v2793_v26, %v2789_v6 }
  0x44   : > { %v7062_v25 = vcombine.low %v2695_v22, %v2675_v21  ;;  %v6866_v40 = vcombine.low %v506_v54, %v506_v54  ;;  %v6867_v35 = vcombine.high %v506_v54, %v506_v54  ;;  %v2810_v44 = vrot.slane %v2808_v28, 1 }
  0x45   : > { %v2801_v34 = vshrl.u32 %v8449_v24, 16  ;;  %v2803_v36 = vshll.u32 %v8449_v24, 16  ;;  %v378_v41 = vrot.slane %v376_v11, 7  ;;  %v379_v45 = vshll.u32 %v7934_v7, 16 }
  0x46   : > { %v2909_v32 = vrot.slane %v7062_v25, 1  ;;  %739 = vst.msk [vmem:[#allocation2 + $0x9c] sm:$0xf] %vm226_vm0, %v6866_v40  ;;  %740 = vst.msk [vmem:[#allocation2 + $0xa0] sm:$0xf] %vm226_vm0, %v6867_v35  ;;  %v383_v47 = vshrl.u32 %v7938_v29, 16  ;;  %v2799_v63 = vsel %vm894_vm6, %v2794_v39, %v2798_v33 }
  0x47   : > { %v2805_v43 = vrot.slane %v2803_v36, 1  ;;  %v514_v46 = vsel %vm8298_vm4, %v378_v41, 0  ;;  %v386_v48 = vshll.u32 %v7938_v29, 16  ;;  %v439_v49 = vshrl.u32 %v7941_v31, 16 }
  0x48   : > { %v2911_v13 = vsel %vm1031_vm5, %v2909_v32, %v2910_v16  ;;  %v381_v51 = vor.u32 %v379_v45, %v378_v41  ;;  %v6844_v52 = vcombine.low %v514_v46, %v514_v46  ;;  %v442_v53 = vshll.u32 %v7941_v31, 16 }
  0x49   : > { %2930 = vrot.lane.b32.xlu1 %v2911_v13, %s8234_s24  ;;  %v2806_v50 = vor.u32 %v2805_v43, %v2801_v34  ;;  %v385_v56 = vrot.slane %v383_v47, 7  ;;  %v441_v57 = vrot.slane %v439_v49, 7  ;;  %v446_v58 = vshrl.u32 %v7945_v42, 16 }
  0x4a   : > { %v8473_v1 = vld [vmem:[#allocation2 + $0xa4] ss:$0 sps:$4 sm:$0x11]   ;;  %v498_v2 = vsel %vm8298_vm4, 0, %v381_v51  ;;  %717 = vst.msk [vmem:[#allocation2 + $0x44] sm:$0x1] %vm229_vm1, %v6844_v52 }
  0x4b   : > { %v2811_v0 = vsel %vm894_vm6, %v2806_v50, %v2810_v44  ;;  %v6842_v3 = vcombine.low %v498_v2, %v498_v2  ;;  %v6843_v20 = vcombine.high %v498_v2, %v498_v2  ;;  %v388_v6 = vor.u32 %v386_v48, %v385_v56 }
  0x4c   : > { %2866 = vrot.lane.b32.xlu0 %v2811_v0, %s8235_s25  ;;  %v515_v7 = vsel %vm8298_vm4, %v385_v56, 0  ;;  %v2820_v8 = vshll.u32 %v8473_v1, 16  ;;  %v444_v9 = vor.u32 %v442_v53, %v441_v57  ;;  %v449_v10 = vshll.u32 %v7945_v42, 16 }
  0x4d   : > { %1304 = vrot.lane.b32.xlu1 %v1229_v27, %s8235_s25  ;;  %v6847_v61 = vcombine.low %v515_v7, %v515_v7  ;;  %715 = vst.msk [vmem:[#allocation2 + $0x3c] sm:$0xf] %vm226_vm0, %v6842_v3  ;;  %716 = vst.msk [vmem:[#allocation2 + $0x40] sm:$0xf] %vm226_vm0, %v6843_v20  ;;  %v499_v12 = vsel %vm8298_vm4, 0, %v388_v6  ;;  %v523_v14 = vsel %vm8298_vm4, %v441_v57, 0 }
  0x4e   : > { %v448_v15 = vrot.slane %v446_v58, 7  ;;  %v390_v17 = vshrl.u32 %v7948_v59, 16  ;;  %v2676_v19 = vld [vmem:[#allocation2 + $0x9c] sm:$0xf]  ;;  %v2677_v21 = vld [vmem:[#allocation2 + $0xa0] sm:$0xf]  ;;  %v6845_v22 = vcombine.low %v499_v12, %v499_v12  ;;  %v6846_v23 = vcombine.high %v499_v12, %v499_v12 }
  0x4f   : > { %720 = vst.msk [vmem:[#allocation2 + $0x50] sm:$0x1] %vm229_vm1, %v6847_v61  ;;  %v2913_v25 = vrot.slane %v8473_v1, 1  ;;  %v507_v16 = vsel %vm8298_vm4, 0, %v444_v9  ;;  %v8494_v26 = vcombine.low %v2676_v19, %v2677_v21  ;;  %v2696_v27 = vld [vmem:[#allocation2 + $0x9c] sm:$0xe]  ;;  %v6871_v11 = vcombine.low %v523_v14, %v523_v14 }
  0x50   : > { %v6869_v28 = vcombine.low %v507_v16, %v507_v16  ;;  %v6870_v54 = vcombine.high %v507_v16, %v507_v16  ;;  %718 = vst.msk [vmem:[#allocation2 + $0x48] sm:$0xf] %vm226_vm0, %v6845_v22  ;;  %719 = vst.msk [vmem:[#allocation2 + $0x4c] sm:$0xf] %vm226_vm0, %v6846_v23  ;;  %v7063_v29 = vcombine.low %v2696_v27, %v2677_v21  ;;  %v524_v32 = vsel %vm8298_vm4, %v448_v15, 0  ;;  %v8523_v61 = vld [vmem:[%s8293_s23 + $0x38] sm:$0xff]  }
  0x51   : > { %2864 = vrot.lane.b32.xlu1 %v2799_v63, %s8235_s25  ;;  %v451_v31 = vor.u32 %v449_v10, %v448_v15  ;;  %v392_v33 = vrot.slane %v390_v17, 7  ;;  %v2813_v34 = vshrl.u32 %v8494_v26, 16  ;;  %v2815_v36 = vshll.u32 %v8494_v26, 16  ;;  %744 = vst.msk [vmem:[#allocation2 + $0xb0] sm:$0x1] %vm229_vm1, %v6871_v11 }
  0x52   : > { %742 = vst.msk [vmem:[#allocation2 + $0xa8] sm:$0xf] %vm226_vm0, %v6869_v28  ;;  %743 = vst.msk [vmem:[#allocation2 + $0xac] sm:$0xf] %vm226_vm0, %v6870_v54  ;;  %v6874_v38 = vcombine.low %v524_v32, %v524_v32  ;;  %v393_v39 = vshll.u32 %v7948_v59, 16  ;;  %v2822_v40 = vrot.slane %v2820_v8, 1 }
  0x53   : > { %v7936_v35 = vld [vmem:[#allocation2 + $0x44] ss:$0 sps:$4 sm:$0x11]   ;;  %v508_v41 = vsel %vm8298_vm4, 0, %v451_v31  ;;  %v516_v42 = vsel %vm8298_vm4, %v392_v33, 0  ;;  %v2817_v13 = vrot.slane %v2815_v36, 1 }
  0x54   : > { %v6872_v43 = vcombine.low %v508_v41, %v508_v41  ;;  %v6873_v44 = vcombine.high %v508_v41, %v508_v41  ;;  %747 = vst.msk [vmem:[#allocation2 + $0xbc] sm:$0x1] %vm229_vm1, %v6874_v38  ;;  %v395_v45 = vor.u32 %v393_v39, %v392_v33  ;;  %v1118_v46 = vld [vmem:[#allocation2 + $0x3c] sm:$0xf]  ;;  %v1119_v47 = vld [vmem:[#allocation2 + $0x40] sm:$0xf]  ;;  %v6850_v50 = vcombine.low %v516_v42, %v516_v42 }
  0x55   : > { %v1262_v48 = vshll.u32 %v7936_v35, 16  ;;  %v2912_v49 = vrot.slane %v7063_v29, 1  ;;  %v2818_v51 = vor.u32 %v2817_v13, %v2813_v34  ;;  %v8510_v52 = vcombine.low %v1118_v46, %v1119_v47  ;;  %v1138_v53 = vld [vmem:[#allocation2 + $0x3c] sm:$0xe] }
  0x56   : > { %v1355_v56 = vrot.slane %v7936_v35, 1  ;;  %745 = vst.msk [vmem:[#allocation2 + $0xb4] sm:$0xf] %vm226_vm0, %v6872_v43  ;;  %746 = vst.msk [vmem:[#allocation2 + $0xb8] sm:$0xf] %vm226_vm0, %v6873_v44  ;;  %v500_v57 = vsel %vm8298_vm4, 0, %v395_v45  ;;  %v6937_v59 = vcombine.low %v1138_v53, %v1119_v47 }
  0x57   : > { %v1264_v58 = vrot.slane %v1262_v48, 1  ;;  %v8516_v63 = vld [vmem:[#allocation2 + $0x50] ss:$0 sps:$4 sm:$0x11]   ;;  %v6848_v0 = vcombine.low %v500_v57, %v500_v57  ;;  %v6849_v2 = vcombine.high %v500_v57, %v500_v57  ;;  %723 = vst.msk [vmem:[#allocation2 + $0x5c] sm:$0x1] %vm229_vm1, %v6850_v50  ;;  %v2823_v3 = vsel %vm894_vm6, %v2818_v51, %v2822_v40 }
  0x58   : > { %v1255_v20 = vshrl.u32 %v8510_v52, 16  ;;  %v1257_v6 = vshll.u32 %v8510_v52, 16  ;;  %v1120_v7 = vld [vmem:[#allocation2 + $0x48] sm:$0xf]  ;;  %v1121_v8 = vld [vmem:[#allocation2 + $0x4c] sm:$0xf]  ;;  %2868 = vrot.lane.b32.xlu1 %v2823_v3, %s8235_s25  ;;  %v2914_v19 = vsel %vm1031_vm5, %v2912_v49, %v2913_v25 }
  0x59   : > { %v1354_v9 = vrot.slane %v6937_v59, 1  ;;  %v8526_v10 = vcombine.low %v1120_v7, %v1121_v8  ;;  %v1274_v12 = vshll.u32 %v8516_v63, 16  ;;  %v2678_v14 = vld [vmem:[#allocation2 + $0xa8] sm:$0xf]  ;;  %v2679_v15 = vld [vmem:[#allocation2 + $0xac] sm:$0xf] }
  0x5a   : > { %721 = vst.msk [vmem:[#allocation2 + $0x54] sm:$0xf] %vm226_vm0, %v6848_v0  ;;  %722 = vst.msk [vmem:[#allocation2 + $0x58] sm:$0xf] %vm226_vm0, %v6849_v2  ;;  %v1259_v17 = vrot.slane %v1257_v6, 1  ;;  %v8534_v21 = vcombine.low %v2678_v14, %v2679_v15  ;;  %v397_v42 = vshrl.u32 %v8523_v61, 16 }
  0x5b   : > { %v7943_v22 = vld [vmem:[#allocation2 + $0xb0] ss:$0 sps:$4 sm:$0x11]   ;;  %v1356_v23 = vsel %vm1031_vm5, %v1354_v9, %v1355_v56  ;;  %v1267_v16 = vshrl.u32 %v8526_v10, 16  ;;  %v1269_v27 = vshll.u32 %v8526_v10, 16  ;;  %v1276_v28 = vrot.slane %v1274_v12, 1 }
  0x5c   : > { %v2697_v54 = vld [vmem:[#allocation2 + $0xa8] sm:$0xe]  ;;  %v1260_v11 = vor.u32 %v1259_v17, %v1255_v20  ;;  %v2825_v29 = vshrl.u32 %v8534_v21, 16  ;;  %v2827_v31 = vshll.u32 %v8534_v21, 16  ;;  %v2832_v32 = vshll.u32 %v7943_v22, 16  ;;  %1374 = vrot.lane.b32.xlu1 %v1356_v23, %s8234_s24 }
  0x5d   : > { %v1139_v1 = vld [vmem:[#allocation2 + $0x48] sm:$0xe]  ;;  %v1271_v25 = vrot.slane %v1269_v27, 1  ;;  %v7064_v33 = vcombine.low %v2697_v54, %v2679_v15  ;;  %v2916_v34 = vrot.slane %v7943_v22, 1  ;;  %v2680_v38 = vld [vmem:[#allocation2 + $0xb4] sm:$0xf] }
  0x5e   : > { %v6938_v36 = vcombine.low %v1139_v1, %v1121_v8  ;;  %v2681_v39 = vld [vmem:[#allocation2 + $0xb8] sm:$0xf]  ;;  %v1265_v40 = vsel %vm894_vm6, %v1260_v11, %v1264_v58  ;;  %v2829_v35 = vrot.slane %v2827_v31, 1  ;;  %v2834_v41 = vrot.slane %v2832_v32, 1  ;;  %v2698_v7 = vld [vmem:[#allocation2 + $0xb4] sm:$0xe] }
  0x5f   : > { %1310 = vrot.lane.b32.xlu0 %v1265_v40, %s8235_s25  ;;  %v1272_v13 = vor.u32 %v1271_v25, %v1267_v16  ;;  %v2915_v43 = vrot.slane %v7064_v33, 1  ;;  %v1358_v44 = vrot.slane %v8516_v63, 1  ;;  %v8546_v45 = vcombine.low %v2680_v38, %v2681_v39  ;;  %v7947_v46 = vld [vmem:[#allocation2 + $0xbc] ss:$0 sps:$4 sm:$0x11]  }
  0x60   : > { %v2830_v47 = vor.u32 %v2829_v35, %v2825_v29  ;;  %2932 = vrot.lane.b32.xlu1 %v2914_v19, %s8234_s24  ;;  %v1357_v53 = vrot.slane %v6938_v36, 1  ;;  %v7950_v56 = vld [vmem:[#allocation2 + $0x5c] ss:$0 sps:$4 sm:$0x11]   ;;  %v2844_v63 = vshll.u32 %v7947_v46, 16  ;;  %v399_v6 = vrot.slane %v397_v42, 7 }
  0x61   : > { %v1122_v48 = vld [vmem:[#allocation2 + $0x54] sm:$0xf]  ;;  %v1123_v49 = vld [vmem:[#allocation2 + $0x58] sm:$0xf]  ;;  %v1277_v50 = vsel %vm894_vm6, %v1272_v13, %v1276_v28  ;;  %v2917_v51 = vsel %vm1031_vm5, %v2915_v43, %v2916_v34  ;;  %v2837_v58 = vshrl.u32 %v8546_v45, 16  ;;  %v2839_v59 = vshll.u32 %v8546_v45, 16 }
  0x62   : > { %v1140_v57 = vld [vmem:[#allocation2 + $0x54] sm:$0xe]  ;;  %v8553_v0 = vcombine.low %v1122_v48, %v1123_v49  ;;  %v2835_v2 = vsel %vm894_vm6, %v2830_v47, %v2834_v41  ;;  %v1286_v3 = vshll.u32 %v7950_v56, 16  ;;  %v7955_v8 = vld [vmem:[%s8293_s23 + $0x78] sm:$0xff]   ;;  %v2846_v12 = vrot.slane %v2844_v63, 1 }
  0x63   : > { %1312 = vrot.lane.b32.xlu0 %v1277_v50, %s8235_s25  ;;  %v6939_v20 = vcombine.low %v1140_v57, %v1123_v49  ;;  %v2841_v9 = vrot.slane %v2839_v59, 1  ;;  %v1361_v19 = vrot.slane %v7950_v56, 1  ;;  %v400_v22 = vshll.u32 %v8523_v61, 16  ;;  %v798_v49 = vld [vmem:[#allocation2] sm:$0xf] }
  0x64   : > { %v1279_v14 = vshrl.u32 %v8553_v0, 16  ;;  %v1281_v15 = vshll.u32 %v8553_v0, 16  ;;  %2934 = vrot.lane.b32.xlu1 %v2917_v51, %s8234_s24  ;;  %v517_v23 = vsel %vm8298_vm4, %v399_v6, 0  ;;  %v7065_v54 = vcombine.low %v2698_v7, %v2681_v39  ;;  %v8584_v50 = vld [vmem:[#allocation2 + $0x4] sm:$0xf] }
  0x65   : > { %v1360_v17 = vrot.slane %v6939_v20, 1  ;;  %v2842_v16 = vor.u32 %v2841_v9, %v2837_v58  ;;  %v6853_v28 = vcombine.low %v517_v23, %v517_v23  ;;  %v1359_v11 = vsel %vm1031_vm5, %v1357_v53, %v1358_v44  ;;  %v822_v57 = vld [vmem:[#allocation2] sm:$0xe]  ;;  %v800_v58 = vld [vmem:[#allocation2 + $0xc] sm:$0xf] }
  0x66   : > { %v1283_v27 = vrot.slane %v1281_v15, 1  ;;  %v402_v29 = vor.u32 %v400_v22, %v399_v6  ;;  %v453_v31 = vshrl.u32 %v7955_v8, 16  ;;  %v1288_v25 = vrot.slane %v1286_v3, 1  ;;  %v8596_v59 = vld [vmem:[#allocation2 + $0x10] sm:$0xf] }
  0x67   : > { %2870 = vrot.lane.b32.xlu0 %v2835_v2, %s8235_s25  ;;  %v2847_v32 = vsel %vm894_vm6, %v2842_v16, %v2846_v12  ;;  %726 = vst.msk [vmem:[#allocation2 + $0x68] sm:$0x1] %vm229_vm1, %v6853_v28  ;;  %v456_v61 = vshll.u32 %v7955_v8, 16  ;;  %v1362_v33 = vsel %vm1031_vm5, %v1360_v17, %v1361_v19  ;;  %v2918_v40 = vrot.slane %v7065_v54, 1  ;;  %v2362_v63 = vld [vmem:[#allocation2 + $0x6c] sm:$0xf] }
  0x68   : > { %v1284_v1 = vor.u32 %v1283_v27, %v1279_v14  ;;  %2872 = vrot.lane.b32.xlu1 %v2847_v32, %s8235_s25  ;;  %v501_v34 = vsel %vm8298_vm4, 0, %v402_v29  ;;  %v455_v36 = vrot.slane %v453_v31, 7  ;;  %v2919_v35 = vrot.slane %v7947_v46, 1  ;;  %v8598_v20 = vld [vmem:[#allocation2 + $0x70] sm:$0xf] }
  0x69   : > { %v6851_v38 = vcombine.low %v501_v34, %v501_v34  ;;  %v6852_v39 = vcombine.high %v501_v34, %v501_v34  ;;  %v8594_v56 = vcombine.low %v798_v49, %v8584_v50  ;;  %v6909_v28 = vcombine.low %v822_v57, %v8584_v50  ;;  %v828_v5 = vld [vmem:[#allocation2 + $0x48] sm:$0xe] }
  0x6a   : > { %v458_v41 = vor.u32 %v456_v61, %v455_v36  ;;  %v525_v42 = vsel %vm8298_vm4, %v455_v36, 0  ;;  %v1289_v13 = vsel %vm894_vm6, %v1284_v1, %v1288_v25  ;;  %v2920_v46 = vsel %vm1031_vm5, %v2918_v40, %v2919_v35 }
  0x6b   : > { %1376 = vrot.lane.b32.xlu0 %v1359_v11, %s8234_s24  ;;  %724 = vst.msk [vmem:[#allocation2 + $0x60] sm:$0xf] %vm226_vm0, %v6851_v38  ;;  %725 = vst.msk [vmem:[#allocation2 + $0x64] sm:$0xf] %vm226_vm0, %v6852_v39  ;;  %v6877_v43 = vcombine.low %v525_v42, %v525_v42  ;;  %v898_v22 = vshll.u32 %v8594_v56, 16  ;;  %v8614_v54 = vcombine.low %v800_v58, %v8596_v59  ;;  %vm1440_vm8 = vcmask 1043456  }
  0x6c   : > { %1378 = vrot.lane.b32.xlu1 %v1362_v33, %s8234_s24  ;;  %v509_v44 = vsel %vm8298_vm4, 0, %v458_v41  ;;  %v8617_v11 = vcombine.low %v2362_v63, %v8598_v20  ;;  %v7962_v38 = vld [vmem:[#allocation2 + $0x8] ss:$0 sps:$4 sm:$0x11]   ;;  %v2364_v42 = vld [vmem:[#allocation2 + $0x78] sm:$0xf] }
  0x6d   : > { %v6875_v47 = vcombine.low %v509_v44, %v509_v44  ;;  %v6876_v48 = vcombine.high %v509_v44, %v509_v44  ;;  %750 = vst.msk [vmem:[#allocation2 + $0xc8] sm:$0x1] %vm229_vm1, %v6877_v43  ;;  %v900_v58 = vrot.slane %v898_v22, 1  ;;  %v8629_v63 = vld [vmem:[#allocation2 + $0x7c] sm:$0xf]  ;;  %vm1089_vm9 = vcmask 130048  }
  0x6e   : > { %v8586_v51 = vld [vmem:[#allocation2 + $0x68] ss:$0 sps:$4 sm:$0x11]   ;;  %vm1423_vm10 = vcmask 195584   ;;  %vm4590_vm11 = vcmask 261120  }
  0x6f   : > { %1314 = vrot.lane.b32.xlu0 %v1289_v13, %s8235_s25  ;;  %748 = vst.msk [vmem:[#allocation2 + $0xc0] sm:$0xf] %vm226_vm0, %v6875_v47  ;;  %749 = vst.msk [vmem:[#allocation2 + $0xc4] sm:$0xf] %vm226_vm0, %v6876_v48  ;;  %v1298_v7 = vshll.u32 %v8586_v51, 16 }
  0x70   : > { %2936 = vrot.lane.b32.xlu1 %v2920_v46, %s8234_s24  ;;  %v8591_v53 = vld [vmem:[#allocation2 + $0x68] ss:$0 sps:$4 sm:$0x11]   ;;  %v896_v46 = vshrl.u32 %v8594_v56, 16 }
  0x71   : > { %v2464_v19 = vshll.u32 %v8591_v53, 16  ;;  %v1300_v31 = vrot.slane %v1298_v7, 1  ;;  %v8626_v47 = vld [vmem:[#allocation2 + $0x14] ss:$0 sps:$4 sm:$0x11]   ;;  %v903_v7 = vshll.u32 %v7962_v38, 16 }
  0x72   : > { %v1124_v2 = vld [vmem:[#allocation2 + $0x60] sm:$0xf]  ;;  %v1125_v3 = vld [vmem:[#allocation2 + $0x64] sm:$0xf] }
  0x73   : > { %v8600_v6 = vcombine.low %v1124_v2, %v1125_v3  ;;  %v2360_v8 = vld [vmem:[#allocation2 + $0x60] sm:$0xf]  ;;  %v8603_v9 = vld [vmem:[#allocation2 + $0x64] sm:$0xf]  ;;  %v2466_v44 = vrot.slane %v2464_v19, 1  ;;  %v1364_v19 = vrot.slane %v8586_v51, 1  ;;  %v901_v51 = vor.u32 %v900_v58, %v896_v46 }
  0x74   : > { %v7957_v12 = vld [vmem:[#allocation2 + $0xc8] ss:$0 sps:$4 sm:$0x11]   ;;  %v8606_v14 = vcombine.low %v2360_v8, %v8603_v9  ;;  %v1141_v27 = vld [vmem:[#allocation2 + $0x60] sm:$0xe]  ;;  %v910_v8 = vshll.u32 %v8614_v54, 16 }
  0x75   : > { %v1291_v15 = vshrl.u32 %v8600_v6, 16  ;;  %v1293_v17 = vshll.u32 %v8600_v6, 16  ;;  %v2856_v1 = vshll.u32 %v7957_v12, 16  ;;  %v2922_v33 = vrot.slane %v7957_v12, 1  ;;  %v2384_v48 = vld [vmem:[#allocation2 + $0x60] sm:$0xe] }
  0x76   : > { %v2682_v23 = vld [vmem:[#allocation2 + $0xc0] sm:$0xf]  ;;  %v2683_v16 = vld [vmem:[#allocation2 + $0xc4] sm:$0xf]  ;;  %v2457_v34 = vshrl.u32 %v8606_v14, 16  ;;  %v2459_v36 = vshll.u32 %v8606_v14, 16  ;;  %v6940_v41 = vcombine.low %v1141_v27, %v1125_v3 }
  0x77   : > { %v1295_v29 = vrot.slane %v1293_v17, 1  ;;  %v8619_v32 = vcombine.low %v2682_v23, %v2683_v16  ;;  %v2699_v25 = vld [vmem:[#allocation2 + $0xc0] sm:$0xe]  ;;  %v2858_v57 = vrot.slane %v2856_v1, 1  ;;  %v2385_v12 = vld [vmem:[#allocation2 + $0x6c] sm:$0xe]  ;;  %v7035_v23 = vcombine.low %v2384_v48, %v8603_v9 }
  0x78   : > { %v7066_v61 = vcombine.low %v2699_v25, %v2683_v16  ;;  %v2461_v43 = vrot.slane %v2459_v36, 1  ;;  %v1363_v17 = vrot.slane %v6940_v41, 1  ;;  %v1032_v16 = vrot.slane %v6909_v28, 1  ;;  %v8653_v41 = vld [vmem:[#allocation2 + $0x80] ss:$0 sps:$4 sm:$0x11]  }
  0x79   : > { %v1296_v39 = vor.u32 %v1295_v29, %v1291_v15  ;;  %v2849_v40 = vshrl.u32 %v8619_v32, 16  ;;  %v2851_v35 = vshll.u32 %v8619_v32, 16  ;;  %v1033_v27 = vrot.slane %v7962_v38, 1  ;;  %v7966_v29 = vld [vmem:[#allocation2 + $0x74] ss:$0 sps:$4 sm:$0x11]  }
  0x7a   : > { %v2921_v13 = vrot.slane %v7066_v61, 1  ;;  %v2462_v3 = vor.u32 %v2461_v43, %v2457_v34  ;;  %v908_v25 = vshrl.u32 %v8614_v54, 16  ;;  %v7036_v61 = vcombine.low %v2385_v12, %v8598_v20  ;;  %v8644_v34 = vld [vmem:[#allocation2 + $0x1c] sm:$0xf] }
  0x7b   : > { %v1301_v49 = vsel %vm894_vm6, %v1296_v39, %v1300_v31  ;;  %v2853_v50 = vrot.slane %v2851_v35, 1  ;;  %v8639_v31 = vcombine.low %v2364_v42, %v8629_v63  ;;  %v905_v9 = vrot.slane %v903_v7, 1 }
  0x7c   : > { %1316 = vrot.lane.b32.xlu0 %v1301_v49, %s8235_s25  ;;  %v2923_v2 = vsel %vm1031_vm5, %v2921_v13, %v2922_v33  ;;  %v2467_v22 = vsel %vm894_vm6, %v2462_v3, %v2466_v44  ;;  %v802_v33 = vld [vmem:[#allocation2 + $0x18] sm:$0xf]  ;;  %v915_v28 = vshll.u32 %v8626_v47, 16  ;;  %v2471_v36 = vshll.u32 %v8617_v11, 16  ;;  %v823_v13 = vld [vmem:[#allocation2 + $0xc] sm:$0xe] }
  0x7d   : > { %v2854_v15 = vor.u32 %v2853_v50, %v2849_v40  ;;  %2938 = vrot.lane.b32.xlu1 %v2923_v2, %s8234_s24  ;;  %v1365_v38 = vsel %vm1031_vm5, %v1363_v17, %v1364_v19  ;;  %v912_v39 = vrot.slane %v910_v8, 1  ;;  %v2592_v40 = vrot.slane %v7035_v23, 1  ;;  %v804_v2 = vld [vmem:[#allocation2 + $0x24] sm:$0xf]  ;;  %v824_v23 = vld [vmem:[#allocation2 + $0x18] sm:$0xe] }
  0x7e   : > { %v2593_v35 = vrot.slane %v8591_v53, 1  ;;  %v1034_v20 = vsel %vm1031_vm5, %v1032_v16, %v1033_v27  ;;  %v2483_v42 = vshll.u32 %v8639_v31, 16  ;;  %v8657_v43 = vcombine.low %v802_v33, %v8644_v34  ;;  %v7972_v19 = vld [vmem:[#allocation2 + $0x20] ss:$0 sps:$4 sm:$0x11]  }
  0x7f   : > { %v2859_v1 = vsel %vm894_vm6, %v2854_v15, %v2858_v57  ;;  %v906_v44 = vsel %vm894_vm6, %v901_v51, %v905_v9  ;;  %v2469_v46 = vshrl.u32 %v8617_v11, 16  ;;  %v2473_v48 = vrot.slane %v2471_v36, 1  ;;  %v8666_v15 = vld [vmem:[#allocation2 + $0x28] sm:$0xf]  ;;  %v2386_v27 = vld [vmem:[#allocation2 + $0x78] sm:$0xe] }
  0x80   : > { %2874 = vrot.lane.b32.xlu0 %v2859_v1, %s8235_s25  ;;  %v2476_v49 = vshll.u32 %v7966_v29, 16  ;;  %v913_v53 = vor.u32 %v912_v39, %v908_v25  ;;  %v917_v50 = vrot.slane %v915_v28, 1  ;;  %v2594_v57 = vsel %vm1031_vm5, %v2592_v40, %v2593_v35  ;;  %v2367_v33 = vld [vmem:[#allocation2 + $0x88] sm:$0xf]  ;;  %v2368_v40 = vld [vmem:[#allocation2 + $0x90] sm:$0xf] }
  0x81   : > { %2552 = vrot.lane.b32.xlu1 %v2467_v22, %s8235_s25  ;;  %v2595_v58 = vrot.slane %v7036_v61, 1  ;;  %v2596_v3 = vrot.slane %v7966_v29, 1  ;;  %v2481_v7 = vshrl.u32 %v8639_v31, 16  ;;  %v2485_v8 = vrot.slane %v2483_v42, 1  ;;  %v2366_v61 = vld [vmem:[#allocation2 + $0x84] sm:$0xf] }
  0x82   : > { %v2488_v12 = vshll.u32 %v8653_v41, 16  ;;  %v6910_v17 = vcombine.low %v823_v13, %v8596_v59  ;;  %v2474_v22 = vor.u32 %v2473_v48, %v2469_v46  ;;  %v2478_v16 = vrot.slane %v2476_v49, 1  ;;  %v8678_v36 = vld [vmem:[#allocation2 + $0x2c] ss:$0 sps:$4 sm:$0x11]  }
  0x83   : > { %v918_v1 = vsel %vm894_vm6, %v913_v53, %v917_v50  ;;  %v922_v29 = vshll.u32 %v8657_v43, 16  ;;  %v8674_v25 = vcombine.low %v804_v2, %v8666_v15  ;;  %v2597_v59 = vsel %vm1031_vm5, %v2595_v58, %v2596_v3  ;;  %v8681_v35 = vld [vmem:[#allocation2 + $0x94] sm:$0xf]  ;;  %v7978_v58 = vld [vmem:[#allocation2 + $0x8c] ss:$0 sps:$4 sm:$0x11]  }
  0x84   : > { %1380 = vrot.lane.b32.xlu0 %v1365_v38, %s8234_s24  ;;  %v2486_v51 = vor.u32 %v2485_v8, %v2481_v7  ;;  %v2490_v9 = vrot.slane %v2488_v12, 1  ;;  %v6911_v28 = vcombine.low %v824_v23, %v8644_v34  ;;  %v1035_v38 = vrot.slane %v6910_v17, 1  ;;  %v806_v3 = vld [vmem:[#allocation2 + $0x30] sm:$0xf]  ;;  %v8700_v23 = vld [vmem:[#allocation2 + $0x34] sm:$0xf] }
  0x85   : > { %1056 = vrot.lane.b32.xlu1 %v1034_v20, %s8234_s24  ;;  %v1036_v39 = vrot.slane %v8626_v47, 1  ;;  %v2479_v20 = vsel %vm894_vm6, %v2474_v22, %v2478_v16  ;;  %v7037_v42 = vcombine.low %v2386_v27, %v8629_v63  ;;  %v8686_v13 = vcombine.low %v2366_v61, %v2367_v33 }
  0x86   : > { %v920_v34 = vshrl.u32 %v8657_v43, 16  ;;  %v924_v46 = vrot.slane %v922_v29, 1  ;;  %v927_v48 = vshll.u32 %v7972_v19, 16  ;;  %v934_v47 = vshll.u32 %v8674_v25, 16 }
  0x87   : > { %v2491_v49 = vsel %vm894_vm6, %v2486_v51, %v2490_v9  ;;  %v1038_v53 = vrot.slane %v6911_v28, 1  ;;  %v1039_v50 = vrot.slane %v7972_v19, 1  ;;  %v1037_v63 = vsel %vm1031_vm5, %v1035_v38, %v1036_v39  ;;  %v8705_v29 = vld [vmem:[#allocation2 + $0x98] ss:$0 sps:$4 sm:$0x11]  }
  0x88   : > { %991 = vrot.lane.b32.xlu0 %v906_v44, %s8235_s25  ;;  %v2387_v44 = vld [vmem:[#allocation2 + $0x84] sm:$0xe]  ;;  %v932_v7 = vshrl.u32 %v8674_v25, 16  ;;  %v939_v8 = vshll.u32 %v8678_v36, 16  ;;  %v2598_v12 = vrot.slane %v7037_v42, 1  ;;  %v2599_v17 = vrot.slane %v8653_v41, 1 }
  0x89   : > { %2616 = vrot.lane.b32.xlu1 %v2594_v57, %s8234_s24  ;;  %v8693_v57 = vcombine.low %v2368_v40, %v8681_v35  ;;  %v7038_v2 = vcombine.low %v2387_v44, %v2367_v33  ;;  %v925_v19 = vor.u32 %v924_v46, %v920_v34  ;;  %v929_v22 = vrot.slane %v927_v48, 1  ;;  %v825_v33 = vld [vmem:[#allocation2 + $0x24] sm:$0xe]  ;;  %v808_v42 = vld [vmem:[#allocation2 + $0x3c] sm:$0xf] }
  0x8a   : > { %v936_v16 = vrot.slane %v934_v47, 1  ;;  %v2495_v27 = vshll.u32 %v8686_v13, 16  ;;  %v941_v41 = vrot.slane %v939_v8, 1  ;;  %v2600_v51 = vsel %vm1031_vm5, %v2598_v12, %v2599_v17  ;;  %v7984_v47 = vld [vmem:[#allocation2 + $0x38] ss:$0 sps:$4 sm:$0x11]  }
  0x8b   : > { %10766 = vst [vmem:[#allocation5_spill] sm:$0xff] %v8693_v57  ;;  %v2507_v61 = vshll.u32 %v8693_v57, 16  ;;  %v2493_v9 = vshrl.u32 %v8686_v13, 16  ;;  %v2500_v28 = vshll.u32 %v7978_v58, 16  ;;  %v930_v38 = vsel %vm894_vm6, %v925_v19, %v929_v22 }
  0x8c   : > { %993 = vrot.lane.b32.xlu0 %v918_v1, %s8235_s25  ;;  %v1040_v1 = vsel %vm1031_vm5, %v1038_v53, %v1039_v50  ;;  %v937_v39 = vor.u32 %v936_v16, %v932_v7  ;;  %v2497_v40 = vrot.slane %v2495_v27, 1  ;;  %v2602_v44 = vrot.slane %v7978_v58, 1  ;;  %v826_v50 = vld [vmem:[#allocation2 + $0x30] sm:$0xe] }
  0x8d   : > { %2618 = vrot.lane.b32.xlu1 %v2597_v59, %s8234_s24  ;;  %v8709_v59 = vcombine.low %v806_v3, %v8700_v23  ;;  %v2505_v34 = vshrl.u32 %v8693_v57, 16  ;;  %v2509_v46 = vrot.slane %v2507_v61, 1  ;;  %v2512_v48 = vshll.u32 %v8705_v29, 16  ;;  %v2370_v3 = vld [vmem:[#allocation2 + $0x9c] sm:$0xf] }
  0x8e   : > { %v6912_v53 = vcombine.low %v825_v33, %v8666_v15  ;;  %v942_v58 = vsel %vm894_vm6, %v937_v39, %v941_v41  ;;  %v2498_v8 = vor.u32 %v2497_v40, %v2493_v9  ;;  %v2502_v12 = vrot.slane %v2500_v28, 1  ;;  %v8732_v27 = vld [vmem:[#allocation2 + $0x44] ss:$0 sps:$4 sm:$0x11]   ;;  %v8740_v9 = vld [vmem:[#allocation2 + $0xac] sm:$0xf] }
  0x8f   : > { %10767 = vst [vmem:[#allocation6_spill] sm:$0xff] %v8709_v59  ;;  %v946_v7 = vshll.u32 %v8709_v59, 16  ;;  %v2510_v19 = vor.u32 %v2509_v46, %v2505_v34  ;;  %v2514_v22 = vrot.slane %v2512_v48, 1  ;;  %v6913_v16 = vcombine.low %v826_v50, %v8700_v23 }
  0x90   : > { %2554 = vrot.lane.b32.xlu0 %v2479_v20, %s8235_s25  ;;  %v2601_v20 = vrot.slane %v7038_v2, 1  ;;  %v8723_v2 = vld [vmem:[#allocation2 + $0xa0] sm:$0xf]  ;;  %v1041_v33 = vrot.slane %v6912_v53, 1  ;;  %v944_v23 = vshrl.u32 %v8709_v59, 16  ;;  %v951_v40 = vshll.u32 %v7984_v47, 16 }
  0x91   : > { %2556 = vrot.lane.b32.xlu1 %v2491_v49, %s8235_s25  ;;  %v8718_v49 = vld [vmem:[#allocation2 + $0x40] sm:$0xf]  ;;  %v948_v39 = vrot.slane %v946_v7, 1  ;;  %v1044_v34 = vrot.slane %v6913_v16, 1  ;;  %v1045_v46 = vrot.slane %v7984_v47, 1  ;;  %v963_v50 = vshll.u32 %v8732_v27, 16 }
  0x92   : > { %v8728_v17 = vcombine.low %v808_v42, %v8718_v49  ;;  %v2603_v15 = vsel %vm1031_vm5, %v2601_v20, %v2602_v44  ;;  %v2389_v20 = vld [vmem:[#allocation2 + $0x9c] sm:$0xe]  ;;  %v2503_v42 = vsel %vm894_vm6, %v2498_v8, %v2502_v12  ;;  %v2515_v44 = vsel %vm894_vm6, %v2510_v19, %v2514_v22  ;;  %v8761_v7 = vld [vmem:[#allocation2 + $0xa4] ss:$0 sps:$4 sm:$0x11]  }
  0x93   : > { %v949_v8 = vor.u32 %v948_v39, %v944_v23  ;;  %v953_v12 = vrot.slane %v951_v40, 1  ;;  %v8767_v19 = vld [vmem:[#allocation2 + $0xb0] ss:$0 sps:$4 sm:$0x11]   ;;  %v810_v22 = vld [vmem:[#allocation2 + $0x48] sm:$0xf] }
  0x94   : > { %1058 = vrot.lane.b32.xlu0 %v1037_v63, %s8234_s24  ;;  %v2388_v63 = vld [vmem:[#allocation2 + $0x90] sm:$0xe]  ;;  %10768 = vst [vmem:[#allocation7_spill] sm:$0xff] %v8728_v17  ;;  %v8772_v16 = vld [vmem:[%s10719_s1] sm:$0xff]   ;;  %v965_v39 = vrot.slane %v963_v50, 1 }
  0x95   : > { %1060 = vrot.lane.b32.xlu1 %v1040_v1, %s8234_s24  ;;  %v2372_v1 = vld [vmem:[#allocation2 + $0xa8] sm:$0xf]  ;;  %v7039_v41 = vcombine.low %v2388_v63, %v8681_v35  ;;  %v958_v35 = vshll.u32 %v8728_v17, 16 }
  0x96   : > { %v8752_v48 = vcombine.low %v2372_v1, %v8740_v9 }
  0x97   : > { %v2604_v63 = vrot.slane %v7039_v41, 1 }
  0x98   : > { %995 = vrot.lane.b32.xlu0 %v930_v38, %s8235_s25  ;;  %v1042_v38 = vrot.slane %v8678_v36, 1  ;;  %10770 = vst [vmem:[#allocation9_spill] sm:$0xff] %v8752_v48  ;;  %v8010_v36 = vld [vmem:[%s10719_s1 + $0x14] ss:$0 sps:$4 sm:$0xff]   ;;  %v2531_v41 = vshll.u32 %v8752_v48, 16 }
  0x99   : > { %2620 = vrot.lane.b32.xlu1 %v2600_v51, %s8234_s24  ;;  %v8738_v51 = vcombine.low %v2370_v3, %v8723_v2  ;;  %v2605_v3 = vrot.slane %v8705_v29, 1  ;;  %v956_v29 = vshrl.u32 %v8728_v17, 16  ;;  %7880 = vmatprep.subr.msk.bf16.mxu1 %vm1440_vm8, %v8010_v36  ;;  %v1442_v23 = vsel %vm1440_vm8, %v8010_v36, 0 }
  0x9a   : > { %v1043_v47 = vsel %vm1031_vm5, %v1041_v33, %v1042_v38  ;;  %v1046_v33 = vsel %vm1031_vm5, %v1044_v34, %v1045_v46  ;;  %v8778_v38 = vld [vmem:[#allocation2 + $0x4c] sm:$0xf]  ;;  %7877 = vmatprep.subr.msk.bf16.mxu0 %vm1440_vm8, %v8010_v36  ;;  %7572 = vmatpush3.bf16.msra.mxu1 %v1442_v23  ;;  %v2524_v34 = vshll.u32 %v8761_v7, 16  ;;  %v827_v46 = vld [vmem:[#allocation2 + $0x3c] sm:$0xe] }
  0x9b   : > { %v8734_v61 = vpop.permute.xlu0 %1368  ;;  %10769 = vst [vmem:[#allocation8_spill] sm:$0xff] %v8738_v51  ;;  %v2606_v40 = vsel %vm1031_vm5, %v2604_v63, %v2605_v3  ;;  %7512 = vmatpush3.bf16.msra.mxu0 %v1442_v23  ;;  %v8793_v3 = vcombine.low %v810_v22, %v8778_v38  ;;  %7589 = vmatprep.subr.bf16.mxu1 %v8772_v16  ;;  %v2536_v23 = vshll.u32 %v8767_v19, 16  ;;  %v7996_v22 = vld [vmem:[#allocation2 + $0x50] ss:$0 sps:$4 sm:$0x11]  }
  0x9c   : > { %997 = vrot.lane.b32.xlu0 %v942_v58, %s8235_s25  ;;  %v7040_v58 = vcombine.low %v2389_v20, %v8723_v2  ;;  %v960_v2 = vrot.slane %v958_v35, 1  ;;  %v2517_v20 = vshrl.u32 %v8738_v51, 16  ;;  %v954_v35 = vsel %vm894_vm6, %v949_v8, %v953_v12  ;;  %7529 = vmatprep.subr.bf16.mxu0 %v8772_v16 }
  0x9d   : > { %v8742_v28 = vpop.permute.xlu1 %1366  ;;  %2622 = vrot.lane.b32.xlu1 %v2603_v15, %s8234_s24  ;;  %v2519_v15 = vshll.u32 %v8738_v51, 16  ;;  %10771 = vst [vmem:[#allocation10_spill] sm:$0xff] %v8793_v3  ;;  %v2608_v12 = vrot.slane %v8761_v7, 1  ;;  %v6915_v7 = vcombine.low %v828_v5, %v8778_v38  ;;  %v968_v17 = vshrl.u32 %v8793_v3, 16 }
  0x9e   : > { %v961_v50 = vor.u32 %v960_v2, %v956_v29  ;;  %v2607_v63 = vrot.slane %v7040_v58, 1  ;;  %v6914_v58 = vcombine.low %v827_v46, %v8718_v49  ;;  %v8815_v46 = vld [vmem:[#allocation2 + $0x5c] ss:$0 sps:$4 sm:$0x11]  }
  0x9f   : > { %v8754_v53 = vpop.permute.xlu0 %1372  ;;  %v8009_v51 = vld [vmem:[#allocation2 + $0x20] ss:$0 sps:$4 sm:$0x11]  }
  0xa0   : > { %2558 = vrot.lane.b32.xlu0 %v2503_v42, %s8235_s25  ;;  %v2609_v38 = vsel %vm1031_vm5, %v2607_v63, %v2608_v12  ;;  %v1774_v57 = vshll.u32 %v8009_v51, 16 }
  0xa1   : > { %2560 = vrot.lane.b32.xlu1 %v2515_v44, %s8235_s25  ;;  %v2925_v1 = vpop.permute.xlu1 %2924  ;;  %v2521_v44 = vrot.slane %v2519_v15, 1  ;;  %v2529_v15 = vshrl.u32 %v8752_v48, 16  ;;  %v966_v48 = vsel %vm894_vm6, %v961_v50, %v965_v39  ;;  %v8821_v39 = vld [vmem:[#allocation2 + $0x7c] sm:$0xf]  ;;  %v1048_v50 = vrot.slane %v8732_v27, 1 }
  0xa4   : > { %1062 = vrot.lane.b32.xlu0 %v1043_v47, %s8234_s24  ;;  %v812_v47 = vld [vmem:[#allocation2 + $0x54] sm:$0xf] }
  0xa5   : > { %v1303_v42 = vpop.permute.xlu0 %1302  ;;  %1064 = vrot.lane.b32.xlu1 %v1046_v33, %s8234_s24  ;;  %v2927_v29 = vpop.permute.xlu1 %2926  ;;  %v2526_v33 = vrot.slane %v2524_v34, 1  ;;  %v3202_v34 = vld [vmem:[#allocation2 + $0x78] sm:$0xf] }
  0xa6   : > { %v1383_v36 = vsel %vm1072_vm7, %v8365_v18, %v1303_v42  ;;  %v2533_v18 = vrot.slane %v2531_v41, 1  ;;  %v8801_v42 = vld [vmem:[#allocation2 + $0x58] sm:$0xf] }
  0xa7   : > { %v1399_v8 = vsel %vm1089_vm9, %v1383_v36, %v8742_v28  ;;  %v2522_v28 = vor.u32 %v2521_v44, %v2517_v20  ;;  %v2390_v36 = vld [vmem:[#allocation2 + $0xa8] sm:$0xe]  ;;  %v8813_v49 = vcombine.low %v812_v47, %v8801_v42  ;;  %v8817_v20 = vld [vmem:[#allocation2 + $0xb8] sm:$0xf]  ;;  %v975_v47 = vshll.u32 %v7996_v22, 16 }
  0xa8   : > { %7513 = vmatprep.mubr.msk.bf16.mxu0 %vm1423_vm10, %v1399_v8  ;;  %999 = vrot.lane.b32.xlu0 %v954_v35, %s8235_s25  ;;  %v970_v8 = vshll.u32 %v8793_v3, 16  ;;  %v2374_v35 = vld [vmem:[#allocation2 + $0xb4] sm:$0xf]  ;;  %v2534_v44 = vor.u32 %v2533_v18, %v2529_v15 }
  0xa9   : > { %v2861_v2 = vpop.permute.xlu0 %2860  ;;  %2624 = vrot.lane.b32.xlu1 %v2606_v40, %s8234_s24  ;;  %10772 = vst [vmem:[#allocation11_spill] sm:$0xff] %v8813_v49  ;;  %v1047_v40 = vrot.slane %v6914_v58, 1  ;;  %v8829_v63 = vcombine.low %v2374_v35, %v8817_v20  ;;  %v982_v18 = vshll.u32 %v8813_v49, 16  ;;  %v2391_v35 = vld [vmem:[#allocation2 + $0xb4] sm:$0xe] }
  0xaa   : > { %v2941_v41 = vsel %vm1072_vm7, %v8379_v37, %v2861_v2  ;;  %v2538_v37 = vrot.slane %v2536_v23, 1  ;;  %v2527_v2 = vsel %vm894_vm6, %v2522_v28, %v2526_v33  ;;  %v972_v15 = vrot.slane %v970_v8, 1  ;;  %v8834_v27 = vpop.permute.xlu1 %1370  ;;  %v8002_v8 = vld [vmem:[#allocation2 + $0xbc] ss:$0 sps:$4 sm:$0x11]  }
  0xab   : > { %v2957_v5 = vsel %vm1089_vm9, %v2941_v41, %v2925_v1  ;;  %v1050_v1 = vrot.slane %v6915_v7, 1  ;;  %10773 = vst [vmem:[#allocation12_spill] sm:$0xff] %v8829_v63  ;;  %v7041_v23 = vcombine.low %v2390_v36, %v8740_v9  ;;  %v1051_v28 = vrot.slane %v7996_v22, 1 }
  0xac   : > { %7573 = vmatprep.mubr.msk.bf16.mxu1 %vm1423_vm10, %v2957_v5  ;;  %1001 = vrot.lane.b32.xlu0 %v966_v48, %s8235_s25  ;;  %v2539_v58 = vsel %vm894_vm6, %v2534_v44, %v2538_v37  ;;  %v8840_v33 = vcombine.low %v3202_v34, %v8821_v39  ;;  %v987_v41 = vshll.u32 %v8815_v46, 16  ;;  %v1049_v9 = vsel %vm1031_vm5, %v1047_v40, %v1048_v50  ;;  %v1670_v5 = vld [vmem:[#allocation2 + $0x18] sm:$0xf]  ;;  %v1671_v34 = vld [vmem:[#allocation2 + $0x1c] sm:$0xf] }
  0xad   : > { %v2863_v12 = vpop.permute.xlu0 %2862  ;;  %2626 = vrot.lane.b32.xlu1 %v2609_v38, %s8234_s24  ;;  %v977_v36 = vrot.slane %v975_v47, 1  ;;  %v2543_v22 = vshll.u32 %v8829_v63, 16  ;;  %v980_v38 = vshrl.u32 %v8813_v49, 16  ;;  %v984_v44 = vrot.slane %v982_v18, 1 }
  0xae   : > { %v2943_v48 = vsel %vm1072_vm7, %v8392_v62, %v2863_v12  ;;  %10774 = vst [vmem:[#allocation13_spill] sm:$0xff] %v8840_v33  ;;  %v2611_v62 = vrot.slane %v8767_v19, 1  ;;  %v2610_v37 = vrot.slane %v7041_v23, 1  ;;  %v7042_v40 = vcombine.low %v2391_v35, %v8817_v20  ;;  %v8854_v50 = vld [vmem:[#allocation2 + $0x80] ss:$0 sps:$4 sm:$0x11]  }
  0xaf   : > { %v2959_v7 = vsel %vm1089_vm9, %v2943_v48, %v2927_v29  ;;  %v973_v29 = vor.u32 %v972_v15, %v968_v17  ;;  %v3301_v19 = vshll.u32 %v8840_v33, 16  ;;  %v989_v47 = vrot.slane %v987_v41, 1  ;;  %v829_v48 = vld [vmem:[#allocation2 + $0x54] sm:$0xe] }
  0xb0   : > { %7574 = vmatmul.mubr.msk.bf16.vlgmr.msra.gmra.mrb[0].mxu1 %vm1423_vm10, %v2959_v7  ;;  %2562 = vrot.lane.b32.xlu0 %v2527_v2, %s8235_s25  ;;  %v1052_v2 = vsel %vm1031_vm5, %v1050_v1, %v1051_v28  ;;  %v2541_v17 = vshrl.u32 %v8829_v63, 16  ;;  %v2545_v15 = vrot.slane %v2543_v22, 1  ;;  %v2548_v18 = vshll.u32 %v8002_v8, 16  ;;  %v8863_v1 = vld [vmem:[#allocation2 + $0x28] sm:$0xf] }
  0xb1   : > { %7590 = vmatpush3.bf16.msra.mxu1 %v8772_v16  ;;  %2564 = vrot.lane.b32.xlu1 %v2539_v58, %s8235_s25  ;;  %v1307_v12 = vpop.permute.xlu0 %1306  ;;  %v1672_v58 = vld [vmem:[#allocation2 + $0x24] sm:$0xf]  ;;  %v8861_v23 = vcombine.low %v1670_v5, %v1671_v34  ;;  %v978_v20 = vsel %vm894_vm6, %v973_v29, %v977_v36  ;;  %v985_v28 = vor.u32 %v984_v44, %v980_v38  ;;  %v2614_v35 = vrot.slane %v8002_v8, 1  ;;  %v1694_v22 = vld [vmem:[#allocation2 + $0x18] sm:$0xe] }
  0xb2   : > { %v2612_v41 = vsel %vm1031_vm5, %v2610_v37, %v2611_v62  ;;  %v2613_v49 = vrot.slane %v7042_v40, 1  ;;  %v3299_v3 = vshrl.u32 %v8840_v33, 16  ;;  %v3306_v63 = vshll.u32 %v8854_v50, 16  ;;  %v8878_v38 = vld [vmem:[#allocation2 + $0x2c] ss:$0 sps:$4 sm:$0x11]  }
  0xb3   : > { %v6916_v5 = vcombine.low %v829_v48, %v8801_v42  ;;  %v8872_v59 = vcombine.low %v1672_v58, %v8863_v1  ;;  %v2546_v29 = vor.u32 %v2545_v15, %v2541_v17  ;;  %v2550_v62 = vrot.slane %v2548_v18, 1  ;;  %v3204_v40 = vld [vmem:[#allocation2 + $0x84] sm:$0xf]  ;;  %v3206_v17 = vld [vmem:[#allocation2 + $0x90] sm:$0xf] }
  0xb4   : > { %1066 = vrot.lane.b32.xlu0 %v1049_v9, %s8234_s24  ;;  %v3303_v9 = vrot.slane %v3301_v19, 1  ;;  %v1769_v8 = vshll.u32 %v8861_v23, 16  ;;  %v990_v44 = vsel %vm894_vm6, %v985_v28, %v989_v47  ;;  %v6977_v37 = vcombine.low %v1694_v22, %v1671_v34  ;;  %v8882_v19 = vld [vmem:[#allocation2 + $0x88] sm:$0xf]  ;;  %v8885_v15 = vld [vmem:[#allocation2 + $0x94] sm:$0xf] }
  0xb5   : > { %v8857_v7 = vpop.permute.xlu1 %2928  ;;  %1068 = vrot.lane.b32.xlu1 %v1052_v2, %s8234_s24  ;;  %v8874_v36 = vpop.permute.xlu0 %1308  ;;  %v3226_v2 = vld [vmem:[#allocation2 + $0x78] sm:$0xe]  ;;  %v2615_v48 = vsel %vm1031_vm5, %v2613_v49, %v2614_v35  ;;  %v1053_v18 = vrot.slane %v6916_v5, 1  ;;  %v1054_v33 = vrot.slane %v8815_v46, 1  ;;  %v1781_v47 = vshll.u32 %v8872_v59, 16 }
  0xb6   : > { %v3304_v58 = vor.u32 %v3303_v9, %v3299_v3  ;;  %v2551_v34 = vsel %vm894_vm6, %v2546_v29, %v2550_v62  ;;  %v1767_v28 = vshrl.u32 %v8861_v23, 16  ;;  %v1903_v22 = vrot.slane %v8009_v51, 1  ;;  %v3227_v9 = vld [vmem:[#allocation2 + $0x84] sm:$0xe]  ;;  %v8902_v29 = vld [vmem:[%s10719_s1 + $0x8] ss:$0 sps:$4 sm:$0xff]  }
  0xb7   : > { %v1902_v3 = vrot.slane %v6977_v37, 1  ;;  %v1387_v49 = vsel %vm1072_vm7, %v8396_v4, %v1307_v12  ;;  %v8897_v46 = vcombine.low %v3204_v40, %v8882_v19  ;;  %v1786_v62 = vshll.u32 %v8878_v38, 16  ;;  %v8918_v40 = vld [vmem:[#allocation2 + $0x98] ss:$0 sps:$4 sm:$0x11]   ;;  %7881 = vmatprep.subr.msk.bf16.mxu1 %vm1440_vm8, %v8902_v29 }
  0xb8   : > { %1003 = vrot.lane.b32.xlu0 %v978_v20, %s8235_s25  ;;  %v3308_v20 = vrot.slane %v3306_v63, 1  ;;  %v7099_v63 = vcombine.low %v3226_v2, %v8821_v39  ;;  %v8911_v39 = vcombine.low %v3206_v17, %v8885_v15  ;;  %v1779_v12 = vshrl.u32 %v8872_v59, 16  ;;  %v8928_v17 = vld [vmem:[#allocation2 + $0x34] sm:$0xf] }
  0xb9   : > { %2628 = vrot.lane.b32.xlu1 %v2612_v41, %s8234_s24  ;;  %v1771_v41 = vrot.slane %v1769_v8, 1  ;;  %v8906_v8 = vld [vmem:[#allocation2 + $0x8c] ss:$0 sps:$4 sm:$0x11]  }
  0xba   : > { %v3309_v51 = vsel %vm894_vm6, %v3304_v58, %v3308_v20  ;;  %v7100_v58 = vcombine.low %v3227_v9, %v8882_v19  ;;  %v1674_v20 = vld [vmem:[#allocation2 + $0x30] sm:$0xf]  ;;  %v3435_v19 = vrot.slane %v8854_v50, 1  ;;  %v1676_v50 = vld [vmem:[#allocation2 + $0x3c] sm:$0xf] }
  0xbb   : > { %v2931_v42 = vpop.permute.xlu1 %2930  ;;  %v1696_v9 = vld [vmem:[#allocation2 + $0x30] sm:$0xe] }
  0xbc   : > { %1005 = vrot.lane.b32.xlu0 %v990_v44, %s8235_s25  ;;  %v1783_v44 = vrot.slane %v1781_v47, 1  ;;  %v1904_v47 = vsel %vm1031_vm5, %v1902_v3, %v1903_v22  ;;  %v3318_v22 = vshll.u32 %v8906_v8, 16  ;;  %v8941_v3 = vld [vmem:[#allocation2 + $0x38] ss:$0 sps:$4 sm:$0x11]  }
  0xbd   : > { %2630 = vrot.lane.b32.xlu1 %v2615_v48, %s8234_s24  ;;  %v1776_v48 = vrot.slane %v1774_v57, 1 }
  0xbe   : > { %v2867_v5 = vpop.permute.xlu0 %2866 }
  0xbf   : > { %v1305_v35 = vpop.permute.xlu1 %1304  ;;  %v2947_v2 = vsel %vm1072_vm7, %v8449_v24, %v2867_v5  ;;  %v1772_v24 = vor.u32 %v1771_v41, %v1767_v28  ;;  %v1784_v28 = vor.u32 %v1783_v44, %v1779_v12  ;;  %v1788_v41 = vrot.slane %v1786_v62, 1  ;;  %v8945_v5 = vld [vmem:[#allocation2 + $0x40] sm:$0xf] }
  0xc0   : > { %v1385_v4 = vsel %vm1072_vm7, %v8390_v60, %v1305_v35  ;;  %2566 = vrot.lane.b32.xlu0 %v2551_v34, %s8235_s25  ;;  %v1055_v60 = vsel %vm1031_vm5, %v1053_v18, %v1054_v33  ;;  %v3434_v35 = vrot.slane %v7099_v63, 1  ;;  %v3313_v34 = vshll.u32 %v8897_v46, 16  ;;  %v1695_v33 = vld [vmem:[#allocation2 + $0x24] sm:$0xe] }
  0xc1   : > { %v1401_v37 = vsel %vm1089_vm9, %v1385_v4, %v8734_v61  ;;  %v1403_v61 = vsel %vm1089_vm9, %v1387_v49, %v8834_v27  ;;  %3394 = vrot.lane.b32.xlu1 %v3309_v51, %s8235_s25  ;;  %v3325_v18 = vshll.u32 %v8911_v39, 16  ;;  %v2963_v49 = vsel %vm1089_vm9, %v2947_v2, %v2931_v42  ;;  %v3228_v2 = vld [vmem:[#allocation2 + $0x90] sm:$0xe] }
  0xc2   : > { %7514 = vmatmul.mubr.msk.bf16.vlgmr.msra.gmra.mrb[0].mxu0 %vm1423_vm10, %v1401_v37  ;;  %v3437_v42 = vrot.slane %v7100_v58, 1  ;;  %v3438_v51 = vrot.slane %v8906_v8, 1  ;;  %v1777_v62 = vsel %vm894_vm6, %v1772_v24, %v1776_v48  ;;  %v3315_v4 = vrot.slane %v3313_v34, 1  ;;  %v3209_v48 = vld [vmem:[#allocation2 + $0xa0] sm:$0xf] }
  0xc3   : > { %v2865_v57 = vpop.permute.xlu1 %2864  ;;  %7517 = vmatprep.mubr.msk.bf16.mxu0 %vm1423_vm10, %v1403_v61  ;;  %7530 = vmatpush3.bf16.msra.mxu0 %v8772_v16  ;;  %v1389_v16 = vsel %vm1072_vm7, %v8420_v30, %v8874_v36  ;;  %v3330_v12 = vshll.u32 %v8918_v40, 16  ;;  %v8962_v44 = vcombine.low %v1674_v20, %v8928_v17  ;;  %v3436_v30 = vsel %vm1031_vm5, %v3434_v35, %v3435_v19  ;;  %v3210_v24 = vld [vmem:[#allocation2 + $0xa8] sm:$0xf]  ;;  %v8978_v34 = vld [vmem:[#allocation2 + $0xac] sm:$0xf] }
  0xc4   : > { %v2945_v27 = vsel %vm1072_vm7, %v8438_v55, %v2865_v57  ;;  %7878 = vmatprep.subr.msk.bf16.mxu0 %vm1440_vm8, %v8902_v29  ;;  %1070 = vrot.lane.b32.xlu0 %v1055_v60, %s8234_s24  ;;  %v3311_v55 = vshrl.u32 %v8897_v46, 16  ;;  %v6978_v36 = vcombine.low %v1695_v33, %v8863_v1  ;;  %v3323_v8 = vshrl.u32 %v8911_v39, 16  ;;  %v3208_v60 = vld [vmem:[#allocation2 + $0x9c] sm:$0xf] }
  0xc5   : > { %v2961_v63 = vsel %vm1089_vm9, %v2945_v27, %v8857_v7  ;;  %v8956_v7 = vld [vmem:[#allocation2 + $0x44] ss:$0 sps:$4 sm:$0x11]   ;;  %1926 = vrot.lane.b32.xlu1 %v1904_v47, %s8234_s24  ;;  %v3327_v37 = vrot.slane %v3325_v18, 1  ;;  %v6979_v58 = vcombine.low %v1696_v9, %v8928_v17  ;;  %v1405_v61 = vsel %vm1089_vm9, %v1389_v16, %v8754_v53  ;;  %v3229_v19 = vld [vmem:[#allocation2 + $0x9c] sm:$0xe] }
  0xc6   : > { %7577 = vmatprep.mubr.msk.bf16.mxu1 %vm1423_vm10, %v2961_v63  ;;  %v1789_v20 = vsel %vm894_vm6, %v1784_v28, %v1788_v41  ;;  %v3320_v47 = vrot.slane %v3318_v22, 1  ;;  %v1906_v35 = vrot.slane %v8878_v38, 1  ;;  %v8975_v1 = vcombine.low %v1676_v50, %v8945_v5  ;;  %v8985_v28 = vld [vmem:[#allocation2 + $0xa4] ss:$0 sps:$4 sm:$0x11]  }
  0xc7   : > { %7578 = vmatmul.mubr.msk.bf16.gmra.mrb[4].mxu1 %vm1423_vm10, %v2963_v49  ;;  %v3316_v17 = vor.u32 %v3315_v4, %v3311_v55  ;;  %v3439_v53 = vsel %vm1031_vm5, %v3437_v42, %v3438_v51  ;;  %v1793_v33 = vshll.u32 %v8962_v44, 16  ;;  %v1798_v57 = vshll.u32 %v8941_v3, 16 }
  0xc8   : > { %1862 = vrot.lane.b32.xlu0 %v1777_v62, %s8235_s25  ;;  %v1905_v27 = vrot.slane %v6978_v36, 1  ;;  %v3328_v18 = vor.u32 %v3327_v37, %v3323_v8  ;;  %v3332_v38 = vrot.slane %v3330_v12, 1  ;;  %v1810_v9 = vshll.u32 %v8956_v7, 16 }
  0xc9   : > { %3458 = vrot.lane.b32.xlu1 %v3436_v30, %s8234_s24  ;;  %v1908_v41 = vrot.slane %v6979_v58, 1  ;;  %v1909_v22 = vrot.slane %v8941_v3, 1  ;;  %v7101_v63 = vcombine.low %v3228_v2, %v8885_v15  ;;  %v8989_v50 = vcombine.low %v3208_v60, %v3209_v48  ;;  %v8999_v3 = vld [vmem:[#allocation2 + $0xb0] ss:$0 sps:$4 sm:$0x11]  }
  0xca   : > { %7518 = vmatmul.mubr.msk.bf16.gmra.mrb[4].mxu0 %vm1423_vm10, %v1405_v61  ;;  %v2869_v49 = vpop.permute.xlu1 %2868  ;;  %v1805_v55 = vshll.u32 %v8975_v1, 16  ;;  %v8994_v16 = vcombine.low %v3210_v24, %v8978_v34  ;;  %v3321_v42 = vsel %vm894_vm6, %v3316_v17, %v3320_v47  ;;  %v1791_v51 = vshrl.u32 %v8962_v44, 16  ;;  %v1678_v61 = vld [vmem:[#allocation2 + $0x48] sm:$0xf]  ;;  %v9006_v24 = vld [vmem:[#allocation2 + $0x4c] sm:$0xf] }
  0xcb   : > { %v1795_v62 = vrot.slane %v1793_v33, 1  ;;  %v1800_v4 = vrot.slane %v1798_v57, 1  ;;  %v3333_v15 = vsel %vm894_vm6, %v3328_v18, %v3332_v38  ;;  %v1803_v12 = vshrl.u32 %v8975_v1, 16 }
  0xcc   : > { %1864 = vrot.lane.b32.xlu0 %v1789_v20, %s8235_s25  ;;  %v1812_v30 = vrot.slane %v1810_v9, 1  ;;  %v7102_v8 = vcombine.low %v3229_v19, %v3209_v48  ;;  %v1907_v37 = vsel %vm1031_vm5, %v1905_v27, %v1906_v35  ;;  %v1910_v2 = vsel %vm1031_vm5, %v1908_v41, %v1909_v22  ;;  %v1697_v9 = vld [vmem:[#allocation2 + $0x3c] sm:$0xe] }
  0xcd   : > { %3460 = vrot.lane.b32.xlu1 %v3439_v53, %s8234_s24  ;;  %v3440_v60 = vrot.slane %v7101_v63, 1  ;;  %v3337_v58 = vshll.u32 %v8989_v50, 16  ;;  %v1807_v47 = vrot.slane %v1805_v55, 1  ;;  %v3441_v17 = vrot.slane %v8918_v40, 1  ;;  %v9025_v22 = vld [vmem:[%s10719_s1 + $0x18] sm:$0xff]  }
  0xce   : > { %v1375_v36 = vpop.permute.xlu1 %1374  ;;  %v3342_v53 = vshll.u32 %v8985_v28, 16  ;;  %v3349_v48 = vshll.u32 %v8994_v16, 16  ;;  %v1796_v35 = vor.u32 %v1795_v62, %v1791_v51  ;;  %v3335_v57 = vshrl.u32 %v8989_v50, 16  ;;  %v1680_v62 = vld [vmem:[#allocation2 + $0x54] sm:$0xf] }
  0xcf   : > { %v3444_v19 = vrot.slane %v8985_v28, 1  ;;  %v2949_v27 = vsel %vm1072_vm7, %v8494_v26, %v2869_v49  ;;  %v3443_v38 = vrot.slane %v7102_v8, 1  ;;  %v1567_v41 = vsel %vm1440_vm8, %v8902_v29, 0  ;;  %v1698_v49 = vld [vmem:[#allocation2 + $0x48] sm:$0xe] }
  0xd0   : > { %3396 = vrot.lane.b32.xlu0 %v3321_v42, %s8235_s25  ;;  %v3354_v26 = vshll.u32 %v8999_v3, 16  ;;  %7532 = vmatpush3.bf16.msra.mxu0 %v1567_v41  ;;  %v1808_v63 = vor.u32 %v1807_v47, %v1803_v12  ;;  %v3347_v29 = vshrl.u32 %v8994_v16, 16  ;;  %v3351_v42 = vrot.slane %v3349_v48, 1 }
  0xd1   : > { %v1311_v20 = vpop.permute.xlu0 %1310  ;;  %3398 = vrot.lane.b32.xlu1 %v3333_v15, %s8235_s25  ;;  %v9034_v51 = vcombine.low %v1678_v61, %v9006_v24  ;;  %v9036_v15 = vld [vmem:[#allocation2 + $0x58] sm:$0xf]  ;;  %7592 = vmatpush3.bf16.msra.mxu1 %v1567_v41  ;;  %v3442_v8 = vsel %vm1031_vm5, %v3440_v60, %v3441_v17  ;;  %v1912_v48 = vrot.slane %v8956_v7, 1 }
  0xd2   : > { %v1391_v33 = vsel %vm1072_vm7, %v8510_v52, %v1311_v20  ;;  %v2933_v40 = vpop.permute.xlu1 %2932  ;;  %v3339_v52 = vrot.slane %v3337_v58, 1  ;;  %7549 = vmatprep.subr.bf16.mxu0 %v9025_v22  ;;  %7609 = vmatprep.subr.bf16.mxu1 %v9025_v22  ;;  %v8034_v58 = vld [vmem:[#allocation2 + $0x50] ss:$0 sps:$4 sm:$0x11]   ;;  %v1813_v61 = vsel %vm894_vm6, %v1808_v63, %v1812_v30  ;;  %v3344_v20 = vrot.slane %v3342_v53, 1 }
  0xd3   : > { %v1407_v18 = vsel %vm1089_vm9, %v1391_v33, %v1375_v36  ;;  %v2965_v28 = vsel %vm1089_vm9, %v2949_v27, %v2933_v40  ;;  %v1801_v36 = vsel %vm894_vm6, %v1796_v35, %v1800_v4  ;;  %v1817_v4 = vshll.u32 %v9034_v51, 16  ;;  %v3230_v35 = vld [vmem:[#allocation2 + $0xa8] sm:$0xe]  ;;  %v3212_v33 = vld [vmem:[#allocation2 + $0xb4] sm:$0xf] }
  0xd4   : > { %7521 = vmatprep.mubr.msk.bf16.mxu0 %vm1423_vm10, %v1407_v18  ;;  %1928 = vrot.lane.b32.xlu0 %v1907_v37, %s8234_s24  ;;  %v6980_v37 = vcombine.low %v1697_v9, %v8945_v5  ;;  %v3340_v60 = vor.u32 %v3339_v52, %v3335_v57  ;;  %v9053_v5 = vcombine.low %v1680_v62, %v9036_v15  ;;  %v9055_v30 = vld [vmem:[#allocation2 + $0xb8] sm:$0xf]  ;;  %v3356_v18 = vrot.slane %v3354_v26, 1  ;;  %v9059_v57 = vld [vmem:[#allocation2 + $0x5c] ss:$0 sps:$4 sm:$0x11]  }
  0xd5   : > { %v1313_v55 = vpop.permute.xlu0 %1312  ;;  %7581 = vmatprep.mubr.msk.bf16.mxu1 %vm1423_vm10, %v2965_v28  ;;  %1930 = vrot.lane.b32.xlu1 %v1910_v2, %s8234_s24  ;;  %v6981_v2 = vcombine.low %v1698_v49, %v9006_v24  ;;  %v3445_v53 = vsel %vm1031_vm5, %v3443_v38, %v3444_v19  ;;  %v3352_v24 = vor.u32 %v3351_v42, %v3347_v29  ;;  %v3214_v9 = vld [vmem:[#allocation2 + $0xc0] sm:$0xf]  ;;  %v1815_v7 = vshrl.u32 %v9034_v51, 16  ;;  %v9063_v28 = vld [vmem:[#allocation2 + $0xc4] sm:$0xf] }
  0xd6   : > { %v2935_v12 = vpop.permute.xlu1 %2934  ;;  %v1822_v41 = vshll.u32 %v8034_v58, 16  ;;  %v1915_v52 = vrot.slane %v8034_v58, 1  ;;  %v1393_v19 = vsel %vm1072_vm7, %v8526_v10, %v1313_v55  ;;  %v1819_v26 = vrot.slane %v1817_v4, 1  ;;  %v3231_v55 = vld [vmem:[#allocation2 + $0xb4] sm:$0xe] }
  0xd7   : > { %v1914_v49 = vrot.slane %v6981_v2, 1  ;;  %v9069_v63 = vcombine.low %v3212_v33, %v9055_v30  ;;  %v3345_v29 = vsel %vm894_vm6, %v3340_v60, %v3344_v20  ;;  %v1829_v62 = vshll.u32 %v9053_v5, 16  ;;  %v8040_v60 = vld [vmem:[#allocation2 + $0xbc] ss:$0 sps:$4 sm:$0x11]  }
  0xd8   : > { %1866 = vrot.lane.b32.xlu0 %v1801_v36, %s8235_s25  ;;  %v3357_v36 = vsel %vm894_vm6, %v3352_v24, %v3356_v18  ;;  %v7103_v10 = vcombine.low %v3230_v35, %v8978_v34  ;;  %v1824_v58 = vrot.slane %v1822_v41, 1  ;;  %v1820_v20 = vor.u32 %v1819_v26, %v1815_v7  ;;  %v1682_v7 = vld [vmem:[#allocation2 + $0x60] sm:$0xf]  ;;  %v1683_v41 = vld [vmem:[#allocation2 + $0x64] sm:$0xf] }
  0xd9   : > { %v2871_v47 = vpop.permute.xlu0 %2870  ;;  %3462 = vrot.lane.b32.xlu1 %v3442_v8, %s8234_s24  ;;  %v1916_v4 = vsel %vm1031_vm5, %v1914_v49, %v1915_v52  ;;  %v1827_v2 = vshrl.u32 %v9053_v5, 16  ;;  %v3361_v34 = vshll.u32 %v9069_v63, 16  ;;  %v3447_v35 = vrot.slane %v8999_v3, 1  ;;  %v1699_v49 = vld [vmem:[#allocation2 + $0x54] sm:$0xe] }
  0xda   : > { %v2951_v17 = vsel %vm1072_vm7, %v8534_v21, %v2871_v47  ;;  %v2873_v40 = vpop.permute.xlu1 %2872  ;;  %v1911_v21 = vrot.slane %v6980_v37, 1  ;;  %v7104_v33 = vcombine.low %v3231_v55, %v9055_v30  ;;  %v3446_v18 = vrot.slane %v7103_v10, 1  ;;  %v9110_v55 = vld [vmem:[#allocation2 + $0x70] sm:$0xf] }
  0xdb   : > { %v2967_v27 = vsel %vm1089_vm9, %v2951_v17, %v2935_v12  ;;  %v9079_v12 = vcombine.low %v3214_v9, %v9063_v28  ;;  %v1825_v3 = vsel %vm894_vm6, %v1820_v20, %v1824_v58  ;;  %v3359_v30 = vshrl.u32 %v9069_v63, 16 }
  0xdc   : > { %7582 = vmatmul.mubr.msk.bf16.gmra.mrb[8].mxu1 %vm1423_vm10, %v2967_v27  ;;  %1868 = vrot.lane.b32.xlu0 %v1813_v61, %s8235_s25  ;;  %v1913_v37 = vsel %vm1031_vm5, %v1911_v21, %v1912_v48  ;;  %v1834_v61 = vshll.u32 %v9059_v57, 16  ;;  %v1831_v48 = vrot.slane %v1829_v62, 1  ;;  %v2953_v27 = vsel %vm1072_vm7, %v8546_v45, %v2873_v40 }
  0xdd   : > { %v1377_v38 = vpop.permute.xlu0 %1376  ;;  %3464 = vrot.lane.b32.xlu1 %v3445_v53, %s8234_s24  ;;  %v9092_v53 = vld [vmem:[#allocation2 + $0xc8] ss:$0 sps:$4 sm:$0x11]   ;;  %v3373_v21 = vshll.u32 %v9079_v12, 16  ;;  %v3363_v45 = vrot.slane %v3361_v34, 1  ;;  %v3366_v40 = vshll.u32 %v8040_v60, 16  ;;  %v3448_v62 = vsel %vm1031_vm5, %v3446_v18, %v3447_v35 }
  0xde   : > { %v1409_v42 = vsel %vm1089_vm9, %v1393_v19, %v1377_v38  ;;  %v1379_v8 = vpop.permute.xlu1 %1378  ;;  %v1836_v52 = vrot.slane %v1834_v61, 1  ;;  %v1832_v19 = vor.u32 %v1831_v48, %v1827_v2  ;;  %v3449_v38 = vrot.slane %v7104_v33, 1  ;;  %v3216_v33 = vld [vmem:[#allocation2 + $0xcc] sm:$0xf] }
  0xdf   : > { %7522 = vmatmul.mubr.msk.bf16.gmra.mrb[8].mxu0 %vm1423_vm10, %v1409_v42  ;;  %v3450_v26 = vrot.slane %v8040_v60, 1  ;;  %v1684_v42 = vld [vmem:[#allocation2 + $0x6c] sm:$0xf]  ;;  %v3378_v10 = vshll.u32 %v9092_v53, 16  ;;  %v3364_v58 = vor.u32 %v3363_v45, %v3359_v30  ;;  %v3368_v61 = vrot.slane %v3366_v40, 1 }
  0xe0   : > { %3400 = vrot.lane.b32.xlu0 %v3345_v29, %s8235_s25  ;;  %v9105_v29 = vcombine.low %v1682_v7, %v1683_v41  ;;  %v6982_v20 = vcombine.low %v1699_v49, %v9036_v15  ;;  %v9118_v60 = vcombine.low %v1684_v42, %v9110_v55  ;;  %v9124_v7 = vld [vmem:[#allocation2 + $0x74] ss:$0 sps:$4 sm:$0x11]  }
  0xe1   : > { %v1315_v47 = vpop.permute.xlu0 %1314  ;;  %3402 = vrot.lane.b32.xlu1 %v3357_v36, %s8235_s25  ;;  %v3371_v36 = vshrl.u32 %v9079_v12, 16  ;;  %v3451_v34 = vsel %vm1031_vm5, %v3449_v38, %v3450_v26  ;;  %v3380_v48 = vrot.slane %v3378_v10, 1  ;;  %v3369_v15 = vsel %vm894_vm6, %v3364_v58, %v3368_v61  ;;  %v3233_v26 = vld [vmem:[#allocation2 + $0xcc] sm:$0xe] }
  0xe2   : > { %v1395_v17 = vsel %vm1072_vm7, %v8553_v0, %v1315_v47  ;;  %v2937_v9 = vpop.permute.xlu1 %2936  ;;  %v8046_v47 = vld [vmem:[#allocation2 + $0x68] ss:$0 sps:$4 sm:$0x11]   ;;  %v1841_v2 = vshll.u32 %v9105_v29, 16  ;;  %v1917_v18 = vrot.slane %v6982_v20, 1  ;;  %v1851_v10 = vshrl.u32 %v9118_v60, 16 }
  0xe3   : > { %v1411_v24 = vsel %vm1089_vm9, %v1395_v17, %v1379_v8  ;;  %v2969_v0 = vsel %vm1089_vm9, %v2953_v27, %v2937_v9  ;;  %v3375_v8 = vrot.slane %v3373_v21, 1  ;;  %v3217_v27 = vld [vmem:[#allocation2 + $0xd0] sm:$0xf]  ;;  %v1918_v9 = vrot.slane %v9059_v57, 1 }
  0xe4   : > { %7525 = vmatprep.mubr.msk.bf16.mxu0 %vm1423_vm10, %v1411_v24  ;;  %1932 = vrot.lane.b32.xlu0 %v1913_v37, %s8234_s24  ;;  %v1700_v37 = vld [vmem:[#allocation2 + $0x60] sm:$0xe]  ;;  %v1846_v21 = vshll.u32 %v8046_v47, 16 }
  0xe5   : > { %7585 = vmatprep.mubr.msk.bf16.mxu1 %vm1423_vm10, %v2969_v0  ;;  %1934 = vrot.lane.b32.xlu1 %v1916_v4, %s8234_s24  ;;  %v1837_v4 = vsel %vm894_vm6, %v1832_v19, %v1836_v52  ;;  %v3376_v17 = vor.u32 %v3375_v8, %v3371_v36  ;;  %v6983_v35 = vcombine.low %v1700_v37, %v1683_v41  ;;  %v3232_v24 = vld [vmem:[#allocation2 + $0xc0] sm:$0xe]  ;;  %v1839_v52 = vshrl.u32 %v9105_v29, 16  ;;  %v8053_v36 = vld [vmem:[#allocation2 + $0xd4] ss:$0 sps:$4 sm:$0x11]  }
  0xe6   : > { %v1843_v0 = vrot.slane %v1841_v2, 1  ;;  %v1853_v41 = vshll.u32 %v9118_v60, 16  ;;  %v1921_v19 = vrot.slane %v8046_v47, 1  ;;  %v7105_v38 = vcombine.low %v3232_v24, %v9063_v28 }
  0xe7   : > { %v3381_v45 = vsel %vm894_vm6, %v3376_v17, %v3380_v48  ;;  %v1920_v40 = vrot.slane %v6983_v35, 1  ;;  %v1919_v49 = vsel %vm1031_vm5, %v1917_v18, %v1918_v9  ;;  %v1848_v42 = vrot.slane %v1846_v21, 1 }
  0xe8   : > { %1870 = vrot.lane.b32.xlu0 %v1825_v3, %s8235_s25  ;;  %v9129_v3 = vcombine.low %v3216_v33, %v3217_v27  ;;  %v1844_v8 = vor.u32 %v1843_v0, %v1839_v52  ;;  %v1855_v37 = vrot.slane %v1853_v41, 1  ;;  %v3452_v20 = vrot.slane %v7105_v38, 1  ;;  %v1701_v52 = vld [vmem:[#allocation2 + $0x6c] sm:$0xe] }
  0xe9   : > { %3466 = vrot.lane.b32.xlu1 %v3448_v62, %s8234_s24  ;;  %v1858_v62 = vshll.u32 %v9124_v7, 16  ;;  %v1922_v28 = vsel %vm1031_vm5, %v1920_v40, %v1921_v19  ;;  %v3453_v47 = vrot.slane %v9092_v53, 1  ;;  %v3390_v35 = vshll.u32 %v8053_v36, 16 }
  0xea   : > { %v3385_v58 = vshll.u32 %v9129_v3, 16  ;;  %v1849_v33 = vsel %vm894_vm6, %v1844_v8, %v1848_v42  ;;  %v1856_v24 = vor.u32 %v1855_v37, %v1851_v10  ;;  %v3383_v53 = vshrl.u32 %v9129_v3, 16  ;;  %v8059_v8 = vld [vmem:[%s8293_s23] sm:$0xff]  }
  0xeb   : > { %v1860_v48 = vrot.slane %v1858_v62, 1  ;;  %v3454_v18 = vsel %vm1031_vm5, %v3452_v20, %v3453_v47  ;;  %v3456_v21 = vrot.slane %v8053_v36, 1 }
  0xec   : > { %1872 = vrot.lane.b32.xlu0 %v1837_v4, %s8235_s25  ;;  %v7106_v4 = vcombine.low %v3233_v26, %v3217_v27  ;;  %v3387_v27 = vrot.slane %v3385_v58, 1  ;;  %v8060_v58 = vld [vmem:[%s8293_s23 + $0x40] sm:$0xff]  }
  0xed   : > { %3468 = vrot.lane.b32.xlu1 %v3451_v34, %s8234_s24 }
  0xee   : > { %v1317_v30 = vpop.permute.xlu0 %1316  ;;  %v3455_v9 = vrot.slane %v7106_v4, 1  ;;  %v3388_v40 = vor.u32 %v3387_v27, %v3383_v53  ;;  %v8061_v4 = vld [vmem:[%s8293_s23 + $0x48] sm:$0xff]  }
  0xef   : > { %v2939_v57 = vpop.permute.xlu1 %2938 }
  0xf0   : > { %3404 = vrot.lane.b32.xlu0 %v3369_v15, %s8235_s25  ;;  %v3457_v38 = vsel %vm1031_vm5, %v3455_v9, %v3456_v21 }
  0xf1   : > { %3406 = vrot.lane.b32.xlu1 %v3381_v45, %s8235_s25  ;;  %v1861_v45 = vsel %vm894_vm6, %v1856_v24, %v1860_v48 }
  0xf2   : > { %v2875_v61 = vpop.permute.xlu0 %2874 }
  0xf3   : > { %v2955_v2 = vsel %vm1072_vm7, %v8619_v32, %v2875_v61  ;;  %v2553_v34 = vpop.permute.xlu1 %2552  ;;  %v1397_v32 = vsel %vm1072_vm7, %v8600_v6, %v1317_v30  ;;  %v3392_v6 = vrot.slane %v3390_v35, 1  ;;  %v6984_v30 = vcombine.low %v1701_v52, %v9110_v55 }
  0xf4   : > { %1936 = vrot.lane.b32.xlu0 %v1919_v49, %s8234_s24  ;;  %v2971_v17 = vsel %vm1089_vm9, %v2955_v2, %v2939_v57  ;;  %v2633_v57 = vsel %vm1072_vm7, %v8606_v14, %v2553_v34  ;;  %v1924_v14 = vrot.slane %v9124_v7, 1  ;;  %v8058_v7 = vld [vmem:[%s10719_s1 + $0x20] ss:$0 sps:$4 sm:$0xff]  }
  0xf5   : > { %7586 = vmatmul.mubr.msk.bf16.gmra.mrb[12].mxu1 %vm1423_vm10, %v2971_v17  ;;  %1938 = vrot.lane.b32.xlu1 %v1922_v28, %s8234_s24  ;;  %v3393_v55 = vsel %vm894_vm6, %v3388_v40, %v3392_v6  ;;  %v1923_v36 = vrot.slane %v6984_v30, 1  ;;  %v2000_v48 = vsel %vm1440_vm8, %v8058_v7, 0  ;;  %v10775_v30 = vld [vmem:[#allocation5_spill] sm:$0xff] }
  0xf6   : > { %v1381_v15 = vpop.permute.xlu0 %1380 }
  0xf7   : > { %v1413_v0 = vsel %vm1089_vm9, %v1397_v32, %v1381_v15  ;;  %v1057_v41 = vpop.permute.xlu1 %1056  ;;  %v1925_v37 = vsel %vm1031_vm5, %v1923_v36, %v1924_v14  ;;  %v8063_v15 = vld [vmem:[%s8293_s23 + $0x50] sm:$0xff]  }
  0xf8   : > { %7526 = vmatmul.mubr.msk.bf16.gmra.mrb[12].mxu0 %vm1423_vm10, %v1413_v0  ;;  %1874 = vrot.lane.b32.xlu0 %v1849_v33, %s8235_s25 }
  0xf9   : > { %3470 = vrot.lane.b32.xlu1 %v3454_v18, %s8234_s24 }
  0xfa   : > { %v992_v19 = vpop.permute.xlu0 %991 }
  0xfb   : > { %v1074_v26 = vsel %vm1072_vm7, %v8594_v56, %v992_v19  ;;  %v2617_v49 = vpop.permute.xlu1 %2616  ;;  %v10776_v19 = vld [vmem:[#allocation6_spill] sm:$0xff] }
  0xfc   : > { %1876 = vrot.lane.b32.xlu0 %v1861_v45, %s8235_s25  ;;  %v1091_v42 = vsel %vm1089_vm9, %v1074_v26, %v1057_v41  ;;  %v2649_v62 = vsel %vm1089_vm9, %v2633_v57, %v2617_v49 }
  0xfd   : > { %7533 = vmatprep.mubr.msk.bf16.mxu0 %vm1423_vm10, %v1091_v42  ;;  %3472 = vrot.lane.b32.xlu1 %v3457_v38, %s8234_s24 }
  0xfe   : > { %v994_v10 = vpop.permute.xlu0 %993  ;;  %7593 = vmatprep.mubr.msk.bf16.mxu1 %vm1423_vm10, %v2649_v62 }
  0xff   : > { %v2619_v56 = vpop.permute.xlu1 %2618  ;;  %v1076_v2 = vsel %vm1072_vm7, %v8614_v54, %v994_v10  ;;  %v8062_v54 = vld [vmem:[%s8293_s23 + $0x10] sm:$0xff]   ;;  %v10778_v10 = vld [vmem:[#allocation7_spill] sm:$0xff] }
 0x100   : > { %3408 = vrot.lane.b32.xlu0 %v3393_v55, %s8235_s25  ;;  %v10777_v55 = vld [vmem:[#allocation8_spill] sm:$0xff] }
 0x101   : > { %4546 = vrot.lane.b32.xlu1 %v8059_v8, %s8236_s11 }
 0x102   : > { %v2555_v61 = vpop.permute.xlu0 %2554 }
 0x103   : > { %v2635_v28 = vsel %vm1072_vm7, %v8617_v11, %v2555_v61  ;;  %v2557_v20 = vpop.permute.xlu1 %2556 }
 0x104   : > { %1940 = vrot.lane.b32.xlu0 %v1925_v37, %s8234_s24  ;;  %v2651_v47 = vsel %vm1089_vm9, %v2635_v28, %v2619_v56  ;;  %v2637_v33 = vsel %vm1072_vm7, %v8639_v31, %v2557_v20  ;;  %v8064_v31 = vld [vmem:[%s8293_s23 + $0x58] sm:$0xff]  }
 0x105   : > { %7594 = vmatmul.mubr.msk.bf16.vlgmr.msra.gmra.mrb[0].mxu1 %vm1423_vm10, %v2651_v47  ;;  %5995 = vrot.lane.b32.xlu1 %v8060_v58, %s8236_s11  ;;  %v10779_v20 = vld [vmem:[#allocation9_spill] sm:$0xff]  ;;  %v10780_v47 = vld [vmem:[#allocation10_spill] sm:$0xff] }
 0x106   : > { %v1059_v34 = vpop.permute.xlu0 %1058  ;;  %7610 = vmatpush3.bf16.msra.mxu1 %v9025_v22 }
 0x107   : > { %v1093_v11 = vsel %vm1089_vm9, %v1076_v2, %v1059_v34  ;;  %v1061_v17 = vpop.permute.xlu1 %1060  ;;  %7882 = vmatprep.subr.msk.bf16.mxu1 %vm1440_vm8, %v8058_v7 }
 0x108   : > { %7534 = vmatmul.mubr.msk.bf16.vlgmr.msra.gmra.mrb[0].mxu0 %vm1423_vm10, %v1093_v11 }
 0x109   : > { %7550 = vmatpush3.bf16.msra.mxu0 %v9025_v22  ;;  %5997 = vrot.lane.b32.xlu1 %v8061_v4, %s8236_s11 }
 0x10a   : > { %v996_v35 = vpop.permute.xlu0 %995  ;;  %7879 = vmatprep.subr.msk.bf16.mxu0 %vm1440_vm8, %v8058_v7  ;;  %7612 = vmatpush3.bf16.msra.mxu1 %v2000_v48 }
 0x10b   : > { %v1078_v24 = vsel %vm1072_vm7, %v8657_v43, %v996_v35  ;;  %v2621_v53 = vpop.permute.xlu1 %2620 }
 0x10c   : > { %v1095_v27 = vsel %vm1089_vm9, %v1078_v24, %v1061_v17  ;;  %v2653_v22 = vsel %vm1089_vm9, %v2637_v33, %v2621_v53 }
 0x10d   : > { %7537 = vmatprep.mubr.msk.bf16.mxu0 %vm1423_vm10, %v1095_v27  ;;  %7597 = vmatprep.mubr.msk.bf16.mxu1 %vm1423_vm10, %v2653_v22  ;;  %v10782_v27 = vld [vmem:[#allocation11_spill] sm:$0xff] }
 0x10e   : > { %v998_v32 = vpop.permute.xlu0 %997  ;;  %7552 = vmatpush3.bf16.msra.mxu0 %v2000_v48  ;;  %4550 = vrot.lane.b32.xlu1 %v8062_v54, %s8236_s11  ;;  %v10781_v54 = vld [vmem:[#allocation12_spill] sm:$0xff] }
 0x10f   : > { %v2623_v18 = vpop.permute.xlu1 %2622  ;;  %v1080_v0 = vsel %vm1072_vm7, %v8674_v25, %v998_v32 }
 0x112   : > { %v2559_v9 = vpop.permute.xlu0 %2558  ;;  %5999 = vrot.lane.b32.xlu1 %v8063_v15, %s8236_s11 }
 0x113   : > { %v2639_v43 = vsel %vm1072_vm7, %v8686_v13, %v2559_v9  ;;  %v2561_v21 = vpop.permute.xlu1 %2560 }
 0x114   : > { %v2655_v52 = vsel %vm1089_vm9, %v2639_v43, %v2623_v18  ;;  %v2641_v13 = vsel %vm1072_vm7, %v10775_v30, %v2561_v21 }
 0x115   : > { %7598 = vmatmul.mubr.msk.bf16.gmra.mrb[4].mxu1 %vm1423_vm10, %v2655_v52 }
 0x116   : > { %v1063_v41 = vpop.permute.xlu0 %1062  ;;  %6001 = vrot.lane.b32.xlu1 %v8064_v31, %s8236_s11  ;;  %v10783_v31 = vld [vmem:[#allocation13_spill] sm:$0xff] }
 0x117   : > { %v1097_v45 = vsel %vm1089_vm9, %v1080_v0, %v1063_v41  ;;  %v1065_v40 = vpop.permute.xlu1 %1064 }
 0x118   : > { %7538 = vmatmul.mubr.msk.bf16.gmra.mrb[4].mxu0 %vm1423_vm10, %v1097_v45 }
 0x11a   : > { %v1000_v6 = vpop.permute.xlu0 %999 }
 0x11b   : > { %v1082_v38 = vsel %vm1072_vm7, %v10776_v19, %v1000_v6  ;;  %v2625_v57 = vpop.permute.xlu1 %2624 }
 0x11c   : > { %v1099_v26 = vsel %vm1089_vm9, %v1082_v38, %v1065_v40  ;;  %v2657_v25 = vsel %vm1089_vm9, %v2641_v13, %v2625_v57 }
 0x11d   : > { %7541 = vmatprep.mubr.msk.bf16.mxu0 %vm1423_vm10, %v1099_v26  ;;  %7601 = vmatprep.mubr.msk.bf16.mxu1 %vm1423_vm10, %v2657_v25 }
 0x11e   : > { %v1002_v49 = vpop.permute.xlu0 %1001 }
 0x11f   : > { %v2627_v42 = vpop.permute.xlu1 %2626  ;;  %v1084_v56 = vsel %vm1072_vm7, %v10778_v10, %v1002_v49 }
 0x122   : > { %v2563_v62 = vpop.permute.xlu0 %2562 }
 0x123   : > { %v2643_v36 = vsel %vm1072_vm7, %v10777_v55, %v2563_v62  ;;  %v2565_v14 = vpop.permute.xlu1 %2564 }
 0x124   : > { %v2659_v8 = vsel %vm1089_vm9, %v2643_v36, %v2627_v42  ;;  %v2645_v7 = vsel %vm1072_vm7, %v10779_v20, %v2565_v14 }
 0x125   : > { %7602 = vmatmul.mubr.msk.bf16.gmra.mrb[8].mxu1 %vm1423_vm10, %v2659_v8 }
 0x126   : > { %v1067_v37 = vpop.permute.xlu0 %1066 }
 0x127   : > { %v1101_v58 = vsel %vm1089_vm9, %v1084_v56, %v1067_v37  ;;  %v1069_v61 = vpop.permute.xlu1 %1068 }
 0x128   : > { %7542 = vmatmul.mubr.msk.bf16.gmra.mrb[8].mxu0 %vm1423_vm10, %v1101_v58 }
 0x12a   : > { %v1004_v28 = vpop.permute.xlu0 %1003 }
 0x12b   : > { %v1086_v4 = vsel %vm1072_vm7, %v10780_v47, %v1004_v28  ;;  %v2629_v2 = vpop.permute.xlu1 %2628 }
 0x12c   : > { %v1103_v34 = vsel %vm1089_vm9, %v1086_v4, %v1069_v61  ;;  %v2661_v11 = vsel %vm1089_vm9, %v2645_v7, %v2629_v2 }
 0x12d   : > { %7545 = vmatprep.mubr.msk.bf16.mxu0 %vm1423_vm10, %v1103_v34  ;;  %7605 = vmatprep.mubr.msk.bf16.mxu1 %vm1423_vm10, %v2661_v11 }
 0x12e   : > { %v1006_v17 = vpop.permute.xlu0 %1005 }
 0x12f   : > { %v2631_v48 = vpop.permute.xlu1 %2630  ;;  %v1088_v22 = vsel %vm1072_vm7, %v10782_v27, %v1006_v17 }
 0x132   : > { %v2567_v35 = vpop.permute.xlu0 %2566 }
 0x133   : > { %v2647_v33 = vsel %vm1072_vm7, %v10781_v54, %v2567_v35  ;;  %v3395_v24 = vpop.permute.xlu1 %3394 }
 0x134   : > { %v2663_v53 = vsel %vm1089_vm9, %v2647_v33, %v2631_v48  ;;  %v3475_v43 = vsel %vm1072_vm7, %v10783_v31, %v3395_v24  ;;  %v8065_v31 = vld [vmem:[%s8293_s23 + $0x20] sm:$0xff]  }
 0x135   : > { %7606 = vmatmul.mubr.msk.bf16.gmra.mrb[12].mxu1 %vm1423_vm10, %v2663_v53  ;;  %4554 = vrot.lane.b32.xlu1 %v8065_v31, %s8236_s11 }
 0x136   : > { %v1071_v32 = vpop.permute.xlu0 %1070 }
 0x137   : > { %v1105_v15 = vsel %vm1089_vm9, %v1088_v22, %v1071_v32  ;;  %v1927_v18 = vpop.permute.xlu1 %1926 }
 0x138   : > { %7546 = vmatmul.mubr.msk.bf16.gmra.mrb[12].mxu0 %vm1423_vm10, %v1105_v15 }
 0x13a   : > { %v1863_v9 = vpop.permute.xlu0 %1862 }
 0x13b   : > { %v1943_v21 = vsel %vm1072_vm7, %v8861_v23, %v1863_v9  ;;  %v3459_v52 = vpop.permute.xlu1 %3458 }
 0x13c   : > { %v1959_v0 = vsel %vm1089_vm9, %v1943_v21, %v1927_v18  ;;  %v3491_v41 = vsel %vm1089_vm9, %v3475_v43, %v3459_v52  ;;  %v8066_v43 = vld [vmem:[%s8293_s23 + $0x60] sm:$0xff]   ;;  %v8068_v21 = vld [vmem:[%s8293_s23 + $0x8] sm:$0xff]   ;;  %v8070_v52 = vld [vmem:[%s8293_s23 + $0x18] sm:$0xff]  }
 0x13d   : > { %7553 = vmatprep.mubr.msk.bf16.mxu0 %vm1423_vm10, %v1959_v0  ;;  %7613 = vmatprep.mubr.msk.bf16.mxu1 %vm1423_vm10, %v3491_v41  ;;  %v8071_v0 = vld [vmem:[%s8293_s23 + $0x70] sm:$0xff]   ;;  %v8072_v41 = vld [vmem:[%s8293_s23 + $0x28] sm:$0xff]  }
 0x13e   : > { %v1865_v45 = vpop.permute.xlu0 %1864  ;;  %6003 = vrot.lane.b32.xlu1 %v8066_v43, %s8236_s11  ;;  %4548 = vrot.lane.b32.xlu0 %v8068_v21, %s8236_s11 }
 0x13f   : > { %v3461_v40 = vpop.permute.xlu1 %3460  ;;  %v1945_v23 = vsel %vm1072_vm7, %v8872_v59, %v1865_v45  ;;  %v3879_v45 = vld [vmem:[#allocation3] sm:$0xf] }
 0x142   : > { %v3397_v6 = vpop.permute.xlu0 %3396  ;;  %4552 = vrot.lane.b32.xlu0 %v8070_v52, %s8236_s11 }
 0x143   : > { %v3477_v30 = vsel %vm1072_vm7, %v8897_v46, %v3397_v6  ;;  %v3399_v13 = vpop.permute.xlu1 %3398 }
 0x144   : > { %v3493_v19 = vsel %vm1089_vm9, %v3477_v30, %v3461_v40  ;;  %v3479_v25 = vsel %vm1072_vm7, %v8911_v39, %v3399_v13  ;;  %v3880_v40 = vld [vmem:[#allocation3 + $0x4] sm:$0xf]  ;;  %v8076_v30 = vld [vmem:[#allocation3 + $0x8] ss:$0 sps:$4 sm:$0x11]  }
 0x145   : > { %7614 = vmatmul.mubr.msk.bf16.vlgmr.msra.gmra.mrb[0].mxu1 %vm1423_vm10, %v3493_v19  ;;  %v9330_v6 = vcombine.low %v3879_v45, %v3880_v40  ;;  %v8073_v19 = vld [vmem:[%s8293_s23 + $0x78] sm:$0xff]  }
 0x146   : > { %v1929_v38 = vpop.permute.xlu0 %1928  ;;  %4556 = vrot.lane.b32.xlu0 %v8072_v41, %s8236_s11 }
 0x147   : > { %v1961_v57 = vsel %vm1089_vm9, %v1945_v23, %v1929_v38  ;;  %v1931_v26 = vpop.permute.xlu1 %1930  ;;  %10784 = vst [vmem:[#allocation5_spill] sm:$0xff] %v9330_v6  ;;  %v3978_v13 = vshll.u32 %v9330_v6, 16  ;;  %v8074_v23 = vld [vmem:[%s8293_s23 + $0x38] sm:$0xff]  }
 0x148   : > { %7554 = vmatmul.mubr.msk.bf16.vlgmr.msra.gmra.mrb[0].mxu0 %vm1423_vm10, %v1961_v57  ;;  %v3903_v38 = vld [vmem:[#allocation3] sm:$0xe] }
 0x149   : > { %v7155_v57 = vcombine.low %v3903_v38, %v3880_v40 }
 0x14a   : > { %v1867_v49 = vpop.permute.xlu0 %1866  ;;  %4560 = vrot.lane.b32.xlu0 %v8074_v23, %s8236_s11 }
 0x14b   : > { %v1947_v46 = vsel %vm1072_vm7, %v8962_v44, %v1867_v49  ;;  %v3463_v42 = vpop.permute.xlu1 %3462  ;;  %v3983_v49 = vshll.u32 %v8076_v30, 16 }
 0x14c   : > { %v1963_v62 = vsel %vm1089_vm9, %v1947_v46, %v1931_v26  ;;  %v3495_v55 = vsel %vm1089_vm9, %v3479_v25, %v3463_v42  ;;  %v3976_v26 = vshrl.u32 %v9330_v6, 16  ;;  %v3980_v25 = vrot.slane %v3978_v13, 1 }
 0x14d   : > { %7557 = vmatprep.mubr.msk.bf16.mxu0 %vm1423_vm10, %v1963_v62  ;;  %7617 = vmatprep.mubr.msk.bf16.mxu1 %vm1423_vm10, %v3495_v55  ;;  %v4111_v46 = vrot.slane %v7155_v57, 1  ;;  %v4112_v42 = vrot.slane %v8076_v30, 1  ;;  %v3985_v55 = vrot.slane %v3983_v49, 1 }
 0x14e   : > { %v1869_v59 = vpop.permute.xlu0 %1868  ;;  %v3981_v62 = vor.u32 %v3980_v25, %v3976_v26 }
 0x14f   : > { %v3465_v36 = vpop.permute.xlu1 %3464  ;;  %v1949_v10 = vsel %vm1072_vm7, %v8975_v1, %v1869_v59  ;;  %v4113_v59 = vsel %vm1031_vm5, %v4111_v46, %v4112_v42 }
 0x152   : > { %v3401_v14 = vpop.permute.xlu0 %3400 }
 0x153   : > { %v3481_v8 = vsel %vm1072_vm7, %v8989_v50, %v3401_v14  ;;  %v3403_v39 = vpop.permute.xlu1 %3402  ;;  %v9345_v14 = vld [vmem:[%s10720_s2] ss:$0 sm:$0xff] }
 0x154   : > { %v3497_v44 = vsel %vm1089_vm9, %v3481_v8, %v3465_v36  ;;  %v3483_v61 = vsel %vm1072_vm7, %v8994_v16, %v3403_v39  ;;  %v3986_v36 = vsel %vm894_vm6, %v3981_v62, %v3985_v55 }
 0x155   : > { %7618 = vmatmul.mubr.msk.bf16.gmra.mrb[4].mxu1 %vm1423_vm10, %v3497_v44  ;;  %4071 = vrot.lane.b32.xlu0 %v3986_v36, %s8235_s25 }
 0x156   : > { %v1933_v56 = vpop.permute.xlu0 %1932 }
 0x157   : > { %v1965_v37 = vsel %vm1089_vm9, %v1949_v10, %v1933_v56  ;;  %v1935_v58 = vpop.permute.xlu1 %1934 }
 0x158   : > { %7558 = vmatmul.mubr.msk.bf16.gmra.mrb[4].mxu0 %vm1423_vm10, %v1965_v37 }
 0x15a   : > { %v1871_v28 = vpop.permute.xlu0 %1870 }
 0x15b   : > { %v1951_v50 = vsel %vm1072_vm7, %v9034_v51, %v1871_v28  ;;  %v3467_v20 = vpop.permute.xlu1 %3466 }
 0x15c   : > { %v1967_v1 = vsel %vm1089_vm9, %v1951_v50, %v1935_v58  ;;  %v3499_v7 = vsel %vm1089_vm9, %v3483_v61, %v3467_v20 }
 0x15d   : > { %7561 = vmatprep.mubr.msk.bf16.mxu0 %vm1423_vm10, %v1967_v1  ;;  %7621 = vmatprep.mubr.msk.bf16.mxu1 %vm1423_vm10, %v3499_v7 }
 0x15e   : > { %v1873_v47 = vpop.permute.xlu0 %1872 }
 0x15f   : > { %v3469_v4 = vpop.permute.xlu1 %3468  ;;  %v1953_v11 = vsel %vm1072_vm7, %v9053_v5, %v1873_v47 }
 0x162   : > { %v3405_v2 = vpop.permute.xlu0 %3404 }
 0x163   : > { %v3485_v34 = vsel %vm1072_vm7, %v9069_v63, %v3405_v2  ;;  %v3407_v16 = vpop.permute.xlu1 %3406 }
 0x164   : > { %v3501_v51 = vsel %vm1089_vm9, %v3485_v34, %v3469_v4  ;;  %v3487_v54 = vsel %vm1072_vm7, %v9079_v12, %v3407_v16 }
 0x165   : > { %7622 = vmatmul.mubr.msk.bf16.gmra.mrb[8].mxu1 %vm1423_vm10, %v3501_v51 }
 0x166   : > { %v1937_v17 = vpop.permute.xlu0 %1936 }
 0x167   : > { %v1969_v48 = vsel %vm1089_vm9, %v1953_v11, %v1937_v17  ;;  %v1939_v35 = vpop.permute.xlu1 %1938 }
 0x168   : > { %7562 = vmatmul.mubr.msk.bf16.gmra.mrb[8].mxu0 %vm1423_vm10, %v1969_v48 }
 0x16a   : > { %v1875_v33 = vpop.permute.xlu0 %1874 }
 0x16b   : > { %v1955_v63 = vsel %vm1072_vm7, %v9105_v29, %v1875_v33  ;;  %v3471_v24 = vpop.permute.xlu1 %3470 }
 0x16c   : > { %v1971_v5 = vsel %vm1089_vm9, %v1955_v63, %v1939_v35  ;;  %v3503_v53 = vsel %vm1089_vm9, %v3487_v54, %v3471_v24 }
 0x16d   : > { %7565 = vmatprep.mubr.msk.bf16.mxu0 %vm1423_vm10, %v1971_v5  ;;  %7625 = vmatprep.mubr.msk.bf16.mxu1 %vm1423_vm10, %v3503_v53 }
 0x16e   : > { %v1877_v27 = vpop.permute.xlu0 %1876 }
 0x16f   : > { %v3473_v22 = vpop.permute.xlu1 %3472  ;;  %v1957_v32 = vsel %vm1072_vm7, %v9118_v60, %v1877_v27  ;;  %v8069_v60 = vld [vmem:[%s8293_s23 + $0x30] sm:$0xff]  }
 0x172   : > { %v3409_v12 = vpop.permute.xlu0 %3408 }
 0x173   : > { %v3489_v29 = vsel %vm1072_vm7, %v9129_v3, %v3409_v12  ;;  %v8067_v3 = vld [vmem:[%s8293_s23 + $0x68] sm:$0xff]  }
 0x174   : > { %v3505_v15 = vsel %vm1089_vm9, %v3489_v29, %v3473_v22  ;;  %6005 = vrot.lane.b32.xlu1 %v8067_v3, %s8236_s11 }
 0x175   : > { %7626 = vmatmul.mubr.msk.bf16.gmra.mrb[12].mxu1 %vm1423_vm10, %v3505_v15 }
 0x176   : > { %v1941_v18 = vpop.permute.xlu0 %1940 }
 0x177   : > { %v1973_v9 = vsel %vm1089_vm9, %v1957_v32, %v1941_v18 }
 0x178   : > { %7566 = vmatmul.mubr.msk.bf16.gmra.mrb[12].mxu0 %vm1423_vm10, %v1973_v9  ;;  %4558 = vrot.lane.b32.xlu1 %v8069_v60, %s8236_s11 }
 0x17c   : > { %6007 = vrot.lane.b32.xlu1 %v8071_v0, %s8236_s11 }
 0x180   : > { %6009 = vrot.lane.b32.xlu1 %v8073_v19, %s8236_s11 }
 0x184   : > { %4135 = vrot.lane.b32.xlu1 %v4113_v59, %s8234_s24 }
 0x218   : > { %v7615_v8 = vpop.f32.mrb[0].mxu1 }
 0x219   : > { %v3637_v39 = vadd.f32 %v7615_v8, %v9345_v14  ;;  %v3556_v10 = vpop.f32.mrb[1].mxu1 }
 0x21a   : > { %v3635_v44 = vadd.f32 %v9345_v14, %v3556_v10  ;;  %v7616_v56 = vpop.f32.mrb[2].mxu1 }
 0x21b   : > { %v7555_v37 = vpop.f32.mrb[0].mxu0  ;;  %v3638_v58 = vadd.f32 %v7616_v56, %v9345_v14  ;;  %v3559_v61 = vpop.f32.mrb[3].mxu1  ;;  %v3653_v1 = vmax.f32 %v3637_v39, 0.0 }
 0x21c   : > { %v2117_v28 = vadd.f32 %v7555_v37, %v9345_v14  ;;  %v2036_v50 = vpop.f32.mrb[1].mxu0  ;;  %v3636_v20 = vadd.f32 %v9345_v14, %v3559_v61  ;;  %v3651_v2 = vmax.f32 %v3635_v44, 0.0 }
 0x21d   : > { %v2115_v7 = vadd.f32 %v9345_v14, %v2036_v50  ;;  %v7556_v47 = vpop.f32.mrb[2].mxu0  ;;  %v3654_v4 = vmax.f32 %v3638_v58, 0.0 }
 0x21e   : > { %v2118_v34 = vadd.f32 %v7556_v47, %v9345_v14  ;;  %v2039_v16 = vpop.f32.mrb[3].mxu0  ;;  %v3652_v11 = vmax.f32 %v3636_v20, 0.0  ;;  %v2133_v48 = vmax.f32 %v2117_v28, 0.0 }
 0x21f   : > { %v3668_v51 = vpack.c.bf16 %v3654_v4, %v3653_v1  ;;  %v2116_v17 = vadd.f32 %v9345_v14, %v2039_v16  ;;  %v2131_v33 = vmax.f32 %v2115_v7, 0.0 }
 0x220   : > { %v2134_v35 = vmax.f32 %v2118_v34, 0.0  ;;  %v3667_v54 = vpack.c.bf16 %v3652_v11, %v3651_v2 }
 0x221   : > { %v3683_v63 = vshrl.u32 %v3668_v51, 16  ;;  %v2132_v24 = vmax.f32 %v2116_v17, 0.0  ;;  %v3686_v22 = vshll.u32 %v3668_v51, 16 }
 0x222   : > { %v2148_v5 = vpack.c.bf16 %v2134_v35, %v2133_v48  ;;  %v3676_v53 = vshrl.u32 %v3667_v54, 16  ;;  %v3679_v15 = vshll.u32 %v3667_v54, 16 }
 0x223   : > { %v3685_v27 = vrot.slane %v3683_v63, 7  ;;  %v2147_v12 = vpack.c.bf16 %v2132_v24, %v2131_v33 }
 0x224   : > { %v2163_v29 = vshrl.u32 %v2148_v5, 16  ;;  %v3678_v32 = vrot.slane %v3676_v53, 7  ;;  %v2166_v18 = vshll.u32 %v2148_v5, 16 }
 0x225   : > { %v3688_v9 = vor.u32 %v3686_v22, %v3685_v27  ;;  %v3756_v43 = vsel %vm8298_vm4, %v3685_v27, 0  ;;  %v2156_v3 = vshrl.u32 %v2147_v12, 16  ;;  %v2159_v40 = vshll.u32 %v2147_v12, 16 }
 0x226   : > { %v2165_v21 = vrot.slane %v2163_v29, 7  ;;  %v7120_v60 = vcombine.low %v3756_v43, %v3756_v43  ;;  %v3681_v52 = vor.u32 %v3679_v15, %v3678_v32  ;;  %v3755_v0 = vsel %vm8298_vm4, %v3678_v32, 0 }
 0x227   : > { %v3748_v41 = vsel %vm8298_vm4, 0, %v3688_v9  ;;  %v2158_v45 = vrot.slane %v2156_v3, 7  ;;  %v7117_v30 = vcombine.low %v3755_v0, %v3755_v0 }
 0x228   : > { %v2168_v13 = vor.u32 %v2166_v18, %v2165_v21  ;;  %v2236_v19 = vsel %vm8298_vm4, %v2165_v21, 0  ;;  %v7118_v23 = vcombine.low %v3748_v41, %v3748_v41  ;;  %v7119_v38 = vcombine.high %v3748_v41, %v3748_v41  ;;  %3858 = vst.msk [vmem:[#allocation3 + $0x80] sm:$0x1] %vm229_vm1, %v7120_v60  ;;  %v7619_v57 = vpop.f32.mrb[4].mxu1 }
 0x229   : > { %v7000_v26 = vcombine.low %v2236_v19, %v2236_v19  ;;  %v2161_v25 = vor.u32 %v2159_v40, %v2158_v45  ;;  %v2235_v49 = vsel %vm8298_vm4, %v2158_v45, 0  ;;  %v3747_v46 = vsel %vm8298_vm4, 0, %v3681_v52  ;;  %3855 = vst.msk [vmem:[#allocation3 + $0x74] sm:$0x1] %vm229_vm1, %v7117_v30  ;;  %v3572_v42 = vpop.f32.mrb[5].mxu1 }
 0x22a   : > { %v2228_v62 = vsel %vm8298_vm4, 0, %v2168_v13  ;;  %3856 = vst.msk [vmem:[#allocation3 + $0x78] sm:$0xf] %vm226_vm0, %v7118_v23  ;;  %3857 = vst.msk [vmem:[#allocation3 + $0x7c] sm:$0xf] %vm226_vm0, %v7119_v38  ;;  %v6997_v55 = vcombine.low %v2235_v49, %v2235_v49  ;;  %v7115_v59 = vcombine.low %v3747_v46, %v3747_v46  ;;  %v7116_v36 = vcombine.high %v3747_v46, %v3747_v46  ;;  %v7620_v8 = vpop.f32.mrb[6].mxu1 }
 0x22b   : > { %v6998_v39 = vcombine.low %v2228_v62, %v2228_v62  ;;  %v6999_v10 = vcombine.high %v2228_v62, %v2228_v62  ;;  %2338 = vst.msk [vmem:[#allocation3 + $0x20] sm:$0x1] %vm229_vm1, %v7000_v26  ;;  %v2227_v44 = vsel %vm8298_vm4, 0, %v2161_v25  ;;  %v7559_v56 = vpop.f32.mrb[4].mxu0  ;;  %v3641_v37 = vadd.f32 %v7619_v57, %v9345_v14  ;;  %v3575_v58 = vpop.f32.mrb[7].mxu1 }
 0x22c   : > { %v6995_v61 = vcombine.low %v2227_v44, %v2227_v44  ;;  %v6996_v28 = vcombine.high %v2227_v44, %v2227_v44  ;;  %2335 = vst.msk [vmem:[#allocation3 + $0x14] sm:$0x1] %vm229_vm1, %v6997_v55  ;;  %v2121_v50 = vadd.f32 %v7559_v56, %v9345_v14  ;;  %v2052_v20 = vpop.f32.mrb[5].mxu0  ;;  %v3639_v1 = vadd.f32 %v9345_v14, %v3572_v42 }
 0x22d   : > { %3853 = vst.msk [vmem:[#allocation3 + $0x6c] sm:$0xf] %vm226_vm0, %v7115_v59  ;;  %3854 = vst.msk [vmem:[#allocation3 + $0x70] sm:$0xf] %vm226_vm0, %v7116_v36  ;;  %v2119_v7 = vadd.f32 %v9345_v14, %v2052_v20  ;;  %v7560_v47 = vpop.f32.mrb[6].mxu0  ;;  %v3642_v4 = vadd.f32 %v7620_v8, %v9345_v14  ;;  %v3640_v2 = vadd.f32 %v9345_v14, %v3575_v58  ;;  %v3657_v16 = vmax.f32 %v3641_v37, 0.0 }
 0x22e   : > { %2336 = vst.msk [vmem:[#allocation3 + $0x18] sm:$0xf] %vm226_vm0, %v6998_v39  ;;  %2337 = vst.msk [vmem:[#allocation3 + $0x1c] sm:$0xf] %vm226_vm0, %v6999_v10  ;;  %v2137_v34 = vmax.f32 %v2121_v50, 0.0  ;;  %v2122_v11 = vadd.f32 %v7560_v47, %v9345_v14  ;;  %v2055_v51 = vpop.f32.mrb[7].mxu0 }
 0x22f   : > { %2333 = vst.msk [vmem:[#allocation3 + $0xc] sm:$0xf] %vm226_vm0, %v6995_v61  ;;  %2334 = vst.msk [vmem:[#allocation3 + $0x10] sm:$0xf] %vm226_vm0, %v6996_v28  ;;  %v3655_v17 = vmax.f32 %v3639_v1, 0.0  ;;  %v3658_v48 = vmax.f32 %v3642_v4, 0.0  ;;  %v2120_v35 = vadd.f32 %v9345_v14, %v2055_v51 }
 0x230   : > { %v3656_v54 = vmax.f32 %v3640_v2, 0.0  ;;  %v2138_v33 = vmax.f32 %v2122_v11, 0.0  ;;  %v9391_v63 = vld [vmem:[#allocation3 + $0x80] ss:$0 sps:$4 sm:$0x11]   ;;  %v2135_v24 = vmax.f32 %v2119_v7, 0.0 }
 0x231   : > { %v3670_v5 = vpack.c.bf16 %v3658_v48, %v3657_v16  ;;  %v2136_v53 = vmax.f32 %v2120_v35, 0.0  ;;  %v5868_v18 = vrot.slane %v9391_v63, 1  ;;  %v5634_v36 = vld [vmem:[#allocation3 + $0x78] sm:$0xf]  ;;  %v9407_v8 = vld [vmem:[#allocation3 + $0x7c] sm:$0xf] }
 0x232   : > { %v3669_v27 = vpack.c.bf16 %v3656_v54, %v3655_v17  ;;  %v2150_v22 = vpack.c.bf16 %v2138_v33, %v2137_v34  ;;  %v9393_v12 = vld [vmem:[#allocation3 + $0x20] ss:$0 sps:$4 sm:$0x11]  }
 0x233   : > { %v3697_v29 = vshrl.u32 %v3670_v5, 16  ;;  %v2149_v32 = vpack.c.bf16 %v2136_v53, %v2135_v24  ;;  %v3700_v3 = vshll.u32 %v3670_v5, 16  ;;  %v4419_v40 = vrot.slane %v9393_v12, 1  ;;  %v9416_v1 = vld [vmem:[#allocation3 + $0x20] ss:$0 sps:$4 sm:$0x11]  }
 0x234   : > { %v3690_v15 = vshrl.u32 %v3669_v27, 16  ;;  %v2177_v9 = vshrl.u32 %v2150_v22, 16  ;;  %v2180_v43 = vshll.u32 %v2150_v22, 16  ;;  %v3693_v21 = vshll.u32 %v3669_v27, 16 }
 0x235   : > { %v9396_v60 = vld [vmem:[#allocation3 + $0x1c] sm:$0xf]  ;;  %v3699_v52 = vrot.slane %v3697_v29, 7  ;;  %v2170_v0 = vshrl.u32 %v2149_v32, 16  ;;  %v4208_v45 = vld [vmem:[#allocation3 + $0x18] sm:$0xe]  ;;  %v9429_v29 = vcombine.low %v5634_v36, %v9407_v8 }
 0x236   : > { %v3692_v41 = vrot.slane %v3690_v15, 7  ;;  %v2179_v30 = vrot.slane %v2177_v9, 7  ;;  %v2173_v13 = vshll.u32 %v2149_v32, 16  ;;  %v7180_v19 = vcombine.low %v4208_v45, %v9396_v60  ;;  %v3884_v55 = vld [vmem:[#allocation3 + $0x1c] sm:$0xf] }
 0x237   : > { %v4299_v23 = vshll.u32 %v9393_v12, 16  ;;  %v3702_v38 = vor.u32 %v3700_v3, %v3699_v52  ;;  %v3758_v57 = vsel %vm8298_vm4, %v3699_v52, 0  ;;  %v2172_v26 = vrot.slane %v2170_v0, 7  ;;  %v3905_v37 = vld [vmem:[#allocation3 + $0x18] sm:$0xe] }
 0x238   : > { %v3695_v25 = vor.u32 %v3693_v21, %v3692_v41  ;;  %v2182_v49 = vor.u32 %v2180_v43, %v2179_v30  ;;  %v2238_v46 = vsel %vm8298_vm4, %v2179_v30, 0  ;;  %v7126_v42 = vcombine.low %v3758_v57, %v3758_v57  ;;  %v7623_v59 = vpop.f32.mrb[8].mxu1  ;;  %v4185_v16 = vld [vmem:[#allocation3 + $0x18] sm:$0xf]  ;;  %v5333_v30 = vld [vmem:[#allocation3 + $0x7c] sm:$0xf] }
 0x239   : > { %v3757_v62 = vsel %vm8298_vm4, %v3692_v41, 0  ;;  %v7006_v39 = vcombine.low %v2238_v46, %v2238_v46  ;;  %v3750_v10 = vsel %vm8298_vm4, 0, %v3702_v38  ;;  %v2175_v44 = vor.u32 %v2173_v13, %v2172_v26  ;;  %v3588_v58 = vpop.f32.mrb[9].mxu1  ;;  %v3883_v27 = vld [vmem:[#allocation3 + $0x18] sm:$0xf] }
 0x23a   : > { %v2237_v56 = vsel %vm8298_vm4, %v2172_v26, 0  ;;  %v2230_v61 = vsel %vm8298_vm4, 0, %v2182_v49  ;;  %v7124_v28 = vcombine.low %v3750_v10, %v3750_v10  ;;  %v7125_v50 = vcombine.high %v3750_v10, %v3750_v10  ;;  %3864 = vst.msk [vmem:[#allocation3 + $0x98] sm:$0x1] %vm229_vm1, %v7126_v42  ;;  %v7624_v7 = vpop.f32.mrb[10].mxu1 }
 0x23b   : > { %v7003_v20 = vcombine.low %v2237_v56, %v2237_v56  ;;  %v7004_v47 = vcombine.low %v2230_v61, %v2230_v61  ;;  %v7005_v4 = vcombine.high %v2230_v61, %v2230_v61  ;;  %2344 = vst.msk [vmem:[#allocation3 + $0x38] sm:$0x1] %vm229_vm1, %v7006_v39  ;;  %v2229_v2 = vsel %vm8298_vm4, 0, %v2175_v44  ;;  %v7563_v11 = vpop.f32.mrb[8].mxu0  ;;  %v3591_v51 = vpop.f32.mrb[11].mxu1 }
 0x23c   : > { %v3749_v34 = vsel %vm8298_vm4, 0, %v3695_v25  ;;  %3862 = vst.msk [vmem:[#allocation3 + $0x90] sm:$0xf] %vm226_vm0, %v7124_v28  ;;  %3863 = vst.msk [vmem:[#allocation3 + $0x94] sm:$0xf] %vm226_vm0, %v7125_v50  ;;  %v7001_v17 = vcombine.low %v2229_v2, %v2229_v2  ;;  %v7002_v48 = vcombine.high %v2229_v2, %v2229_v2  ;;  %v2068_v33 = vpop.f32.mrb[9].mxu0  ;;  %v7123_v24 = vcombine.low %v3757_v62, %v3757_v62 }
 0x23d   : > { %2341 = vst.msk [vmem:[#allocation3 + $0x2c] sm:$0x1] %vm229_vm1, %v7003_v20  ;;  %v7121_v35 = vcombine.low %v3749_v34, %v3749_v34  ;;  %v7122_v54 = vcombine.high %v3749_v34, %v3749_v34  ;;  %v4418_v5 = vrot.slane %v7180_v19, 1  ;;  %v7157_v53 = vcombine.low %v3905_v37, %v3884_v55  ;;  %v7564_v22 = vpop.f32.mrb[10].mxu0  ;;  %v5657_v3 = vld [vmem:[#allocation3 + $0x78] sm:$0xe] }
 0x23e   : > { %2342 = vst.msk [vmem:[#allocation3 + $0x30] sm:$0xf] %vm226_vm0, %v7004_v47  ;;  %2343 = vst.msk [vmem:[#allocation3 + $0x34] sm:$0xf] %vm226_vm0, %v7005_v4  ;;  %v9436_v32 = vcombine.low %v4185_v16, %v9396_v60  ;;  %v4118_v15 = vrot.slane %v9416_v1, 1  ;;  %v2125_v9 = vadd.f32 %v7563_v11, %v9345_v14  ;;  %v3645_v43 = vadd.f32 %v7623_v59, %v9345_v14  ;;  %v2071_v52 = vpop.f32.mrb[11].mxu0 }
 0x23f   : > { %2339 = vst.msk [vmem:[#allocation3 + $0x24] sm:$0xf] %vm226_vm0, %v7001_v17  ;;  %2340 = vst.msk [vmem:[#allocation3 + $0x28] sm:$0xf] %vm226_vm0, %v7002_v48  ;;  %v5332_v21 = vld [vmem:[#allocation3 + $0x78] sm:$0xf]  ;;  %v4420_v0 = vsel %vm1031_vm5, %v4418_v5, %v4419_v40  ;;  %v2123_v45 = vadd.f32 %v9345_v14, %v2068_v33  ;;  %v3643_v60 = vadd.f32 %v9345_v14, %v3588_v58 }
 0x240   : > { %3859 = vst.msk [vmem:[#allocation3 + $0x84] sm:$0xf] %vm226_vm0, %v7121_v35  ;;  %3860 = vst.msk [vmem:[#allocation3 + $0x88] sm:$0xf] %vm226_vm0, %v7122_v54  ;;  %v4117_v41 = vrot.slane %v7157_v53, 1  ;;  %4441 = vrot.lane.b32.xlu0 %v4420_v0, %s8234_s24  ;;  %v9448_v19 = vcombine.low %v3883_v27, %v3884_v55  ;;  %v2141_v38 = vmax.f32 %v2125_v9, 0.0  ;;  %v2126_v57 = vadd.f32 %v7564_v22, %v9345_v14 }
 0x241   : > { %3861 = vst.msk [vmem:[#allocation3 + $0x8c] sm:$0x1] %vm229_vm1, %v7123_v24  ;;  %v5354_v13 = vld [vmem:[#allocation3 + $0x78] sm:$0xe]  ;;  %v3646_v26 = vadd.f32 %v7624_v7, %v9345_v14  ;;  %v3661_v49 = vmax.f32 %v3645_v43, 0.0  ;;  %v2139_v46 = vmax.f32 %v2123_v45, 0.0  ;;  %v7290_v42 = vcombine.low %v5657_v3, %v9407_v8 }
 0x242   : > { %v9452_v25 = vld [vmem:[#allocation3 + $0x80] ss:$0 sps:$4 sm:$0x11]   ;;  %v4119_v40 = vsel %vm1031_vm5, %v4117_v41, %v4118_v15  ;;  %v9456_v62 = vld [vmem:[#allocation3 + $0x10] sm:$0xf]  ;;  %v3659_v55 = vmax.f32 %v3643_v60, 0.0  ;;  %v7267_v10 = vcombine.low %v5354_v13, %v5333_v30  ;;  %v9461_v37 = vcombine.low %v5332_v21, %v5333_v30 }
 0x243   : > { %v4207_v59 = vld [vmem:[#allocation3 + $0xc] sm:$0xe]  ;;  %4139 = vrot.lane.b32.xlu1 %v4119_v40, %s8234_s24  ;;  %v2142_v36 = vmax.f32 %v2126_v57, 0.0  ;;  %v3662_v39 = vmax.f32 %v3646_v26, 0.0  ;;  %v5867_v56 = vrot.slane %v7290_v42, 1  ;;  %v2124_v58 = vadd.f32 %v9345_v14, %v2071_v52 }
 0x244   : > { %v9459_v44 = vld [vmem:[#allocation3 + $0x14] ss:$0 sps:$4 sm:$0x11]   ;;  %v3644_v61 = vadd.f32 %v9345_v14, %v3591_v51  ;;  %v5566_v50 = vrot.slane %v7267_v10, 1  ;;  %v7179_v20 = vcombine.low %v4207_v59, %v9456_v62  ;;  %v9466_v7 = vld [vmem:[#allocation3 + $0x10] sm:$0xf] }
 0x245   : > { %v2152_v28 = vpack.c.bf16 %v2142_v36, %v2141_v38  ;;  %v3672_v8 = vpack.c.bf16 %v3662_v39, %v3661_v49  ;;  %v5869_v47 = vsel %vm1031_vm5, %v5867_v56, %v5868_v18  ;;  %v5567_v4 = vrot.slane %v9452_v25, 1  ;;  %v3904_v16 = vld [vmem:[#allocation3 + $0xc] sm:$0xe]  ;;  %v9485_v30 = vld [vmem:[#allocation3 + $0x14] ss:$0 sps:$4 sm:$0x11]  }
 0x246   : > { %v2140_v2 = vmax.f32 %v2124_v58, 0.0  ;;  %v3660_v34 = vmax.f32 %v3644_v61, 0.0  ;;  %5890 = vrot.lane.b32.xlu0 %v5869_v47, %s8234_s24  ;;  %v4416_v51 = vrot.slane %v9459_v44, 1  ;;  %v4415_v18 = vrot.slane %v7179_v20, 1  ;;  %v4183_v60 = vld [vmem:[#allocation3 + $0xc] sm:$0xf] }
 0x247   : > { %v2191_v11 = vshrl.u32 %v2152_v28, 16  ;;  %v2194_v17 = vshll.u32 %v2152_v28, 16  ;;  %v3711_v48 = vshrl.u32 %v3672_v8, 16  ;;  %v3714_v35 = vshll.u32 %v3672_v8, 16  ;;  %v3881_v49 = vld [vmem:[#allocation3 + $0xc] sm:$0xf] }
 0x248   : > { %v5568_v54 = vsel %vm1031_vm5, %v5566_v50, %v5567_v4  ;;  %v2151_v33 = vpack.c.bf16 %v2140_v2, %v2139_v46  ;;  %v3671_v24 = vpack.c.bf16 %v3660_v34, %v3659_v55  ;;  %v7156_v27 = vcombine.low %v3904_v16, %v9466_v7  ;;  %v9477_v22 = vpop.f32.mrb[12].mxu1  ;;  %v5633_v10 = vld [vmem:[#allocation3 + $0x70] sm:$0xf]  ;;  %v5632_v50 = vld [vmem:[#allocation3 + $0x6c] sm:$0xf] }
 0x249   : > { %v2193_v5 = vrot.slane %v2191_v11, 7  ;;  %v3713_v53 = vrot.slane %v3711_v48, 7  ;;  %5588 = vrot.lane.b32.xlu1 %v5568_v54, %s8234_s24  ;;  %v9479_v21 = vpop.f32.mrb[13].mxu1  ;;  %v4417_v36 = vsel %vm1031_vm5, %v4415_v18, %v4416_v51  ;;  %v5656_v20 = vld [vmem:[#allocation3 + $0x6c] sm:$0xe]  ;;  %v9518_v54 = vcombine.low %v4183_v60, %v9456_v62 }
 0x24a   : > { %v2184_v15 = vshrl.u32 %v2151_v33, 16  ;;  %v2187_v9 = vshll.u32 %v2151_v33, 16  ;;  %v3704_v43 = vshrl.u32 %v3671_v24, 16  ;;  %v3707_v3 = vshll.u32 %v3671_v24, 16  ;;  %v9487_v13 = vpop.f32.mrb[14].mxu1 }
 0x24b   : > { %v2196_v52 = vor.u32 %v2194_v17, %v2193_v5  ;;  %v2240_v0 = vsel %vm8298_vm4, %v2193_v5, 0  ;;  %v3716_v41 = vor.u32 %v3714_v35, %v3713_v53  ;;  %v3760_v45 = vsel %vm8298_vm4, %v3713_v53, 0  ;;  %v9489_v46 = vpop.f32.mrb[12].mxu0  ;;  %v9491_v42 = vpop.f32.mrb[15].mxu1  ;;  %v9509_v17 = vld [vmem:[#allocation3 + $0x70] sm:$0xf] }
 0x24c   : > { %v7012_v38 = vcombine.low %v2240_v0, %v2240_v0  ;;  %v7132_v57 = vcombine.low %v3760_v45, %v3760_v45  ;;  %v2186_v26 = vrot.slane %v2184_v15, 7  ;;  %v3706_v40 = vrot.slane %v3704_v43, 7  ;;  %v2084_v56 = vpop.f32.mrb[13].mxu0  ;;  %v9501_v47 = vld [vmem:[#allocation3 + $0x74] ss:$0 sps:$4 sm:$0x11]  }
 0x24d   : > { %v2232_v59 = vsel %vm8298_vm4, 0, %v2196_v52  ;;  %v3752_v55 = vsel %vm8298_vm4, 0, %v3716_v41  ;;  %v4114_v39 = vrot.slane %v7156_v27, 1  ;;  %4439 = vrot.lane.b32.xlu1 %v4417_v36, %s8234_s24  ;;  %v9503_v4 = vpop.f32.mrb[14].mxu0  ;;  %v4115_v33 = vrot.slane %v9485_v30, 1 }
 0x24e   : > { %v7010_v58 = vcombine.low %v2232_v59, %v2232_v59  ;;  %v7011_v61 = vcombine.high %v2232_v59, %v2232_v59  ;;  %2350 = vst.msk [vmem:[#allocation3 + $0x50] sm:$0x1] %vm229_vm1, %v7012_v38  ;;  %v7130_v28 = vcombine.low %v3752_v55, %v3752_v55  ;;  %v7131_v8 = vcombine.high %v3752_v55, %v3752_v55  ;;  %v9511_v48 = vpop.f32.mrb[15].mxu0  ;;  %v5353_v24 = vld [vmem:[#allocation3 + $0x6c] sm:$0xe] }
 0x24f   : > { %3870 = vst.msk [vmem:[#allocation3 + $0xb0] sm:$0x1] %vm229_vm1, %v7132_v57  ;;  %v2189_v2 = vor.u32 %v2187_v9, %v2186_v26  ;;  %v2239_v34 = vsel %vm8298_vm4, %v2186_v26, 0  ;;  %v3709_v16 = vor.u32 %v3707_v3, %v3706_v40  ;;  %v3759_v11 = vsel %vm8298_vm4, %v3706_v40, 0 }
 0x250   : > { %2348 = vst.msk [vmem:[#allocation3 + $0x48] sm:$0xf] %vm226_vm0, %v7010_v58  ;;  %2349 = vst.msk [vmem:[#allocation3 + $0x4c] sm:$0xf] %vm226_vm0, %v7011_v61  ;;  %v7009_v51 = vcombine.low %v2239_v34, %v2239_v34  ;;  %v7129_v35 = vcombine.low %v3759_v11, %v3759_v11  ;;  %v9526_v18 = vcombine.low %v3881_v49, %v9466_v7  ;;  %v5865_v45 = vrot.slane %v9501_v47, 1 }
 0x251   : > { %3868 = vst.msk [vmem:[#allocation3 + $0xa8] sm:$0xf] %vm226_vm0, %v7130_v28  ;;  %3869 = vst.msk [vmem:[#allocation3 + $0xac] sm:$0xf] %vm226_vm0, %v7131_v8  ;;  %v2231_v5 = vsel %vm8298_vm4, 0, %v2189_v2  ;;  %v3751_v53 = vsel %vm8298_vm4, 0, %v3709_v16  ;;  %v7289_v27 = vcombine.low %v5656_v20, %v5633_v10  ;;  %v4116_v52 = vsel %vm1031_vm5, %v4114_v39, %v4115_v33 }
 0x252   : > { %v9528_v15 = vld [vmem:[#allocation3 + $0x74] ss:$0 sps:$4 sm:$0x11]   ;;  %v7007_v9 = vcombine.low %v2231_v5, %v2231_v5  ;;  %v7008_v43 = vcombine.high %v2231_v5, %v2231_v5  ;;  %2347 = vst.msk [vmem:[#allocation3 + $0x44] sm:$0x1] %vm229_vm1, %v7009_v51  ;;  %v7127_v62 = vcombine.low %v3751_v53, %v3751_v53  ;;  %v7128_v3 = vcombine.high %v3751_v53, %v3751_v53 }
 0x253   : > { %3867 = vst.msk [vmem:[#allocation3 + $0xa4] sm:$0x1] %vm229_vm1, %v7129_v35  ;;  %v9533_v0 = vcombine.low %v5632_v50, %v5633_v10  ;;  %v5864_v41 = vrot.slane %v7289_v27, 1  ;;  %4137 = vrot.lane.b32.xlu0 %v4116_v52, %s8234_s24  ;;  %v4292_v7 = vshrl.u32 %v9436_v32, 16  ;;  %v4294_v60 = vshll.u32 %v9436_v32, 16 }
 0x254   : > { %2345 = vst.msk [vmem:[#allocation3 + $0x3c] sm:$0xf] %vm226_vm0, %v7007_v9  ;;  %2346 = vst.msk [vmem:[#allocation3 + $0x40] sm:$0xf] %vm226_vm0, %v7008_v43  ;;  %v4301_v38 = vrot.slane %v4299_v23, 1  ;;  %v7266_v57 = vcombine.low %v5353_v24, %v9509_v17  ;;  %v5564_v40 = vrot.slane %v9528_v15, 1  ;;  %v2129_v12 = vadd.f32 %v9489_v46, %v9345_v14 }
 0x255   : > { %3865 = vst.msk [vmem:[#allocation3 + $0x9c] sm:$0xf] %vm226_vm0, %v7127_v62  ;;  %3866 = vst.msk [vmem:[#allocation3 + $0xa0] sm:$0xf] %vm226_vm0, %v7128_v3  ;;  %v5866_v26 = vsel %vm1031_vm5, %v5864_v41, %v5865_v45  ;;  %v5741_v49 = vshrl.u32 %v9429_v29, 16  ;;  %v5743_v59 = vshll.u32 %v9429_v29, 16  ;;  %v3649_v10 = vadd.f32 %v9477_v22, %v9345_v14 }
 0x256   : > { %5888 = vrot.lane.b32.xlu1 %v5866_v26, %s8234_s24  ;;  %v4296_v55 = vrot.slane %v4294_v60, 1  ;;  %v5563_v36 = vrot.slane %v7266_v57, 1  ;;  %v5748_v39 = vshll.u32 %v9391_v63, 16  ;;  %v2127_v58 = vadd.f32 %v9345_v14, %v2084_v56 }
 0x257   : > { %v5745_v23 = vrot.slane %v5743_v59, 1  ;;  %v3647_v61 = vadd.f32 %v9345_v14, %v9479_v21  ;;  %v2145_v20 = vmax.f32 %v2129_v12, 0.0  ;;  %v3665_v34 = vmax.f32 %v3649_v10, 0.0 }
 0x258   : > { %v4297_v28 = vor.u32 %v4296_v55, %v4292_v7  ;;  %v5565_v8 = vsel %vm1031_vm5, %v5563_v36, %v5564_v40  ;;  %v5750_v50 = vrot.slane %v5748_v39, 1  ;;  %v2143_v63 = vmax.f32 %v2127_v58, 0.0 }
 0x259   : > { %v5746_v2 = vor.u32 %v5745_v23, %v5741_v49  ;;  %v3663_v16 = vmax.f32 %v3647_v61, 0.0  ;;  %v2130_v22 = vadd.f32 %v9503_v4, %v9345_v14  ;;  %v3650_v56 = vadd.f32 %v9487_v13, %v9345_v14 }
 0x25a   : > { %v4302_v46 = vsel %vm894_vm6, %v4297_v28, %v4301_v38  ;;  %5586 = vrot.lane.b32.xlu1 %v5565_v8, %s8234_s24  ;;  %v5449_v21 = vshrl.u32 %v9461_v37, 16  ;;  %v5451_v51 = vshll.u32 %v9461_v37, 16  ;;  %v5456_v35 = vshll.u32 %v9452_v25, 16  ;;  %v8186_v25 = vld [vmem:[%s10721_s3 + $0x10] sm:$0xff]  }
 0x25b   : > { %4377 = vrot.lane.b32.xlu0 %v4302_v46, %s8235_s25  ;;  %v5751_v11 = vsel %vm894_vm6, %v5746_v2, %v5750_v50  ;;  %v4000_v33 = vshrl.u32 %v9448_v19, 16  ;;  %v2146_v24 = vmax.f32 %v2130_v22, 0.0  ;;  %v3666_v5 = vmax.f32 %v3650_v56, 0.0  ;;  %7629 = vmatprep.subr.bf16.mxu0 %v8186_v25 }
 0x25c   : > { %v4002_v53 = vshll.u32 %v9448_v19, 16  ;;  %v4007_v4 = vshll.u32 %v9416_v1, 16  ;;  %v5453_v27 = vrot.slane %v5451_v51, 1  ;;  %v5458_v13 = vrot.slane %v5456_v35, 1  ;;  %7689 = vmatprep.subr.bf16.mxu1 %v8186_v25  ;;  %7630 = vmatpush3.bf16.msra.mxu0 %v8186_v25 }
 0x25d   : > { %v2128_v9 = vadd.f32 %v9345_v14, %v9511_v48  ;;  %v3648_v43 = vadd.f32 %v9345_v14, %v9491_v42  ;;  %v2154_v62 = vpack.c.bf16 %v2146_v24, %v2145_v20  ;;  %v3674_v3 = vpack.c.bf16 %v3666_v5, %v3665_v34  ;;  %7690 = vmatpush3.bf16.msra.mxu1 %v8186_v25  ;;  %v5330_v20 = vld [vmem:[#allocation3 + $0x6c] sm:$0xf]  ;;  %v9613_v25 = vld [vmem:[#allocation3 + $0x34] sm:$0xf] }
 0x25e   : > { %v4004_v52 = vrot.slane %v4002_v53, 1  ;;  %v4009_v41 = vrot.slane %v4007_v4, 1  ;;  %v5454_v45 = vor.u32 %v5453_v27, %v5449_v21  ;;  %v5729_v60 = vshrl.u32 %v9533_v0, 16 }
 0x25f   : > { %5826 = vrot.lane.b32.xlu0 %v5751_v11, %s8235_s25  ;;  %v2144_v1 = vmax.f32 %v2128_v9, 0.0  ;;  %v3664_v7 = vmax.f32 %v3648_v43, 0.0  ;;  %v2205_v48 = vshrl.u32 %v2154_v62, 16  ;;  %v2208_v38 = vshll.u32 %v2154_v62, 16 }
 0x260   : > { %v3725_v57 = vshrl.u32 %v3674_v3, 16  ;;  %v3728_v14 = vshll.u32 %v3674_v3, 16  ;;  %v5459_v42 = vsel %vm894_vm6, %v5454_v45, %v5458_v13  ;;  %v4005_v26 = vor.u32 %v4004_v52, %v4000_v33 }
 0x261   : > { %v2153_v40 = vpack.c.bf16 %v2144_v1, %v2143_v63  ;;  %v3673_v49 = vpack.c.bf16 %v3664_v7, %v3663_v16  ;;  %v2207_v59 = vrot.slane %v2205_v48, 7  ;;  %5524 = vrot.lane.b32.xlu1 %v5459_v42, %s8235_s25  ;;  %v5731_v36 = vshll.u32 %v9533_v0, 16  ;;  %v8192_v16 = vld [vmem:[%s10721_s3 + $0x18] sm:$0xff]   ;;  %v5337_v42 = vld [vmem:[#allocation3 + $0x94] sm:$0xf] }
 0x262   : > { %v3727_v55 = vrot.slane %v3725_v57, 7  ;;  %v5736_v39 = vshll.u32 %v9501_v47, 16  ;;  %v4010_v12 = vsel %vm894_vm6, %v4005_v26, %v4009_v41  ;;  %7631 = vmatprep.subr.bf16.mxu0 %v8192_v16  ;;  %7691 = vmatprep.subr.bf16.mxu1 %v8192_v16  ;;  %v9607_v27 = vcombine.low %v5330_v20, %v9509_v17  ;;  %v3907_v41 = vld [vmem:[#allocation3 + $0x30] sm:$0xe]  ;;  %v9643_v20 = vld [vmem:[#allocation3 + $0x28] sm:$0xf] }
 0x263   : > { %v2198_v23 = vshrl.u32 %v2153_v40, 16  ;;  %v2201_v10 = vshll.u32 %v2153_v40, 16  ;;  %v3718_v58 = vshrl.u32 %v3673_v49, 16  ;;  %v2210_v61 = vor.u32 %v2208_v38, %v2207_v59  ;;  %4075 = vrot.lane.b32.xlu0 %v4010_v12, %s8235_s25  ;;  %7632 = vmatpush3.bf16.msra.mxu0 %v8192_v16  ;;  %v9638_v12 = vld [vmem:[#allocation3 + $0x98] ss:$0 sps:$4 sm:$0x11]  }
 0x264   : > { %v2242_v28 = vsel %vm8298_vm4, %v2207_v59, 0  ;;  %v3730_v8 = vor.u32 %v3728_v14, %v3727_v55  ;;  %v3762_v50 = vsel %vm8298_vm4, %v3727_v55, 0  ;;  %v3721_v56 = vshll.u32 %v3673_v49, 16  ;;  %7692 = vmatpush3.bf16.msra.mxu1 %v8192_v16  ;;  %v5356_v49 = vld [vmem:[#allocation3 + $0x90] sm:$0xe]  ;;  %v9634_v59 = vpop.permute.xlu1 %4546 }
 0x265   : > { %v7018_v2 = vcombine.low %v2242_v28, %v2242_v28  ;;  %v7138_v34 = vcombine.low %v3762_v50, %v3762_v50  ;;  %v2200_v63 = vrot.slane %v2198_v23, 7  ;;  %v3720_v47 = vrot.slane %v3718_v58, 7  ;;  %v4190_v50 = vld [vmem:[#allocation3 + $0x34] sm:$0xf]  ;;  %v4210_v16 = vld [vmem:[#allocation3 + $0x30] sm:$0xe] }
 0x266   : > { %v2234_v46 = vsel %vm8298_vm4, 0, %v2210_v61  ;;  %v3754_v22 = vsel %vm8298_vm4, 0, %v3730_v8  ;;  %v5733_v21 = vrot.slane %v5731_v36, 1  ;;  %v5738_v3 = vrot.slane %v5736_v39, 1 }
 0x267   : > { %v7016_v11 = vcombine.low %v2234_v46, %v2234_v46  ;;  %v7017_v51 = vcombine.high %v2234_v46, %v2234_v46  ;;  %2356 = vst.msk [vmem:[#allocation3 + $0x68] sm:$0x1] %vm229_vm1, %v7018_v2  ;;  %v7136_v35 = vcombine.low %v3754_v22, %v3754_v22  ;;  %v7137_v33 = vcombine.high %v3754_v22, %v3754_v22  ;;  %v4209_v2 = vld [vmem:[#allocation3 + $0x24] sm:$0xe] }
 0x268   : > { %3876 = vst.msk [vmem:[#allocation3 + $0xc8] sm:$0x1] %vm229_vm1, %v7138_v34  ;;  %v2203_v24 = vor.u32 %v2201_v10, %v2200_v63  ;;  %v2241_v5 = vsel %vm8298_vm4, %v2200_v63, 0  ;;  %v3723_v53 = vor.u32 %v3721_v56, %v3720_v47  ;;  %v3761_v4 = vsel %vm8298_vm4, %v3720_v47, 0  ;;  %v5336_v47 = vld [vmem:[#allocation3 + $0x90] sm:$0xf] }
 0x269   : > { %2354 = vst.msk [vmem:[#allocation3 + $0x60] sm:$0xf] %vm226_vm0, %v7016_v11  ;;  %2355 = vst.msk [vmem:[#allocation3 + $0x64] sm:$0xf] %vm226_vm0, %v7017_v51  ;;  %v7015_v13 = vcombine.low %v2241_v5, %v2241_v5  ;;  %v7135_v9 = vcombine.low %v3761_v4, %v3761_v4  ;;  %v5734_v43 = vor.u32 %v5733_v21, %v5729_v60  ;;  %v4282_v52 = vshll.u32 %v9518_v54, 16  ;;  %v9654_v5 = vpop.permute.xlu1 %5995 }
 0x26a   : > { %3874 = vst.msk [vmem:[#allocation3 + $0xc0] sm:$0xf] %vm226_vm0, %v7136_v35  ;;  %3875 = vst.msk [vmem:[#allocation3 + $0xc4] sm:$0xf] %vm226_vm0, %v7137_v33  ;;  %v2233_v62 = vsel %vm8298_vm4, 0, %v2203_v24  ;;  %v3753_v17 = vsel %vm8298_vm4, 0, %v3723_v53  ;;  %v7159_v40 = vcombine.low %v3907_v41, %v9613_v25  ;;  %v7269_v8 = vcombine.low %v5356_v49, %v5337_v42 }
 0x26b   : > { %v7013_v45 = vcombine.low %v2233_v62, %v2233_v62  ;;  %v7014_v1 = vcombine.high %v2233_v62, %v2233_v62  ;;  %2353 = vst.msk [vmem:[#allocation3 + $0x5c] sm:$0x1] %vm229_vm1, %v7015_v13  ;;  %v7133_v7 = vcombine.low %v3753_v17, %v3753_v17  ;;  %v7134_v48 = vcombine.high %v3753_v17, %v3753_v17  ;;  %v9622_v60 = vld [vmem:[#allocation3 + $0x38] ss:$0 sps:$4 sm:$0x11]  }
 0x26c   : > { %3873 = vst.msk [vmem:[#allocation3 + $0xbc] sm:$0x1] %vm229_vm1, %v7135_v9  ;;  %v5739_v38 = vsel %vm894_vm6, %v5734_v43, %v5738_v3  ;;  %v4280_v57 = vshrl.u32 %v9518_v54, 16  ;;  %v4284_v31 = vrot.slane %v4282_v52, 1  ;;  %v4287_v14 = vshll.u32 %v9459_v44, 16 }
 0x26d   : > { %2351 = vst.msk [vmem:[#allocation3 + $0x54] sm:$0xf] %vm226_vm0, %v7013_v45  ;;  %2352 = vst.msk [vmem:[#allocation3 + $0x58] sm:$0xf] %vm226_vm0, %v7014_v1  ;;  %5824 = vrot.lane.b32.xlu1 %v5739_v38, %s8235_s25  ;;  %v3990_v26 = vshll.u32 %v9526_v18, 16  ;;  %v3988_v36 = vshrl.u32 %v9526_v18, 16  ;;  %v7181_v33 = vcombine.low %v4209_v2, %v9643_v20  ;;  %v7182_v9 = vcombine.low %v4210_v16, %v4190_v50 }
 0x26e   : > { %3871 = vst.msk [vmem:[#allocation3 + $0xb4] sm:$0xf] %vm226_vm0, %v7133_v7  ;;  %3872 = vst.msk [vmem:[#allocation3 + $0xb8] sm:$0xf] %vm226_vm0, %v7134_v48  ;;  %v4285_v55 = vor.u32 %v4284_v31, %v4280_v57  ;;  %v4289_v44 = vrot.slane %v4287_v14, 1  ;;  %v3995_v39 = vshll.u32 %v9485_v30, 16  ;;  %v9661_v45 = vcombine.low %v5336_v47, %v5337_v42 }
 0x26f   : > { %v3992_v23 = vrot.slane %v3990_v26, 1  ;;  %v4123_v10 = vrot.slane %v7159_v40, 1  ;;  %v4124_v58 = vrot.slane %v9622_v60, 1  ;;  %v5439_v61 = vshll.u32 %v9607_v27, 16  ;;  %v5637_v51 = vld [vmem:[#allocation3 + $0x88] sm:$0xf] }
 0x270   : > { %v4290_v28 = vsel %vm894_vm6, %v4285_v55, %v4289_v44  ;;  %v9647_v46 = vld [vmem:[#allocation3 + $0x2c] ss:$0 sps:$4 sm:$0x11]   ;;  %v3997_v22 = vrot.slane %v3995_v39, 1  ;;  %v5437_v56 = vshrl.u32 %v9607_v27, 16  ;;  %v5444_v21 = vshll.u32 %v9528_v15, 16 }
 0x271   : > { %4375 = vrot.lane.b32.xlu0 %v4290_v28, %s8235_s25  ;;  %v3993_v34 = vor.u32 %v3992_v23, %v3988_v36  ;;  %v4125_v30 = vsel %vm1031_vm5, %v4123_v10, %v4124_v58  ;;  %v5441_v63 = vrot.slane %v5439_v61, 1  ;;  %v5572_v11 = vrot.slane %v7269_v8, 1  ;;  %v5658_v24 = vld [vmem:[#allocation3 + $0x84] sm:$0xe]  ;;  %v4189_v43 = vld [vmem:[#allocation3 + $0x30] sm:$0xf]  ;;  %v9679_v10 = vpop.permute.xlu1 %5997 }
 0x272   : > { %4143 = vrot.lane.b32.xlu1 %v4125_v30, %s8234_s24  ;;  %v5573_v35 = vrot.slane %v9638_v12, 1  ;;  %v9657_v13 = vld [vmem:[#allocation3 + $0x38] ss:$0 sps:$4 sm:$0x11]   ;;  %v5639_v62 = vld [vmem:[#allocation3 + $0x94] sm:$0xf]  ;;  %v7291_v1 = vcombine.low %v5658_v24, %v5637_v51  ;;  %v9670_v26 = vcombine.low %v4189_v43, %v4190_v50 }
 0x273   : > { %v3998_v53 = vsel %vm894_vm6, %v3993_v34, %v3997_v22  ;;  %v5442_v4 = vor.u32 %v5441_v63, %v5437_v56  ;;  %v5659_v17 = vld [vmem:[#allocation3 + $0x90] sm:$0xe]  ;;  %v4421_v3 = vrot.slane %v7181_v33, 1  ;;  %v5636_v52 = vld [vmem:[#allocation3 + $0x84] sm:$0xf]  ;;  %v5446_v41 = vrot.slane %v5444_v21, 1 }
 0x274   : > { %v5574_v15 = vsel %vm1031_vm5, %v5572_v11, %v5573_v35  ;;  %10786 = vst [vmem:[#allocation6_spill] sm:$0xff] %v9661_v45  ;;  %v9664_v7 = vld [vmem:[#allocation3 + $0x88] sm:$0xf]  ;;  %v5355_v48 = vld [vmem:[#allocation3 + $0x84] sm:$0xe]  ;;  %v4422_v38 = vrot.slane %v9647_v46, 1  ;;  %v7292_v49 = vcombine.low %v5659_v17, %v5639_v62  ;;  %v9674_v55 = vcombine.low %v5636_v52, %v5637_v51 }
 0x275   : > { %4073 = vrot.lane.b32.xlu0 %v3998_v53, %s8235_s25  ;;  %v9667_v57 = vld [vmem:[#allocation3 + $0x8c] ss:$0 sps:$4 sm:$0x11]   ;;  %v5447_v31 = vsel %vm894_vm6, %v5442_v4, %v5446_v41  ;;  %v4424_v14 = vrot.slane %v7182_v9, 1  ;;  %10787 = vst [vmem:[#allocation8_spill] sm:$0xff] %v9670_v26  ;;  %v5870_v44 = vrot.slane %v7291_v1, 1  ;;  %v7268_v36 = vcombine.low %v5355_v48, %v9664_v7  ;;  %v9707_v9 = vpop.permute.xlu1 %4550 }
 0x276   : > { %5592 = vrot.lane.b32.xlu1 %v5574_v15, %s8234_s24  ;;  %v5638_v40 = vld [vmem:[#allocation3 + $0x90] sm:$0xf]  ;;  %v4423_v42 = vsel %vm1031_vm5, %v4421_v3, %v4422_v38  ;;  %10788 = vst [vmem:[#allocation7_spill] sm:$0xff] %v9674_v55  ;;  %v9677_v39 = vld [vmem:[#allocation3 + $0x28] sm:$0xf]  ;;  %v4425_v58 = vrot.slane %v9657_v13, 1 }
 0x277   : > { %v3906_v23 = vld [vmem:[#allocation3 + $0x24] sm:$0xe]  ;;  %v9683_v61 = vld [vmem:[#allocation3 + $0x98] ss:$0 sps:$4 sm:$0x11]   ;;  %v5475_v28 = vshll.u32 %v9661_v45, 16  ;;  %v9686_v8 = vcombine.low %v5638_v40, %v5639_v62 }
 0x278   : > { %v5871_v50 = vrot.slane %v9667_v57, 1  ;;  %v9689_v2 = vld [vmem:[#allocation3 + $0x8c] ss:$0 sps:$4 sm:$0x11]   ;;  %v3887_v34 = vld [vmem:[#allocation3 + $0x30] sm:$0xf]  ;;  %v4426_v30 = vsel %vm1031_vm5, %v4424_v14, %v4425_v58  ;;  %v7158_v47 = vcombine.low %v3906_v23, %v9677_v39 }
 0x279   : > { %5522 = vrot.lane.b32.xlu0 %v5447_v31, %s8235_s25  ;;  %10789 = vst [vmem:[#allocation9_spill] sm:$0xff] %v9686_v8  ;;  %v5873_v63 = vrot.slane %v7292_v49, 1  ;;  %v4318_v16 = vshll.u32 %v9670_v26, 16  ;;  %v5569_v56 = vrot.slane %v7268_v36, 1  ;;  %v5477_v21 = vrot.slane %v5475_v28, 1  ;;  %10791 = vst [vmem:[#allocation12_spill] sm:$0xff] %v9707_v9 }
 0x27a   : > { %4443 = vrot.lane.b32.xlu1 %v4423_v42, %s8234_s24  ;;  %v5872_v22 = vsel %vm1031_vm5, %v5870_v44, %v5871_v50  ;;  %v5755_v11 = vshll.u32 %v9674_v55, 16  ;;  %v5874_v51 = vrot.slane %v9683_v61, 1  ;;  %v9699_v35 = vld [vmem:[#allocation3 + $0x2c] ss:$0 sps:$4 sm:$0x11]   ;;  %v9702_v33 = vcombine.low %v3887_v34, %v9613_v25 }
 0x27b   : > { %v5570_v24 = vrot.slane %v9689_v2, 1  ;;  %v5473_v53 = vshrl.u32 %v9661_v45, 16  ;;  %v5480_v4 = vshll.u32 %v9638_v12, 16  ;;  %v4187_v43 = vld [vmem:[#allocation3 + $0x24] sm:$0xf]  ;;  %v4120_v17 = vrot.slane %v7158_v47, 1 }
 0x27c   : > { %10790 = vst [vmem:[#allocation10_spill] sm:$0xff] %v9702_v33  ;;  %v5875_v62 = vsel %vm1031_vm5, %v5873_v63, %v5874_v51  ;;  %v4320_v15 = vrot.slane %v4318_v16, 1  ;;  %v5767_v3 = vshll.u32 %v9686_v8, 16  ;;  %v5757_v41 = vrot.slane %v5755_v11, 1  ;;  %v9713_v1 = vld [vmem:[#allocation3 + $0x4c] sm:$0xf]  ;;  %v9729_v63 = vpop.permute.xlu1 %5999 }
 0x27d   : > { %4445 = vrot.lane.b32.xlu0 %v4426_v30, %s8234_s24  ;;  %v5571_v25 = vsel %vm1031_vm5, %v5569_v56, %v5570_v24  ;;  %v5478_v52 = vor.u32 %v5477_v21, %v5473_v53  ;;  %v4121_v12 = vrot.slane %v9699_v35, 1  ;;  %v4316_v48 = vshrl.u32 %v9670_v26, 16  ;;  %v3909_v31 = vld [vmem:[#allocation3 + $0x48] sm:$0xe]  ;;  %v3885_v36 = vld [vmem:[#allocation3 + $0x24] sm:$0xf] }
 0x27e   : > { %5892 = vrot.lane.b32.xlu1 %v5872_v22, %s8234_s24  ;;  %v4323_v38 = vshll.u32 %v9657_v13, 16  ;;  %v9720_v14 = vcombine.low %v4187_v43, %v9643_v20  ;;  %v5482_v40 = vrot.slane %v5480_v4, 1  ;;  %v5753_v49 = vshrl.u32 %v9674_v55, 16  ;;  %v5341_v34 = vld [vmem:[#allocation3 + $0xac] sm:$0xf]  ;;  %10793 = vst [vmem:[#allocation13_spill] sm:$0xff] %v9729_v63 }
 0x27f   : > { %v5760_v42 = vshll.u32 %v9667_v57, 16  ;;  %v4122_v44 = vsel %vm1031_vm5, %v4120_v17, %v4121_v12  ;;  %v4321_v23 = vor.u32 %v4320_v15, %v4316_v48  ;;  %v5769_v58 = vrot.slane %v5767_v3, 1  ;;  %v5358_v30 = vld [vmem:[#allocation3 + $0xa8] sm:$0xe]  ;;  %v5334_v11 = vld [vmem:[#allocation3 + $0x84] sm:$0xf] }
 0x280   : > { %10792 = vst [vmem:[#allocation11_spill] sm:$0xff] %v9720_v14  ;;  %v4026_v28 = vshll.u32 %v9702_v33, 16  ;;  %v5483_v13 = vsel %vm894_vm6, %v5478_v52, %v5482_v40  ;;  %v5758_v50 = vor.u32 %v5757_v41, %v5753_v49  ;;  %v7161_v20 = vcombine.low %v3909_v31, %v9713_v1  ;;  %v9737_v21 = vld [vmem:[#allocation3 + $0x50] ss:$0 sps:$4 sm:$0x11]   ;;  %v9754_v48 = vpop.permute.xlu1 %6001 }
 0x281   : > { %5894 = vrot.lane.b32.xlu0 %v5875_v62, %s8234_s24  ;;  %v4325_v57 = vrot.slane %v4323_v38, 1  ;;  %v5765_v47 = vshrl.u32 %v9686_v8, 16  ;;  %v5772_v16 = vshll.u32 %v9683_v61, 16  ;;  %v9735_v22 = vcombine.low %v3885_v36, %v9677_v39  ;;  %v9743_v61 = vld [vmem:[#allocation3 + $0x40] sm:$0xf]  ;;  %10796 = vst [vmem:[#allocation15_spill] sm:$0xff] %v9754_v48 }
 0x282   : > { %5590 = vrot.lane.b32.xlu1 %v5571_v25, %s8234_s24  ;;  %v5762_v56 = vrot.slane %v5760_v42, 1  ;;  %v4028_v53 = vrot.slane %v4026_v28, 1  ;;  %v4306_v4 = vshll.u32 %v9720_v14, 16  ;;  %v4129_v62 = vrot.slane %v7161_v20, 1  ;;  %v4211_v39 = vld [vmem:[#allocation3 + $0x3c] sm:$0xe] }
 0x283   : > { %10794 = vst [vmem:[#allocation4_spill] sm:$0xff] %v9735_v22  ;;  %v4326_v51 = vsel %vm894_vm6, %v4321_v23, %v4325_v57  ;;  %v5770_v24 = vor.u32 %v5769_v58, %v5765_v47  ;;  %v7271_v17 = vcombine.low %v5358_v30, %v5341_v34  ;;  %v5774_v15 = vrot.slane %v5772_v16, 1  ;;  %v9752_v12 = vld [vmem:[#allocation3 + $0xb0] ss:$0 sps:$4 sm:$0x11]  }
 0x284   : > { %v5763_v43 = vsel %vm894_vm6, %v5758_v50, %v5762_v56  ;;  %v4024_v3 = vshrl.u32 %v9702_v33, 16  ;;  %v4031_v25 = vshll.u32 %v9622_v60, 16  ;;  %v9749_v52 = vcombine.low %v5334_v11, %v9664_v7  ;;  %v5340_v49 = vld [vmem:[#allocation3 + $0xa8] sm:$0xf]  ;;  %v5641_v36 = vld [vmem:[#allocation3 + $0xa0] sm:$0xf] }
 0x285   : > { %4141 = vrot.lane.b32.xlu0 %v4122_v44, %s8234_s24  ;;  %v4130_v41 = vrot.slane %v9737_v21, 1  ;;  %v5775_v38 = vsel %vm894_vm6, %v5770_v24, %v5774_v15  ;;  %v4308_v40 = vrot.slane %v4306_v4, 1  ;;  %v4014_v42 = vshll.u32 %v9735_v22, 16  ;;  %v9765_v20 = vld [vmem:[#allocation3 + $0x44] ss:$0 sps:$4 sm:$0x11]   ;;  %v9775_v4 = vpop.permute.xlu1 %4554 }
 0x286   : > { %5528 = vrot.lane.b32.xlu1 %v5483_v13, %s8235_s25  ;;  %10795 = vst [vmem:[#allocation14_spill] sm:$0xff] %v9749_v52  ;;  %v4029_v31 = vor.u32 %v4028_v53, %v4024_v3  ;;  %v5578_v44 = vrot.slane %v7271_v17, 1  ;;  %v7183_v7 = vcombine.low %v4211_v39, %v9743_v61  ;;  %v4033_v23 = vrot.slane %v4031_v25, 1  ;;  %v5660_v13 = vld [vmem:[#allocation3 + $0x9c] sm:$0xe]  ;;  %10798 = vst [vmem:[#allocation17_spill] sm:$0xff] %v9775_v4 }
 0x287   : > { %v4131_v60 = vsel %vm1031_vm5, %v4129_v62, %v4130_v41  ;;  %v4304_v58 = vshrl.u32 %v9720_v14, 16  ;;  %v4311_v28 = vshll.u32 %v9647_v46, 16  ;;  %v5579_v50 = vrot.slane %v9752_v12, 1  ;;  %v5640_v24 = vld [vmem:[#allocation3 + $0x9c] sm:$0xf] }
 0x288   : > { %v4034_v30 = vsel %vm894_vm6, %v4029_v31, %v4033_v23  ;;  %v4016_v47 = vrot.slane %v4014_v42, 1  ;;  %v5463_v16 = vshll.u32 %v9749_v52, 16  ;;  %v9770_v56 = vcombine.low %v5340_v49, %v5341_v34  ;;  %v9773_v53 = vld [vmem:[#allocation3 + $0xa0] sm:$0xf]  ;;  %v5357_v39 = vld [vmem:[#allocation3 + $0x9c] sm:$0xe] }
 0x289   : > { %4381 = vrot.lane.b32.xlu0 %v4326_v51, %s8235_s25  ;;  %v4309_v57 = vor.u32 %v4308_v40, %v4304_v58  ;;  %v5580_v11 = vsel %vm1031_vm5, %v5578_v44, %v5579_v50  ;;  %v4427_v51 = vrot.slane %v7183_v7, 1  ;;  %v7293_v46 = vcombine.low %v5660_v13, %v5641_v36  ;;  %v9781_v15 = vld [vmem:[#allocation3 + $0xa4] ss:$0 sps:$4 sm:$0x11]   ;;  %v4194_v49 = vld [vmem:[#allocation3 + $0x4c] sm:$0xf] }
 0x28a   : > { %5828 = vrot.lane.b32.xlu1 %v5763_v43, %s8235_s25  ;;  %10797 = vst [vmem:[#allocation16_spill] sm:$0xff] %v9770_v56  ;;  %v4313_v43 = vrot.slane %v4311_v28, 1  ;;  %v4012_v62 = vshrl.u32 %v9735_v22, 16  ;;  %v4019_v17 = vshll.u32 %v9699_v35, 16  ;;  %v4428_v34 = vrot.slane %v9765_v20, 1  ;;  %v9796_v28 = vpop.permute.xlu1 %6003 }
 0x28b   : > { %v5465_v41 = vrot.slane %v5463_v16, 1  ;;  %v5876_v40 = vrot.slane %v7293_v46, 1  ;;  %v4212_v42 = vld [vmem:[#allocation3 + $0x48] sm:$0xe]  ;;  %v7270_v35 = vcombine.low %v5357_v39, %v9773_v53  ;;  %v5461_v7 = vshrl.u32 %v9749_v52, 16  ;;  %10800 = vst [vmem:[#allocation19_spill] sm:$0xff] %v9796_v28 }
 0x28c   : > { %v4314_v3 = vsel %vm894_vm6, %v4309_v57, %v4313_v43  ;;  %v4017_v25 = vor.u32 %v4016_v47, %v4012_v62  ;;  %v4429_v31 = vsel %vm1031_vm5, %v4427_v51, %v4428_v34  ;;  %v4021_v44 = vrot.slane %v4019_v17, 1  ;;  %v9794_v58 = vld [vmem:[#allocation3 + $0xa4] ss:$0 sps:$4 sm:$0x11]   ;;  %v4193_v57 = vld [vmem:[#allocation3 + $0x48] sm:$0xf] }
 0x28d   : > { %5830 = vrot.lane.b32.xlu0 %v5775_v38, %s8235_s25  ;;  %v9784_v38 = vcombine.low %v5640_v24, %v5641_v36  ;;  %v5468_v23 = vshll.u32 %v9689_v2, 16  ;;  %v5877_v36 = vrot.slane %v9781_v15, 1  ;;  %v5466_v50 = vor.u32 %v5465_v41, %v5461_v7  ;;  %v5643_v47 = vld [vmem:[#allocation3 + $0xac] sm:$0xf]  ;;  %v5661_v16 = vld [vmem:[#allocation3 + $0xa8] sm:$0xe] }
 0x28e   : > { %4147 = vrot.lane.b32.xlu1 %v4131_v60, %s8234_s24  ;;  %v5499_v60 = vshll.u32 %v9770_v56, 16  ;;  %v4022_v13 = vsel %vm894_vm6, %v4017_v25, %v4021_v44  ;;  %v5575_v51 = vrot.slane %v7270_v35, 1  ;;  %v9803_v43 = vld [vmem:[#allocation3 + $0x50] ss:$0 sps:$4 sm:$0x11]   ;;  %v5576_v17 = vrot.slane %v9794_v58, 1 }
 0x28f   : > { %10799 = vst [vmem:[#allocation18_spill] sm:$0xff] %v9784_v38  ;;  %v5779_v2 = vshll.u32 %v9784_v38, 16  ;;  %v5470_v46 = vrot.slane %v5468_v23, 1  ;;  %v5642_v62 = vld [vmem:[#allocation3 + $0xa8] sm:$0xf]  ;;  %v5497_v39 = vshrl.u32 %v9770_v56, 16 }
 0x290   : > { %v5501_v24 = vrot.slane %v5499_v60, 1  ;;  %v5504_v34 = vshll.u32 %v9752_v12, 16  ;;  %v5577_v35 = vsel %vm1031_vm5, %v5575_v51, %v5576_v17  ;;  %v5329_v7 = vld [vmem:[#allocation3 + $0x64] sm:$0xf]  ;;  %v5352_v23 = vld [vmem:[#allocation3 + $0x60] sm:$0xe] }
 0x291   : > { %4079 = vrot.lane.b32.xlu0 %v4034_v30, %s8235_s25  ;;  %v7184_v30 = vcombine.low %v4212_v42, %v4194_v49  ;;  %v5471_v25 = vsel %vm894_vm6, %v5466_v50, %v5470_v46  ;;  %v3908_v42 = vld [vmem:[#allocation3 + $0x3c] sm:$0xe]  ;;  %v5781_v44 = vrot.slane %v5779_v2, 1  ;;  %v4431_v12 = vrot.slane %v9803_v43, 1  ;;  %v3891_v51 = vld [vmem:[#allocation3 + $0x48] sm:$0xf] }
 0x292   : > { %5596 = vrot.lane.b32.xlu1 %v5580_v11, %s8234_s24  ;;  %v5878_v11 = vsel %vm1031_vm5, %v5876_v40, %v5877_v36  ;;  %v7294_v40 = vcombine.low %v5661_v16, %v5643_v47  ;;  %v5502_v60 = vor.u32 %v5501_v24, %v5497_v39  ;;  %v9815_v36 = vpop.permute.xlu1 %6005  ;;  %v5506_v50 = vrot.slane %v5504_v34, 1  ;;  %v9825_v16 = vld [vmem:[#allocation3 + $0x44] ss:$0 sps:$4 sm:$0x11]   ;;  %v5328_v34 = vld [vmem:[#allocation3 + $0x60] sm:$0xf] }
 0x293   : > { %v4430_v41 = vrot.slane %v7184_v30, 1  ;;  %10802 = vst [vmem:[#allocation21_spill] sm:$0xff] %v9815_v36  ;;  %v5777_v30 = vshrl.u32 %v9784_v38, 16  ;;  %v7265_v17 = vcombine.low %v5352_v23, %v5329_v7  ;;  %v9832_v39 = vld [vmem:[#allocation3 + $0x68] ss:$0 sps:$4 sm:$0x11]  }
 0x294   : > { %v5879_v2 = vrot.slane %v7294_v40, 1  ;;  %v9841_v40 = vcombine.low %v3891_v51, %v9713_v1  ;;  %v5644_v6 = vld [vmem:[#allocation3 + $0xb4] sm:$0xf]  ;;  %v4127_v4 = vrot.slane %v9825_v16, 1  ;;  %v9850_v1 = vcombine.low %v5328_v34, %v5329_v7  ;;  %v3889_v34 = vld [vmem:[#allocation3 + $0x3c] sm:$0xf] }
 0x295   : > { %4379 = vrot.lane.b32.xlu0 %v4314_v3, %s8235_s25  ;;  %v9808_v3 = vld [vmem:[#allocation3 + $0x40] sm:$0xf]  ;;  %v4432_v24 = vsel %vm1031_vm5, %v4430_v41, %v4431_v12  ;;  %v4213_v41 = vld [vmem:[#allocation3 + $0x54] sm:$0xe]  ;;  %v9887_v36 = vld [vmem:[#allocation3 + $0x7c] sm:$0xf] }
 0x296   : > { %4447 = vrot.lane.b32.xlu1 %v4429_v31, %s8234_s24  ;;  %v9811_v31 = vcombine.low %v4193_v57, %v4194_v49  ;;  %v9821_v49 = vld [vmem:[#allocation3 + $0xb0] ss:$0 sps:$4 sm:$0x11]   ;;  %v5784_v57 = vshll.u32 %v9781_v15, 16  ;;  %v9834_v15 = vpop.permute.xlu0 %4548  ;;  %10804 = vst [vmem:[#allocation23_spill] sm:$0xff] %v9841_v40  ;;  %10806 = vst [vmem:[#allocation25_spill] sm:$0xff] %v9850_v1 }
 0x297   : > { %v9976_v28 = vld [vmem:[#allocation3 + $0x88] sm:$0xf]  ;;  %v10041_v33 = vld [vmem:[#allocation3 + $0x38] ss:$0 sps:$4 sm:$0x11]  }
 0x298   : > { %10801 = vst [vmem:[#allocation20_spill] sm:$0xff] %v9811_v31  ;;  %v4342_v46 = vshll.u32 %v9811_v31, 16  ;;  %v5786_v23 = vrot.slane %v5784_v57, 1  ;;  %v4340_v51 = vshrl.u32 %v9811_v31, 16  ;;  %v6282_v48 = vld [vmem:[#allocation3 + $0x9c] sm:$0xe] }
 0x299   : > { %4077 = vrot.lane.b32.xlu0 %v4022_v13, %s8235_s25  ;;  %v9819_v13 = vcombine.low %v5642_v62, %v5643_v47  ;;  %v5507_v47 = vsel %vm894_vm6, %v5502_v60, %v5506_v50  ;;  %v5782_v62 = vor.u32 %v5781_v44, %v5777_v30  ;;  %v9843_v60 = vpop.permute.xlu1 %4558  ;;  %v5560_v30 = vrot.slane %v7265_v17, 1  ;;  %v5662_v17 = vld [vmem:[#allocation3 + $0xb4] sm:$0xe]  ;;  %v10078_v63 = vld [vmem:[#allocation3 + $0xb0] ss:$0 sps:$4 sm:$0x11]  }
 0x29a   : > { %5896 = vrot.lane.b32.xlu1 %v5878_v11, %s8234_s24  ;;  %v7160_v11 = vcombine.low %v3908_v42, %v9808_v3  ;;  %v9838_v42 = vld [vmem:[#allocation3 + $0x58] sm:$0xf]  ;;  %10805 = vst [vmem:[#allocation24_spill] sm:$0xff] %v9843_v60  ;;  %v4344_v50 = vrot.slane %v4342_v46, 1  ;;  %v5561_v46 = vrot.slane %v9832_v39, 1  ;;  %v9863_v7 = vpop.permute.xlu0 %4552  ;;  %v4050_v60 = vshll.u32 %v9841_v40, 16 }
 0x29b   : > { %10803 = vst [vmem:[#allocation22_spill] sm:$0xff] %v9819_v13  ;;  %v7185_v57 = vcombine.low %v4213_v41, %v9838_v42  ;;  %10808 = vst [vmem:[#allocation27_spill] sm:$0xff] %v9863_v7  ;;  %v4857_v7 = vld [vmem:[#allocation3 + $0x30] sm:$0xe]  ;;  %v3893_v8 = vld [vmem:[#allocation3 + $0x54] sm:$0xf] }
 0x29c   : > { %v4126_v12 = vrot.slane %v7160_v11, 1  ;;  %v5645_v11 = vld [vmem:[#allocation3 + $0xb8] sm:$0xf]  ;;  %v4345_v41 = vor.u32 %v4344_v50, %v4340_v51  ;;  %v5789_v50 = vshrl.u32 %v9819_v13, 16  ;;  %v6407_v55 = vshll.u32 %v10078_v63, 16 }
 0x29d   : > { %5526 = vrot.lane.b32.xlu0 %v5471_v25, %s8235_s25  ;;  %v5880_v25 = vrot.slane %v9821_v49, 1  ;;  %v9868_v31 = vcombine.low %v5644_v6, %v5645_v11  ;;  %v5338_v6 = vld [vmem:[#allocation3 + $0x9c] sm:$0xf]  ;;  %v10102_v45 = vld [vmem:[#allocation3 + $0x50] ss:$0 sps:$4 sm:$0x11]  }
 0x29e   : > { %5594 = vrot.lane.b32.xlu1 %v5577_v35, %s8234_s24  ;;  %v4191_v35 = vld [vmem:[#allocation3 + $0x3c] sm:$0xf] }
 0x29f   : > { %v5881_v44 = vsel %vm1031_vm5, %v5879_v2, %v5880_v25  ;;  %v4347_v2 = vshll.u32 %v9803_v43, 16  ;;  %v9858_v25 = vcombine.low %v4191_v35, %v9743_v61  ;;  %v4433_v43 = vrot.slane %v7185_v57, 1  ;;  %10809 = vst [vmem:[#allocation28_spill] sm:$0xff] %v9868_v31  ;;  %v8157_v57 = vld [vmem:[#allocation3 + $0xbc] ss:$0 sps:$4 sm:$0x11]  }
 0x2a0   : > { %v7295_v61 = vcombine.low %v5662_v17, %v5645_v11  ;;  %v5427_v35 = vshll.u32 %v9850_v1, 16  ;;  %v4052_v17 = vrot.slane %v4050_v60, 1  ;;  %v4048_v60 = vshrl.u32 %v9841_v40, 16  ;;  %v5359_v40 = vld [vmem:[#allocation3 + $0xb4] sm:$0xe] }
 0x2a1   : > { %4449 = vrot.lane.b32.xlu0 %v4432_v24, %s8234_s24  ;;  %v5791_v24 = vshll.u32 %v9819_v13, 16  ;;  %10807 = vst [vmem:[#allocation26_spill] sm:$0xff] %v9858_v25 }
 0x2a2   : > { %5532 = vrot.lane.b32.xlu1 %v5507_v47, %s8235_s25  ;;  %v5787_v47 = vsel %vm894_vm6, %v5782_v62, %v5786_v23  ;;  %v4128_v62 = vsel %vm1031_vm5, %v4126_v12, %v4127_v4  ;;  %v9861_v23 = vld [vmem:[#allocation3 + $0x5c] ss:$0 sps:$4 sm:$0x11]   ;;  %v9871_v4 = vpop.permute.xlu1 %6007  ;;  %v4349_v12 = vrot.slane %v4347_v2, 1  ;;  %v6255_v2 = vld [vmem:[#allocation3 + $0x78] sm:$0xf] }
 0x2a3   : > { %10810 = vst [vmem:[#allocation29_spill] sm:$0xff] %v9871_v4  ;;  %v4434_v51 = vrot.slane %v9861_v23, 1  ;;  %v5882_v4 = vrot.slane %v7295_v61, 1  ;;  %v5432_v61 = vshll.u32 %v9832_v39, 16 }
 0x2a4   : > { %v4350_v11 = vsel %vm894_vm6, %v4345_v41, %v4349_v12  ;;  %v4055_v41 = vshll.u32 %v9737_v21, 16  ;;  %v5883_v12 = vrot.slane %v8157_v57, 1 }
 0x2a5   : > { %5898 = vrot.lane.b32.xlu0 %v5881_v44, %s8234_s24  ;;  %v5562_v44 = vsel %vm1031_vm5, %v5560_v30, %v5561_v46  ;;  %v5796_v30 = vshll.u32 %v9821_v49, 16  ;;  %v5429_v49 = vrot.slane %v5427_v35, 1 }
 0x2a6   : > { %5832 = vrot.lane.b32.xlu1 %v5787_v47, %s8235_s25  ;;  %v5793_v47 = vrot.slane %v5791_v24, 1  ;;  %v9877_v24 = vcombine.low %v3889_v34, %v9808_v3  ;;  %v5803_v3 = vshll.u32 %v9868_v31, 16  ;;  %v9885_v34 = vpop.permute.xlu0 %4556  ;;  %v9897_v35 = vpop.permute.xlu1 %6009  ;;  %v5884_v21 = vsel %vm1031_vm5, %v5882_v4, %v5883_v12 }
 0x2a7   : > { %10812 = vst [vmem:[#allocation31_spill] sm:$0xff] %v9885_v34  ;;  %v5798_v13 = vrot.slane %v5796_v30, 1  ;;  %10814 = vst [vmem:[#allocation33_spill] sm:$0xff] %v9897_v35  ;;  %v4057_v39 = vrot.slane %v4055_v41, 1 }
 0x2a8   : > { %10811 = vst [vmem:[#allocation30_spill] sm:$0xff] %v9877_v24  ;;  %v5794_v46 = vor.u32 %v5793_v47, %v5789_v50  ;;  %v9893_v47 = vcombine.low %v5338_v6, %v9773_v53  ;;  %v5805_v53 = vrot.slane %v5803_v3, 1  ;;  %v9903_v6 = vld [vmem:[#allocation3 + $0xb8] sm:$0xf] }
 0x2a9   : > { %4145 = vrot.lane.b32.xlu0 %v4128_v62, %s8234_s24  ;;  %v4330_v62 = vshll.u32 %v9858_v25, 16  ;;  %v9959_v35 = vld [vmem:[#allocation3 + $0x20] ss:$0 sps:$4 sm:$0x11]  }
 0x2aa   : > { %5584 = vrot.lane.b32.xlu1 %v5562_v44, %s8234_s24  ;;  %v4435_v44 = vsel %vm1031_vm5, %v4433_v43, %v4434_v51  ;;  %10813 = vst [vmem:[#allocation32_spill] sm:$0xff] %v9893_v47  ;;  %v5425_v43 = vshrl.u32 %v9850_v1, 16  ;;  %v5799_v50 = vsel %vm894_vm6, %v5794_v46, %v5798_v13  ;;  %v4053_v51 = vor.u32 %v4052_v17, %v4048_v60  ;;  %v9912_v4 = vpop.permute.xlu0 %4560 }
 0x2ab   : > { %v4332_v30 = vrot.slane %v4330_v62, 1  ;;  %v9906_v1 = vcombine.low %v6255_v2, %v9887_v36  ;;  %v4328_v13 = vshrl.u32 %v9858_v25, 16  ;;  %v4335_v46 = vshll.u32 %v9765_v20, 16  ;;  %10816 = vst [vmem:[#allocation35_spill] sm:$0xff] %v9912_v4 }
 0x2ac   : > { %v5434_v17 = vrot.slane %v5432_v61, 1  ;;  %v5801_v62 = vshrl.u32 %v9868_v31, 16  ;;  %v5808_v60 = vshll.u32 %v8157_v57, 16  ;;  %v5487_v2 = vshll.u32 %v9893_v47, 16  ;;  %v9920_v61 = vpop.permute.xlu1 %4135  ;;  %v3910_v31 = vld [vmem:[#allocation3 + $0x54] sm:$0xe] }
 0x2ad   : > { %4385 = vrot.lane.b32.xlu0 %v4350_v11, %s8235_s25  ;;  %v4038_v11 = vshll.u32 %v9877_v24, 16  ;;  %10815 = vst [vmem:[#allocation34_spill] sm:$0xff] %v9906_v1  ;;  %v4333_v3 = vor.u32 %v4332_v30, %v4328_v13  ;;  %v6354_v20 = vshll.u32 %v9906_v1, 16  ;;  %10817 = vst [vmem:[#allocation36_spill] sm:$0xff] %v9920_v61  ;;  %v4337_v57 = vrot.slane %v4335_v46, 1 }
 0x2ae   : > { %4451 = vrot.lane.b32.xlu1 %v4435_v44, %s8234_s24  ;;  %v5430_v44 = vor.u32 %v5429_v49, %v5425_v43  ;;  %v4058_v49 = vsel %vm894_vm6, %v4053_v51, %v4057_v39  ;;  %v5806_v43 = vor.u32 %v5805_v53, %v5801_v62  ;;  %v4036_v51 = vshrl.u32 %v9877_v24, 16  ;;  %v9927_v39 = vld [vmem:[#allocation3 + $0x80] ss:$0 sps:$4 sm:$0x11]   ;;  %v4198_v13 = vld [vmem:[#allocation3 + $0x64] sm:$0xf] }
 0x2af   : > { %v4040_v12 = vrot.slane %v4038_v11, 1  ;;  %v4043_v30 = vshll.u32 %v9825_v16, 16  ;;  %v9925_v11 = vld [vmem:[#allocation3 + $0xbc] ss:$0 sps:$4 sm:$0x11]  }
 0x2b0   : > { %v5435_v41 = vsel %vm894_vm6, %v5430_v44, %v5434_v17  ;;  %10818 = vst [vmem:[#allocation37_spill] sm:$0xff] %v9925_v11  ;;  %v4338_v44 = vsel %vm894_vm6, %v4333_v3, %v4337_v57  ;;  %v4214_v62 = vld [vmem:[#allocation3 + $0x60] sm:$0xe]  ;;  %v9934_v16 = vld [vmem:[#allocation3 + $0x1c] sm:$0xf]  ;;  %v5492_v3 = vshll.u32 %v9794_v58, 16 }
 0x2b1   : > { %5834 = vrot.lane.b32.xlu0 %v5799_v50, %s8235_s25  ;;  %v7272_v50 = vcombine.low %v5359_v40, %v9903_v6  ;;  %v4041_v53 = vor.u32 %v4040_v12, %v4036_v51  ;;  %v5489_v40 = vrot.slane %v5487_v2, 1  ;;  %v4045_v24 = vrot.slane %v4043_v30, 1  ;;  %v4855_v12 = vld [vmem:[#allocation3 + $0x18] sm:$0xe]  ;;  %v9950_v58 = vld [vmem:[%s10721_s3] sm:$0xff]  }
 0x2b2   : > { %5900 = vrot.lane.b32.xlu1 %v5884_v21, %s8234_s24  ;;  %v5810_v21 = vrot.slane %v5808_v60, 1  ;;  %v5485_v60 = vshrl.u32 %v9893_v47, 16  ;;  %v5582_v2 = vrot.slane %v9925_v11, 1  ;;  %v6352_v57 = vshrl.u32 %v9906_v1, 16  ;;  %v5663_v61 = vld [vmem:[#allocation3 + $0xc0] sm:$0xe]  ;;  %7649 = vmatprep.subr.bf16.mxu0 %v9950_v58 }
 0x2b3   : > { %v5581_v17 = vrot.slane %v7272_v50, 1  ;;  %v7186_v30 = vcombine.low %v4214_v62, %v4198_v13  ;;  %v7231_v4 = vcombine.low %v4855_v12, %v9934_v16  ;;  %v9956_v62 = vld [vmem:[#allocation3 + $0x94] sm:$0xf]  ;;  %7709 = vmatprep.subr.bf16.mxu1 %v9950_v58 }
 0x2b4   : > { %v5811_v46 = vsel %vm894_vm6, %v5806_v43, %v5810_v21  ;;  %v6359_v43 = vshll.u32 %v9927_v39, 16  ;;  %v5490_v51 = vor.u32 %v5489_v40, %v5485_v60  ;;  %v9945_v21 = vld [vmem:[#allocation3 + $0x68] ss:$0 sps:$4 sm:$0x11]   ;;  %v5494_v40 = vrot.slane %v5492_v3, 1 }
 0x2b5   : > { %4083 = vrot.lane.b32.xlu0 %v4058_v49, %s8235_s25  ;;  %v6356_v49 = vrot.slane %v6354_v20, 1  ;;  %v9942_v50 = vpop.permute.xlu1 %4139  ;;  %v4046_v20 = vsel %vm894_vm6, %v4041_v53, %v4045_v24  ;;  %v5583_v1 = vsel %vm1031_vm5, %v5581_v17, %v5582_v2  ;;  %v6279_v24 = vld [vmem:[#allocation3 + $0x78] sm:$0xe]  ;;  %v6259_v53 = vld [vmem:[#allocation3 + $0x90] sm:$0xf] }
 0x2b6   : > { %5520 = vrot.lane.b32.xlu1 %v5435_v41, %s8235_s25  ;;  %v9932_v41 = vpop.permute.xlu0 %4071  ;;  %v6361_v60 = vrot.slane %v6359_v43, 1  ;;  %v5495_v17 = vsel %vm894_vm6, %v5490_v51, %v5494_v40  ;;  %v9967_v3 = vld [vmem:[#allocation3 + $0xc8] ss:$0 sps:$4 sm:$0x11]   ;;  %v9969_v2 = vld [vmem:[#allocation3 + $0x58] sm:$0xf]  ;;  %v7353_v34 = vcombine.low %v6279_v24, %v9887_v36 }
 0x2b7   : > { %10819 = vst [vmem:[#allocation38_spill] sm:$0xff] %v9932_v41  ;;  %v6357_v47 = vor.u32 %v6356_v49, %v6352_v57  ;;  %v5646_v41 = vld [vmem:[#allocation3 + $0xc0] sm:$0xf]  ;;  %v4436_v49 = vrot.slane %v7186_v30, 1  ;;  %v5063_v43 = vrot.slane %v7231_v4, 1  ;;  %v4437_v51 = vrot.slane %v9945_v21, 1 }
 0x2b8   : > { %v4195_v4 = vld [vmem:[#allocation3 + $0x54] sm:$0xf]  ;;  %v7162_v24 = vcombine.low %v3910_v31, %v9969_v2  ;;  %v9999_v31 = vld [vmem:[#allocation3 + $0x8c] ss:$0 sps:$4 sm:$0x11]  }
 0x2b9   : > { %4383 = vrot.lane.b32.xlu0 %v4338_v44, %s8235_s25  ;;  %v4197_v44 = vld [vmem:[#allocation3 + $0x60] sm:$0xf]  ;;  %v6362_v57 = vsel %vm894_vm6, %v6357_v47, %v6361_v60  ;;  %v5064_v47 = vrot.slane %v9959_v35, 1  ;;  %v4438_v36 = vsel %vm1031_vm5, %v4436_v49, %v4437_v51  ;;  %v5886_v49 = vrot.slane %v9967_v3, 1 }
 0x2ba   : > { %5836 = vrot.lane.b32.xlu1 %v5811_v46, %s8235_s25  ;;  %v5647_v46 = vld [vmem:[#allocation3 + $0xc4] sm:$0xf]  ;;  %v9965_v12 = vcombine.low %v4197_v44, %v4198_v13  ;;  %v9979_v13 = vcombine.low %v6259_v53, %v9956_v62  ;;  %v4831_v53 = vld [vmem:[#allocation3 + $0x18] sm:$0xf] }
 0x2bb   : > { %v9974_v25 = vpop.permute.xlu1 %5588  ;;  %v9983_v30 = vcombine.low %v5646_v41, %v5647_v46  ;;  %v5065_v60 = vsel %vm1031_vm5, %v5063_v43, %v5064_v47  ;;  %v10004_v43 = vld [vmem:[#allocation3 + $0x98] ss:$0 sps:$4 sm:$0x11]   ;;  %v10008_v47 = vcombine.low %v4195_v4, %v9838_v42  ;;  %v10016_v9 = vcombine.low %v4831_v53, %v9934_v16 }
 0x2bc   : > { %10820 = vst [vmem:[#allocation39_spill] sm:$0xff] %v9965_v12  ;;  %10821 = vst [vmem:[#allocation40_spill] sm:$0xff] %v9979_v13  ;;  %v4366_v40 = vshll.u32 %v9965_v12, 16  ;;  %v6378_v38 = vshll.u32 %v9979_v13, 16  ;;  %v4364_v4 = vshrl.u32 %v9965_v12, 16 }
 0x2bd   : > { %4081 = vrot.lane.b32.xlu0 %v4046_v20, %s8235_s25  ;;  %v9961_v20 = vpop.permute.xlu0 %4441  ;;  %10822 = vst [vmem:[#allocation41_spill] sm:$0xff] %v9983_v30  ;;  %10824 = vst [vmem:[#allocation43_spill] sm:$0xff] %v10008_v47 }
 0x2be   : > { %5598 = vrot.lane.b32.xlu1 %v5583_v1, %s8234_s24  ;;  %v7296_v1 = vcombine.low %v5663_v61, %v5647_v46  ;;  %v6280_v61 = vld [vmem:[#allocation3 + $0x84] sm:$0xe]  ;;  %v4368_v56 = vrot.slane %v4366_v40, 1  ;;  %v6380_v22 = vrot.slane %v6378_v38, 1  ;;  %10825 = vst [vmem:[#allocation44_spill] sm:$0xff] %v10016_v9  ;;  %v6376_v38 = vshrl.u32 %v9979_v13, 16 }
 0x2bf   : > { %v7354_v46 = vcombine.low %v6280_v61, %v9976_v28  ;;  %v10002_v51 = vpop.permute.xlu1 %4439  ;;  %v5820_v13 = vshll.u32 %v9967_v3, 16  ;;  %v6257_v3 = vld [vmem:[#allocation3 + $0x84] sm:$0xf] }
 0x2c0   : > { %v5885_v44 = vrot.slane %v7296_v1, 1  ;;  %v6488_v1 = vrot.slane %v9927_v39, 1  ;;  %v10013_v39 = vld [vmem:[#allocation3 + $0x34] sm:$0xf]  ;;  %v4369_v53 = vor.u32 %v4368_v56, %v4364_v4  ;;  %v6381_v12 = vor.u32 %v6380_v22, %v6376_v38  ;;  %v10038_v56 = vld [vmem:[#allocation3 + $0xac] sm:$0xf] }
 0x2c1   : > { %5530 = vrot.lane.b32.xlu0 %v5495_v17, %s8235_s25  ;;  %v6487_v17 = vrot.slane %v7353_v34, 1  ;;  %v9993_v41 = vpop.permute.xlu0 %5890  ;;  %v5815_v34 = vshll.u32 %v9983_v30, 16  ;;  %v6490_v52 = vrot.slane %v7354_v46, 1  ;;  %v6281_v4 = vld [vmem:[#allocation3 + $0x90] sm:$0xe] }
 0x2c2   : > { %6447 = vrot.lane.b32.xlu1 %v6362_v57, %s8235_s25  ;;  %v9991_v57 = vld [vmem:[#allocation3 + $0x5c] ss:$0 sps:$4 sm:$0x11]   ;;  %v5887_v61 = vsel %vm1031_vm5, %v5885_v44, %v5886_v49  ;;  %v4371_v44 = vshll.u32 %v9945_v21, 16  ;;  %v5813_v49 = vshrl.u32 %v9983_v30, 16 }
 0x2c3   : > { %10823 = vst [vmem:[#allocation42_spill] sm:$0xff] %v9991_v57  ;;  %v4133_v42 = vrot.slane %v9991_v57, 1  ;;  %v5817_v46 = vrot.slane %v5815_v34, 1  ;;  %v7233_v34 = vcombine.low %v4857_v7, %v10013_v39  ;;  %v5342_v22 = vld [vmem:[#allocation3 + $0xb4] sm:$0xf]  ;;  %v4930_v7 = vshll.u32 %v10016_v9, 16 }
 0x2c4   : > { %v10112_v57 = vld [vmem:[#allocation3 + $0x40] sm:$0xf] }
 0x2c5   : > { %4453 = vrot.lane.b32.xlu0 %v4438_v36, %s8234_s24  ;;  %v4132_v36 = vrot.slane %v7162_v24, 1  ;;  %v6491_v24 = vrot.slane %v9999_v31, 1  ;;  %v10023_v40 = vpop.permute.xlu0 %4137  ;;  %v5818_v26 = vor.u32 %v5817_v46, %v5813_v49  ;;  %v5069_v49 = vrot.slane %v7233_v34, 1 }
 0x2c6   : > { %5087 = vrot.lane.b32.xlu1 %v5065_v60, %s8234_s24  ;;  %v6489_v60 = vsel %vm1031_vm5, %v6487_v17, %v6488_v1  ;;  %v6383_v17 = vshll.u32 %v10004_v43, 16  ;;  %v4354_v1 = vshll.u32 %v10008_v47, 16 }
 0x2c7   : > { %v4134_v16 = vsel %vm1031_vm5, %v4132_v36, %v4133_v42  ;;  %v6492_v21 = vsel %vm1031_vm5, %v6490_v52, %v6491_v24  ;;  %v6263_v36 = vld [vmem:[#allocation3 + $0xa8] sm:$0xf]  ;;  %v4373_v42 = vrot.slane %v4371_v44, 1 }
 0x2c8   : > { %v10035_v14 = vpop.permute.xlu1 %5888  ;;  %v6385_v30 = vrot.slane %v6383_v17, 1  ;;  %v4356_v38 = vrot.slane %v4354_v1, 1  ;;  %v5822_v17 = vrot.slane %v5820_v13, 1  ;;  %v4352_v1 = vshrl.u32 %v10008_v47, 16 }
 0x2c9   : > { %5902 = vrot.lane.b32.xlu0 %v5887_v61, %s8234_s24  ;;  %v4833_v61 = vld [vmem:[#allocation3 + $0x24] sm:$0xf]  ;;  %v4374_v24 = vsel %vm894_vm6, %v4369_v53, %v4373_v42  ;;  %v4835_v53 = vld [vmem:[#allocation3 + $0x30] sm:$0xf]  ;;  %v10060_v42 = vcombine.low %v6257_v3, %v9976_v28  ;;  %v5070_v13 = vrot.slane %v10041_v33, 1  ;;  %v10074_v28 = vcombine.low %v3893_v8, %v9969_v2 }
 0x2ca   : > { %6511 = vrot.lane.b32.xlu1 %v6489_v60, %s8234_s24  ;;  %v10030_v60 = vld [vmem:[#allocation3 + $0x28] sm:$0xf]  ;;  %v6386_v44 = vsel %vm894_vm6, %v6381_v12, %v6385_v30  ;;  %v5823_v12 = vsel %vm894_vm6, %v5818_v26, %v5822_v17  ;;  %v6261_v17 = vld [vmem:[#allocation3 + $0x9c] sm:$0xf] }
 0x2cb   : > { %v10044_v52 = vcombine.low %v4833_v61, %v10030_v60  ;;  %v7355_v61 = vcombine.low %v6281_v4, %v9956_v62  ;;  %v10066_v62 = vld [vmem:[#allocation3 + $0x2c] ss:$0 sps:$4 sm:$0x11]   ;;  %v4357_v4 = vor.u32 %v4356_v38, %v4352_v1  ;;  %v5071_v26 = vsel %vm1031_vm5, %v5069_v49, %v5070_v13  ;;  %v10086_v8 = vld [vmem:[#allocation3 + $0xa4] ss:$0 sps:$4 sm:$0x11]  }
 0x2cc   : > { %v10064_v30 = vpop.permute.xlu1 %5586  ;;  %v10081_v38 = vcombine.low %v4835_v53, %v10013_v39  ;;  %v6366_v1 = vshll.u32 %v10060_v42, 16 }
 0x2cd   : > { %4149 = vrot.lane.b32.xlu0 %v4134_v16, %s8234_s24  ;;  %10826 = vst [vmem:[#allocation45_spill] sm:$0xff] %v10044_v52  ;;  %v10049_v16 = vcombine.low %v6263_v36, %v10038_v56  ;;  %v10053_v46 = vpop.permute.xlu0 %4377  ;;  %v4359_v36 = vshll.u32 %v9861_v23, 16  ;;  %v4942_v34 = vshll.u32 %v10044_v52, 16  ;;  %v10071_v23 = vcombine.low %v5342_v22, %v9903_v6 }
 0x2ce   : > { %6513 = vrot.lane.b32.xlu1 %v6492_v21, %s8234_s24  ;;  %v6262_v21 = vld [vmem:[#allocation3 + $0xa0] sm:$0xf]  ;;  %v6493_v3 = vrot.slane %v7355_v61, 1  ;;  %v4928_v6 = vshrl.u32 %v10016_v9, 16  ;;  %v4935_v22 = vshll.u32 %v9959_v35, 16  ;;  %v4947_v61 = vshll.u32 %v10066_v62, 16 }
 0x2cf   : > { %v6402_v47 = vshll.u32 %v10049_v16, 16  ;;  %v4944_v49 = vrot.slane %v4942_v34, 1  ;;  %v4940_v34 = vshrl.u32 %v10044_v52, 16 }
 0x2d1   : > { %4389 = vrot.lane.b32.xlu0 %v4374_v24, %s8235_s25  ;;  %v4932_v24 = vrot.slane %v4930_v7, 1  ;;  %v5827_v2 = vpop.permute.xlu0 %5826  ;;  %v6494_v7 = vrot.slane %v10004_v43, 1  ;;  %v6404_v13 = vrot.slane %v6402_v47, 1  ;;  %v10098_v43 = vcombine.low %v6261_v17, %v6262_v21 }
 0x2d2   : > { %6451 = vrot.lane.b32.xlu1 %v6386_v44, %s8235_s25  ;;  %v7356_v44 = vcombine.low %v6282_v48, %v6262_v21  ;;  %v4361_v48 = vrot.slane %v4359_v36, 1  ;;  %v10092_v36 = vld [vmem:[#allocation3 + $0x4c] sm:$0xf]  ;;  %v4937_v47 = vrot.slane %v4935_v22, 1  ;;  %v6364_v21 = vshrl.u32 %v10060_v42, 16 }
 0x2d3   : > { %v4933_v53 = vor.u32 %v4932_v24, %v4928_v6  ;;  %v6495_v35 = vsel %vm1031_vm5, %v6493_v3, %v6494_v7  ;;  %v10096_v9 = vpop.permute.xlu1 %5524  ;;  %v6400_v24 = vshrl.u32 %v10049_v16, 16  ;;  %v4856_v3 = vld [vmem:[#allocation3 + $0x24] sm:$0xe]  ;;  %v4949_v6 = vrot.slane %v4947_v61, 1  ;;  %v6283_v7 = vld [vmem:[#allocation3 + $0xa8] sm:$0xe] }
 0x2d4   : > { %v4362_v39 = vsel %vm894_vm6, %v4357_v4, %v4361_v48  ;;  %v6497_v4 = vrot.slane %v10086_v8, 1  ;;  %v4945_v48 = vor.u32 %v4944_v49, %v4940_v34  ;;  %v6368_v17 = vrot.slane %v6366_v1, 1 }
 0x2d5   : > { %5838 = vrot.lane.b32.xlu0 %v5823_v12, %s8235_s25  ;;  %v6496_v12 = vrot.slane %v7356_v44, 1  ;;  %v6371_v44 = vshll.u32 %v9999_v31, 16  ;;  %v6405_v11 = vor.u32 %v6404_v13, %v6400_v24  ;;  %v5907_v31 = vsel %vm1072_vm7, %v9429_v29, %v5827_v2  ;;  %v10117_v49 = vpop.permute.xlu0 %4075 }
 0x2d6   : > { %5091 = vrot.lane.b32.xlu1 %v5071_v26, %s8234_s24  ;;  %v4859_v26 = vld [vmem:[#allocation3 + $0x48] sm:$0xe]  ;;  %v6409_v61 = vrot.slane %v6407_v55, 1  ;;  %v7232_v1 = vcombine.low %v4856_v3, %v10030_v60  ;;  %v5076_v13 = vrot.slane %v10102_v45, 1  ;;  %v4954_v34 = vshll.u32 %v10081_v38, 16 }
 0x2d7   : > { %v6498_v52 = vsel %vm1031_vm5, %v6496_v12, %v6497_v4  ;;  %v7235_v22 = vcombine.low %v4859_v26, %v10092_v36  ;;  %v6373_v12 = vrot.slane %v6371_v44, 1  ;;  %v7357_v26 = vcombine.low %v6283_v7, %v10038_v56  ;;  %v10136_v3 = vld [vmem:[#allocation3 + $0xb8] sm:$0xf]  ;;  %v6284_v7 = vld [vmem:[#allocation3 + $0xb4] sm:$0xe] }
 0x2d8   : > { %v4950_v29 = vsel %vm894_vm6, %v4945_v48, %v4949_v6  ;;  %v6369_v4 = vor.u32 %v6368_v17, %v6364_v21  ;;  %v5067_v55 = vrot.slane %v10066_v62, 1  ;;  %v6410_v56 = vsel %vm894_vm6, %v6405_v11, %v6409_v61 }
 0x2d9   : > { %4387 = vrot.lane.b32.xlu0 %v4362_v39, %s8235_s25  ;;  %v4938_v39 = vsel %vm894_vm6, %v4933_v53, %v4937_v47  ;;  %v6267_v53 = vld [vmem:[#allocation3 + $0xc0] sm:$0xf]  ;;  %v10124_v47 = vld [vmem:[#allocation3 + $0xc4] sm:$0xf]  ;;  %v5075_v44 = vrot.slane %v7235_v22, 1  ;;  %v4458_v48 = vsel %vm1072_vm7, %v9436_v32, %v10053_v46  ;;  %v5066_v6 = vrot.slane %v7232_v1, 1 }
 0x2da   : > { %6515 = vrot.lane.b32.xlu1 %v6495_v35, %s8234_s24  ;;  %v4837_v35 = vld [vmem:[#allocation3 + $0x3c] sm:$0xf]  ;;  %v6499_v11 = vrot.slane %v7357_v26, 1  ;;  %v6500_v21 = vrot.slane %v10078_v63, 1  ;;  %v4956_v17 = vrot.slane %v4954_v34, 1  ;;  %v7358_v22 = vcombine.low %v6284_v7, %v10136_v3 }
 0x2db   : > { %v10129_v60 = vcombine.low %v4837_v35, %v10112_v57  ;;  %v8222_v32 = vld [vmem:[%s10721_s3 + $0x8] ss:$0 sps:$4 sm:$0xff]   ;;  %v4474_v63 = vsel %vm1089_vm9, %v4458_v48, %v9961_v20  ;;  %v4959_v20 = vshll.u32 %v10041_v33, 16  ;;  %v10174_v26 = vld [vmem:[#allocation3 + $0xbc] ss:$0 sps:$4 sm:$0x11]  }
 0x2dc   : > { %v10182_v34 = vld [vmem:[#allocation3 + $0x44] ss:$0 sps:$4 sm:$0x11]   ;;  %v4565_v33 = vsel %vm1423_vm10, %v4474_v63, %v9834_v15  ;;  %v6390_v15 = vshll.u32 %v10098_v43, 16 }
 0x2dd   : > { %5023 = vrot.lane.b32.xlu0 %v4938_v39, %s8235_s25  ;;  %v4952_v39 = vshrl.u32 %v10081_v38, 16  ;;  %v10209_v7 = vld [vmem:[#allocation3 + $0x64] sm:$0xf]  ;;  %v4971_v48 = vshll.u32 %v10182_v34, 16 }
 0x2de   : > { %6517 = vrot.lane.b32.xlu1 %v6498_v52, %s8234_s24  ;;  %v5923_v52 = vsel %vm1089_vm9, %v5907_v31, %v9993_v41  ;;  %v10145_v41 = vcombine.low %v6267_v53, %v10124_v47  ;;  %v6374_v31 = vsel %vm894_vm6, %v6369_v4, %v6373_v12  ;;  %v5068_v53 = vsel %vm1031_vm5, %v5066_v6, %v5067_v55 }
 0x2df   : > { %v5825_v2 = vpop.permute.xlu1 %5824  ;;  %v6502_v4 = vrot.slane %v7358_v22, 1  ;;  %v4062_v22 = vshll.u32 %v10074_v28, 16 }
 0x2e0   : > { %v5905_v24 = vsel %vm1072_vm7, %v9533_v0, %v5825_v2  ;;  %v5605_v2 = vsel %vm1072_vm7, %v9461_v37, %v10096_v9  ;;  %v4730_v37 = vsel %vm1440_vm8, %v8222_v32, 0 }
 0x2e1   : > { %5025 = vrot.lane.b32.xlu0 %v4950_v29, %s8235_s25  ;;  %v5921_v62 = vsel %vm1089_vm9, %v5905_v24, %v10035_v14  ;;  %v6014_v14 = vsel %vm1423_vm10, %v5923_v52, %v9679_v10  ;;  %v5077_v10 = vsel %vm1031_vm5, %v5075_v44, %v5076_v13  ;;  %v6501_v13 = vsel %vm1031_vm5, %v6499_v11, %v6500_v21  ;;  %v10184_v29 = vld [vmem:[#allocation3 + $0xc8] ss:$0 sps:$4 sm:$0x11]  }
 0x2e2   : > { %6455 = vrot.lane.b32.xlu1 %v6410_v56, %s8235_s25  ;;  %v6012_v0 = vsel %vm1423_vm10, %v5921_v62, %v9654_v5  ;;  %v4966_v5 = vshll.u32 %v10129_v60, 16  ;;  %v4156_v52 = vsel %vm1072_vm7, %v9448_v19, %v10117_v49  ;;  %v4961_v44 = vrot.slane %v4959_v20, 1 }
 0x2e3   : > { %v4376_v46 = vpop.permute.xlu0 %4375  ;;  %7693 = vmatprep.mubr.msk.bf16.mxu1 %vm4590_vm11, %v6012_v0  ;;  %v6503_v19 = vrot.slane %v10174_v26, 1  ;;  %v6431_v62 = vshll.u32 %v10184_v29, 16  ;;  %v10219_v6 = vsel %vm1089_vm9, %v5605_v2, %v9974_v25  ;;  %v10224_v0 = vld [vmem:[%s10721_s3 + $0x20] sm:$0xff]  }
 0x2e4   : > { %v4456_v35 = vsel %vm1072_vm7, %v9518_v54, %v4376_v46  ;;  %v10165_v61 = vpop.permute.xlu1 %4143  ;;  %7694 = vmatmul.mubr.msk.bf16.vlgmr.msra.gmra.mrb[16].mxu1 %vm4590_vm11, %v6014_v14  ;;  %v6426_v54 = vshll.u32 %v10145_v41, 16  ;;  %v4968_v55 = vrot.slane %v4966_v5, 1  ;;  %v4839_v2 = vld [vmem:[#allocation3 + $0x48] sm:$0xf] }
 0x2e5   : > { %v4472_v1 = vsel %vm1089_vm9, %v4456_v35, %v10002_v51  ;;  %6449 = vrot.lane.b32.xlu0 %v6374_v31, %s8235_s25  ;;  %7710 = vmatpush3.bf16.msra.mxu1 %v9950_v58  ;;  %v4957_v51 = vor.u32 %v4956_v17, %v4952_v39  ;;  %v6504_v21 = vsel %vm1031_vm5, %v6502_v4, %v6503_v19  ;;  %v6424_v17 = vshrl.u32 %v10145_v41, 16 }
 0x2e6   : > { %v4563_v12 = vsel %vm1423_vm10, %v4472_v1, %v9634_v59  ;;  %5095 = vrot.lane.b32.xlu1 %v5077_v10, %s8234_s24  ;;  %7885 = vmatprep.subr.msk.bf16.mxu1 %vm1440_vm8, %v8222_v32  ;;  %v6428_v49 = vrot.slane %v6426_v54, 1  ;;  %v6392_v39 = vrot.slane %v6390_v15, 1  ;;  %v6388_v35 = vshrl.u32 %v10098_v43, 16  ;;  %v6285_v10 = vld [vmem:[#allocation3 + $0xc0] sm:$0xe] }
 0x2e7   : > { %7633 = vmatprep.mubr.msk.bf16.mxu0 %vm4590_vm11, %v4563_v12  ;;  %v4074_v59 = vpop.permute.xlu0 %4073  ;;  %v4962_v11 = vsel %vm894_vm6, %v4957_v51, %v4961_v44  ;;  %v6395_v31 = vshll.u32 %v10086_v8, 16  ;;  %v5511_v51 = vshll.u32 %v10071_v23, 16  ;;  %v7359_v4 = vcombine.low %v6285_v10, %v10124_v47 }
 0x2e8   : > { %v4154_v24 = vsel %vm1072_vm7, %v9526_v18, %v4074_v59  ;;  %7634 = vmatmul.mubr.msk.bf16.vlgmr.msra.gmra.mrb[16].mxu0 %vm4590_vm11, %v4565_v33  ;;  %v10199_v56 = vpop.permute.xlu1 %5592  ;;  %v4964_v18 = vshrl.u32 %v10129_v60, 16  ;;  %v6429_v63 = vor.u32 %v6428_v49, %v6424_v17  ;;  %v6393_v12 = vor.u32 %v6392_v39, %v6388_v35  ;;  %v6286_v33 = vld [vmem:[#allocation3 + $0xcc] sm:$0xe]  ;;  %v10273_v17 = vld [vmem:[#allocation3 + $0xd4] ss:$0 sps:$4 sm:$0x11]  }
 0x2e9   : > { %v10205_v9 = vsel %vm1089_vm9, %v4154_v24, %v10023_v40  ;;  %5089 = vrot.lane.b32.xlu0 %v5068_v53, %s8234_s24  ;;  %7650 = vmatpush3.bf16.msra.mxu0 %v9950_v58  ;;  %v4861_v40 = vld [vmem:[#allocation3 + $0x60] sm:$0xe]  ;;  %v10251_v53 = vld [vmem:[#allocation3 + $0x68] ss:$0 sps:$4 sm:$0x11]  }
 0x2ea   : > { %6519 = vrot.lane.b32.xlu1 %v6501_v13, %s8234_s24  ;;  %7883 = vmatprep.subr.msk.bf16.mxu0 %vm1440_vm8, %v8222_v32  ;;  %v10231_v32 = vsel %vm1089_vm9, %v4156_v52, %v9942_v50  ;;  %v4969_v46 = vor.u32 %v4968_v55, %v4964_v18  ;;  %v7237_v50 = vcombine.low %v4861_v40, %v10209_v7  ;;  %v4064_v13 = vrot.slane %v4062_v22, 1  ;;  %v10827_v24 = vld [vmem:[#allocation42_spill] sm:$0xff] }
 0x2eb   : > { %v5523_v58 = vpop.permute.xlu0 %5522  ;;  %7712 = vmatpush3.bf16.msra.mxu1 %v4730_v37  ;;  %v6397_v55 = vrot.slane %v6395_v31, 1  ;;  %v4060_v52 = vshrl.u32 %v10074_v28, 16  ;;  %v4067_v15 = vshll.u32 %v10827_v24, 16  ;;  %v5082_v19 = vrot.slane %v10251_v53, 1 }
 0x2ec   : > { %v5603_v25 = vsel %vm1072_vm7, %v9607_v27, %v5523_v58  ;;  %v10235_v14 = vpop.permute.xlu1 %4443  ;;  %7729 = vmatprep.subr.bf16.mxu1 %v10224_v0  ;;  %v4973_v27 = vrot.slane %v4971_v48, 1  ;;  %v5081_v59 = vrot.slane %v7237_v50, 1  ;;  %v10266_v18 = vcombine.low %v4839_v2, %v10092_v36 }
 0x2ed   : > { %v10241_v5 = vsel %vm1089_vm9, %v5603_v25, %v10064_v30  ;;  %5027 = vrot.lane.b32.xlu0 %v4962_v11, %s8235_s25  ;;  %7652 = vmatpush3.bf16.msra.mxu0 %v4730_v37  ;;  %v6433_v30 = vrot.slane %v6431_v62, 1  ;;  %v10261_v37 = vld [vmem:[#allocation3 + $0xd0] sm:$0xf]  ;;  %v6398_v48 = vsel %vm894_vm6, %v6393_v12, %v6397_v55  ;;  %v4065_v62 = vor.u32 %v4064_v13, %v4060_v52  ;;  %v4843_v12 = vld [vmem:[#allocation3 + $0x60] sm:$0xf]  ;;  %v10829_v13 = vld [vmem:[#allocation6_spill] sm:$0xff] }
 0x2ee   : > { %6521 = vrot.lane.b32.xlu1 %v6504_v21, %s8234_s24  ;;  %7669 = vmatprep.subr.bf16.mxu0 %v10224_v0  ;;  %v4974_v20 = vsel %vm894_vm6, %v4969_v46, %v4973_v27  ;;  %v7360_v49 = vcombine.low %v6286_v33, %v10261_v37  ;;  %v5513_v40 = vrot.slane %v5511_v51, 1  ;;  %v5083_v58 = vsel %vm1031_vm5, %v5081_v59, %v5082_v19  ;;  %v4858_v21 = vld [vmem:[#allocation3 + $0x3c] sm:$0xe]  ;;  %v10828_v46 = vld [vmem:[#allocation37_spill] sm:$0xff]  ;;  %v4841_v59 = vld [vmem:[#allocation3 + $0x54] sm:$0xf] }
 0x2ef   : > { %v10249_v1 = vpop.permute.xlu0 %4445  ;;  %v6434_v8 = vsel %vm894_vm6, %v6429_v63, %v6433_v30  ;;  %v6505_v11 = vrot.slane %v7359_v4, 1  ;;  %v4069_v25 = vrot.slane %v4067_v15, 1  ;;  %v5509_v36 = vshrl.u32 %v10071_v23, 16  ;;  %v4842_v19 = vld [vmem:[#allocation3 + $0x58] sm:$0xf] }
 0x2f0   : > { %v5893_v54 = vpop.permute.xlu1 %5892  ;;  %v5516_v39 = vshll.u32 %v10828_v46, 16  ;;  %v6506_v63 = vrot.slane %v10184_v29, 1  ;;  %v6508_v50 = vrot.slane %v7360_v49, 1  ;;  %v6509_v27 = vrot.slane %v10273_v17, 1  ;;  %v4860_v49 = vld [vmem:[#allocation3 + $0x54] sm:$0xe] }
 0x2f1   : > { %5029 = vrot.lane.b32.xlu0 %v4974_v20, %s8235_s25  ;;  %v4070_v35 = vsel %vm894_vm6, %v4065_v62, %v4069_v25  ;;  %v5514_v10 = vor.u32 %v5513_v40, %v5509_v36  ;;  %v7234_v30 = vcombine.low %v4858_v21, %v10112_v57  ;;  %v4978_v20 = vshll.u32 %v10266_v18, 16  ;;  %v10831_v21 = vld [vmem:[#allocation13_spill] sm:$0xff] }
 0x2f2   : > { %6459 = vrot.lane.b32.xlu1 %v6434_v8, %s8235_s25  ;;  %v6507_v33 = vsel %vm1031_vm5, %v6505_v11, %v6506_v63  ;;  %v5518_v29 = vrot.slane %v5516_v39, 1  ;;  %v6510_v57 = vsel %vm1031_vm5, %v6508_v50, %v6509_v27  ;;  %v10296_v4 = vcombine.low %v4843_v12, %v10209_v7  ;;  %v6265_v39 = vld [vmem:[#allocation3 + $0xb4] sm:$0xf]  ;;  %v10832_v63 = vld [vmem:[#allocation9_spill] sm:$0xff] }
 0x2f3   : > { %v5895_v44 = vpop.permute.xlu0 %5894  ;;  %v5072_v24 = vrot.slane %v7234_v30, 1  ;;  %v4980_v15 = vrot.slane %v4978_v20, 1  ;;  %v5073_v40 = vrot.slane %v10182_v34, 1  ;;  %v4983_v7 = vshll.u32 %v10102_v45, 16 }
 0x2f4   : > { %v10269_v47 = vpop.permute.xlu1 %5590  ;;  %v5519_v55 = vsel %vm894_vm6, %v5514_v10, %v5518_v29  ;;  %v10309_v36 = vcombine.low %v4841_v59, %v4842_v19  ;;  %v7236_v46 = vcombine.low %v4860_v49, %v4842_v19  ;;  %v5002_v27 = vshll.u32 %v10296_v4, 16  ;;  %v10833_v10 = vld [vmem:[#allocation15_spill] sm:$0xff]  ;;  %v10834_v29 = vld [vmem:[#allocation10_spill] sm:$0xff] }
 0x2f5   : > { %6453 = vrot.lane.b32.xlu0 %v6398_v48, %s8235_s25  ;;  %v10830_v48 = vld [vmem:[#allocation7_spill] sm:$0xff]  ;;  %v4985_v20 = vrot.slane %v4983_v7, 1  ;;  %v10323_v12 = vcombine.low %v6265_v39, %v10136_v3  ;;  %v6269_v7 = vld [vmem:[#allocation3 + $0xcc] sm:$0xf] }
 0x2f6   : > { %5099 = vrot.lane.b32.xlu1 %v5083_v58, %s8234_s24  ;;  %v4976_v58 = vshrl.u32 %v10266_v18, 16  ;;  %v10335_v19 = vld [vmem:[#allocation3 + $0x70] sm:$0xf] }
 0x2f7   : > { %v10278_v22 = vpop.permute.xlu0 %4141 }
 0x2f8   : > { %v5529_v31 = vpop.permute.xlu1 %5528  ;;  %v4981_v45 = vor.u32 %v4980_v15, %v4976_v58  ;;  %v4845_v15 = vld [vmem:[#allocation3 + $0x6c] sm:$0xf] }
 0x2f9   : > { %4085 = vrot.lane.b32.xlu0 %v4070_v35, %s8235_s25  ;;  %v5609_v51 = vsel %vm1072_vm7, %v10829_v13, %v5529_v31  ;;  %v8213_v31 = vld [vmem:[#allocation3 + $0x5c] ss:$0 sps:$4 sm:$0x11]   ;;  %v10352_v39 = vcombine.low %v4845_v15, %v10335_v19  ;;  %v10840_v15 = vld [vmem:[#allocation14_spill] sm:$0xff] }
 0x2fa   : > { %6523 = vrot.lane.b32.xlu1 %v6507_v33, %s8234_s24  ;;  %v10292_v2 = vsel %vm1089_vm9, %v5609_v51, %v10199_v56  ;;  %v5078_v51 = vrot.slane %v7236_v46, 1  ;;  %v4990_v33 = vshll.u32 %v10309_v36, 16  ;;  %v5079_v3 = vrot.slane %v8213_v31, 1 }
 0x2fb   : > { %v4382_v8 = vpop.permute.xlu0 %4381 }
 0x2fc   : > { %v5829_v52 = vpop.permute.xlu1 %5828  ;;  %v4992_v58 = vrot.slane %v4990_v33, 1 }
 0x2fd   : > { %5534 = vrot.lane.b32.xlu0 %v5519_v55, %s8235_s25  ;;  %v5909_v56 = vsel %vm1072_vm7, %v10830_v48, %v5829_v52  ;;  %v5004_v55 = vrot.slane %v5002_v27, 1  ;;  %v10835_v52 = vld [vmem:[#allocation8_spill] sm:$0xff]  ;;  %v5000_v48 = vshrl.u32 %v10296_v4, 16  ;;  %v10361_v27 = vcombine.low %v6269_v7, %v10261_v37 }
 0x2fe   : > { %v5925_v62 = vsel %vm1089_vm9, %v5909_v56, %v5893_v54  ;;  %6525 = vrot.lane.b32.xlu1 %v6510_v57, %s8234_s24  ;;  %v5074_v54 = vsel %vm1031_vm5, %v5072_v24, %v5073_v40  ;;  %v4462_v24 = vsel %vm1072_vm7, %v10835_v52, %v4382_v8  ;;  %v5007_v56 = vshll.u32 %v10251_v53, 16 }
 0x2ff   : > { %v5831_v11 = vpop.permute.xlu0 %5830  ;;  %v6016_v25 = vsel %vm1423_vm10, %v5925_v62, %v10831_v21  ;;  %v5080_v40 = vsel %vm1031_vm5, %v5078_v51, %v5079_v3  ;;  %v6414_v8 = vshll.u32 %v10323_v12, 16  ;;  %v10836_v21 = vld [vmem:[#allocation11_spill] sm:$0xff]  ;;  %v6419_v37 = vshll.u32 %v10174_v26, 16 }
 0x300   : > { %v5911_v50 = vsel %vm1072_vm7, %v10832_v63, %v5831_v11  ;;  %v10314_v34 = vpop.permute.xlu1 %4147  ;;  %7697 = vmatprep.mubr.msk.bf16.mxu1 %vm4590_vm11, %v6016_v25  ;;  %v4478_v11 = vsel %vm1089_vm9, %v4462_v24, %v10249_v1  ;;  %v4988_v63 = vshrl.u32 %v10309_v36, 16  ;;  %v5009_v1 = vrot.slane %v5007_v56, 1 }
 0x301   : > { %v5927_v35 = vsel %vm1089_vm9, %v5911_v50, %v5895_v44  ;;  %5093 = vrot.lane.b32.xlu0 %v5074_v54, %s8234_s24  ;;  %v4986_v44 = vsel %vm894_vm6, %v4981_v45, %v4985_v20  ;;  %v10837_v50 = vld [vmem:[#allocation12_spill] sm:$0xff]  ;;  %v4995_v45 = vshll.u32 %v8213_v31, 16  ;;  %v5014_v31 = vshll.u32 %v10352_v39, 16 }
 0x302   : > { %v6018_v30 = vsel %vm1423_vm10, %v5927_v35, %v10833_v10  ;;  %v10838_v10 = vld [vmem:[#allocation27_spill] sm:$0xff]  ;;  %v4993_v20 = vor.u32 %v4992_v58, %v4988_v63  ;;  %v6412_v52 = vshrl.u32 %v10323_v12, 16  ;;  %v6438_v24 = vshll.u32 %v10361_v27, 16 }
 0x303   : > { %v4080_v13 = vpop.permute.xlu0 %4079  ;;  %7698 = vmatmul.mubr.msk.bf16.gmra.mrb[20].mxu1 %vm4590_vm11, %v6018_v30  ;;  %v4569_v30 = vsel %vm1423_vm10, %v4478_v11, %v10838_v10  ;;  %v5016_v26 = vrot.slane %v5014_v31, 1  ;;  %v6421_v58 = vrot.slane %v6419_v37, 1  ;;  %v5012_v7 = vshrl.u32 %v10352_v39, 16 }
 0x304   : > { %v4160_v59 = vsel %vm1072_vm7, %v10834_v29, %v4080_v13  ;;  %v10330_v57 = vpop.permute.xlu1 %5596  ;;  %v6416_v29 = vrot.slane %v6414_v8, 1  ;;  %v6436_v11 = vshrl.u32 %v10361_v27, 16 }
 0x305   : > { %5031 = vrot.lane.b32.xlu0 %v4986_v44, %s8235_s25  ;;  %v10339_v49 = vsel %vm1089_vm9, %v4160_v59, %v10165_v61  ;;  %v5005_v61 = vor.u32 %v5004_v55, %v5000_v48  ;;  %v8216_v59 = vld [vmem:[#allocation3 + $0x74] ss:$0 sps:$4 sm:$0x11]   ;;  %v4997_v55 = vrot.slane %v4995_v45, 1  ;;  %v4862_v45 = vld [vmem:[#allocation3 + $0x6c] sm:$0xe] }
 0x307   : > { %v4380_v62 = vpop.permute.xlu0 %4379  ;;  %v5010_v51 = vsel %vm894_vm6, %v5005_v61, %v5009_v1  ;;  %v4998_v56 = vsel %vm894_vm6, %v4993_v20, %v4997_v55 }
 0x308   : > { %v4460_v25 = vsel %vm1072_vm7, %v10836_v21, %v4380_v62  ;;  %v10349_v46 = vpop.permute.xlu1 %4447  ;;  %v6440_v21 = vrot.slane %v6438_v24, 1 }
 0x309   : > { %v4476_v53 = vsel %vm1089_vm9, %v4460_v25, %v10235_v14  ;;  %5097 = vrot.lane.b32.xlu0 %v5080_v40, %s8234_s24  ;;  %v10839_v14 = vld [vmem:[#allocation4_spill] sm:$0xff]  ;;  %v6417_v40 = vor.u32 %v6416_v29, %v6412_v52  ;;  %v6443_v25 = vshll.u32 %v10273_v17, 16  ;;  %v10843_v52 = vld [vmem:[#allocation19_spill] sm:$0xff] }
 0x30a   : > { %v4567_v54 = vsel %vm1423_vm10, %v4476_v53, %v10837_v50  ;;  %v5017_v50 = vor.u32 %v5016_v26, %v5012_v7  ;;  %v10845_v7 = vld [vmem:[#allocation21_spill] sm:$0xff] }
 0x30b   : > { %7637 = vmatprep.mubr.msk.bf16.mxu0 %vm4590_vm11, %v4567_v54  ;;  %v4078_v35 = vpop.permute.xlu0 %4077  ;;  %v6422_v53 = vsel %vm894_vm6, %v6417_v40, %v6421_v58  ;;  %v10841_v54 = vld [vmem:[#allocation16_spill] sm:$0xff]  ;;  %v6445_v10 = vrot.slane %v6443_v25, 1  ;;  %v10844_v40 = vld [vmem:[#allocation22_spill] sm:$0xff] }
 0x30c   : > { %v4158_v13 = vsel %vm1072_vm7, %v10839_v14, %v4078_v35  ;;  %7638 = vmatmul.mubr.msk.bf16.gmra.mrb[20].mxu0 %vm4590_vm11, %v4569_v30  ;;  %v5897_v33 = vpop.permute.xlu1 %5896  ;;  %v6441_v35 = vor.u32 %v6440_v21, %v6436_v11  ;;  %v10846_v25 = vld [vmem:[#allocation20_spill] sm:$0xff] }
 0x30d   : > { %5035 = vrot.lane.b32.xlu0 %v5010_v51, %s8235_s25  ;;  %v10375_v44 = vsel %vm1089_vm9, %v4158_v13, %v10278_v22  ;;  %v5019_v22 = vshll.u32 %v8216_v59, 16  ;;  %v7238_v13 = vcombine.low %v4862_v45, %v10335_v19  ;;  %v10842_v51 = vld [vmem:[#allocation18_spill] sm:$0xff]  ;;  %v5085_v19 = vrot.slane %v8216_v59, 1 }
 0x30e   : > { %v6446_v37 = vsel %vm894_vm6, %v6441_v35, %v6445_v10  ;;  %v10848_v35 = vld [vmem:[#allocation28_spill] sm:$0xff] }
 0x30f   : > { %v5527_v3 = vpop.permute.xlu0 %5526 }
 0x310   : > { %v5607_v48 = vsel %vm1072_vm7, %v10840_v15, %v5527_v3  ;;  %v10382_v62 = vpop.permute.xlu1 %5594  ;;  %v5084_v3 = vrot.slane %v7238_v13, 1 }
 0x311   : > { %5033 = vrot.lane.b32.xlu0 %v4998_v56, %s8235_s25  ;;  %v10387_v8 = vsel %vm1089_vm9, %v5607_v48, %v10269_v47  ;;  %v5021_v47 = vrot.slane %v5019_v22, 1 }
 0x312   : > { %v5086_v48 = vsel %vm1031_vm5, %v5084_v3, %v5085_v19 }
 0x313   : > { %v4450_v61 = vpop.permute.xlu0 %4449  ;;  %v5022_v17 = vsel %vm894_vm6, %v5017_v50, %v5021_v47 }
 0x314   : > { %v5533_v63 = vpop.permute.xlu1 %5532 }
 0x315   : > { %6457 = vrot.lane.b32.xlu0 %v6422_v53, %s8235_s25  ;;  %v5613_v1 = vsel %vm1072_vm7, %v10841_v54, %v5533_v63  ;;  %v10847_v54 = vld [vmem:[#allocation26_spill] sm:$0xff] }
 0x316   : > { %v10398_v30 = vsel %vm1089_vm9, %v5613_v1, %v10330_v57 }
 0x317   : > { %v5899_v20 = vpop.permute.xlu0 %5898 }
 0x318   : > { %v5833_v14 = vpop.permute.xlu1 %5832 }
 0x319   : > { %5037 = vrot.lane.b32.xlu0 %v5022_v17, %s8235_s25  ;;  %v5913_v29 = vsel %vm1072_vm7, %v10842_v51, %v5833_v14  ;;  %v10849_v17 = vld [vmem:[#allocation17_spill] sm:$0xff] }
 0x31a   : > { %v5929_v31 = vsel %vm1089_vm9, %v5913_v29, %v5897_v33  ;;  %v10851_v29 = vld [vmem:[#allocation29_spill] sm:$0xff] }
 0x31b   : > { %v10407_v55 = vpop.permute.xlu0 %4145  ;;  %v6020_v57 = vsel %vm1423_vm10, %v5929_v31, %v10843_v52 }
 0x31c   : > { %v5585_v24 = vpop.permute.xlu1 %5584  ;;  %7701 = vmatprep.mubr.msk.bf16.mxu1 %vm4590_vm11, %v6020_v57 }
 0x31d   : > { %6461 = vrot.lane.b32.xlu0 %v6446_v37, %s8235_s25 }
 0x31f   : > { %v4386_v15 = vpop.permute.xlu0 %4385 }
 0x320   : > { %v4452_v56 = vpop.permute.xlu1 %4451  ;;  %v4466_v53 = vsel %vm1072_vm7, %v10846_v25, %v4386_v15  ;;  %v10854_v25 = vld [vmem:[#allocation39_spill] sm:$0xff] }
 0x321   : > { %5101 = vrot.lane.b32.xlu0 %v5086_v48, %s8234_s24  ;;  %v4482_v50 = vsel %vm1089_vm9, %v4466_v53, %v4450_v61  ;;  %v10850_v61 = vld [vmem:[#allocation31_spill] sm:$0xff] }
 0x322   : > { %v4573_v51 = vsel %vm1423_vm10, %v4482_v50, %v10850_v61  ;;  %v10855_v50 = vld [vmem:[#allocation33_spill] sm:$0xff] }
 0x323   : > { %v5835_v33 = vpop.permute.xlu0 %5834 }
 0x324   : > { %v5915_v26 = vsel %vm1072_vm7, %v10844_v40, %v5835_v33  ;;  %v5901_v58 = vpop.permute.xlu1 %5900 }
 0x325   : > { %v5931_v22 = vsel %vm1089_vm9, %v5915_v26, %v5899_v20 }
 0x326   : > { %v6022_v11 = vsel %vm1423_vm10, %v5931_v22, %v10845_v7  ;;  %v10853_v7 = vld [vmem:[#allocation41_spill] sm:$0xff] }
 0x327   : > { %7702 = vmatmul.mubr.msk.bf16.gmra.mrb[24].mxu1 %vm4590_vm11, %v6022_v11  ;;  %v10421_v21 = vpop.permute.xlu0 %4083 }
 0x328   : > { %v5521_v59 = vpop.permute.xlu1 %5520 }
 0x32b   : > { %v4384_v63 = vpop.permute.xlu0 %4383 }
 0x32c   : > { %v4464_v1 = vsel %vm1072_vm7, %v10847_v54, %v4384_v63  ;;  %v5837_v45 = vpop.permute.xlu1 %5836 }
 0x32d   : > { %v4480_v47 = vsel %vm1089_vm9, %v4464_v1, %v10349_v46  ;;  %v5917_v10 = vsel %vm1072_vm7, %v10848_v35, %v5837_v45  ;;  %v10856_v35 = vld [vmem:[#allocation43_spill] sm:$0xff] }
 0x32e   : > { %v5933_v20 = vsel %vm1089_vm9, %v5917_v10, %v5901_v58  ;;  %v4571_v14 = vsel %vm1423_vm10, %v4480_v47, %v10849_v17  ;;  %v10852_v58 = vld [vmem:[#allocation25_spill] sm:$0xff] }
 0x32f   : > { %7641 = vmatprep.mubr.msk.bf16.mxu0 %vm4590_vm11, %v4571_v14  ;;  %v10436_v13 = vpop.permute.xlu0 %4081  ;;  %v6024_v31 = vsel %vm1423_vm10, %v5933_v20, %v10851_v29  ;;  %v5601_v22 = vsel %vm1072_vm7, %v10852_v58, %v5521_v59  ;;  %v10857_v20 = vld [vmem:[#allocation38_spill] sm:$0xff]  ;;  %v10858_v17 = vld [vmem:[#allocation5_spill] sm:$0xff]  ;;  %v8224_v58 = vld [vmem:[%s10721_s3 + $0x28] ss:$0 sps:$4 sm:$0xff]  }
 0x330   : > { %7642 = vmatmul.mubr.msk.bf16.gmra.mrb[24].mxu0 %vm4590_vm11, %v4573_v51  ;;  %v10443_v46 = vpop.permute.xlu1 %5598  ;;  %7705 = vmatprep.mubr.msk.bf16.mxu1 %vm4590_vm11, %v6024_v31  ;;  %v5617_v47 = vsel %vm1089_vm9, %v5601_v22, %v5585_v24  ;;  %v4152_v14 = vsel %vm1072_vm7, %v10858_v17, %v10857_v20  ;;  %v10859_v51 = vld [vmem:[#allocation24_spill] sm:$0xff]  ;;  %v10860_v24 = vld [vmem:[#allocation35_spill] sm:$0xff] }
 0x333   : > { %v5531_v37 = vpop.permute.xlu0 %5530 }
 0x334   : > { %v10446_v52 = vpop.permute.xlu1 %6447 }
 0x337   : > { %v4454_v57 = vpop.permute.xlu0 %4453 }
 0x338   : > { %v10448_v3 = vpop.permute.xlu1 %5087 }
 0x33b   : > { %v5903_v19 = vpop.permute.xlu0 %5902 }
 0x33c   : > { %v10450_v15 = vpop.permute.xlu1 %6511 }
 0x33f   : > { %v10452_v48 = vpop.permute.xlu0 %4149 }
 0x340   : > { %v10454_v40 = vpop.permute.xlu1 %6513 }
 0x343   : > { %v4390_v33 = vpop.permute.xlu0 %4389 }
 0x344   : > { %v4470_v53 = vsel %vm1072_vm7, %v10854_v25, %v4390_v33  ;;  %v10465_v1 = vpop.permute.xlu1 %6451  ;;  %v10862_v25 = vld [vmem:[#allocation32_spill] sm:$0xff] }
 0x345   : > { %v4486_v59 = vsel %vm1089_vm9, %v4470_v53, %v4454_v57 }
 0x346   : > { %v4577_v57 = vsel %vm1423_vm10, %v4486_v59, %v10860_v24 }
 0x347   : > { %v5839_v26 = vpop.permute.xlu0 %5838 }
 0x348   : > { %v5919_v11 = vsel %vm1072_vm7, %v10853_v7, %v5839_v26  ;;  %v5092_v26 = vpop.permute.xlu1 %5091 }
 0x349   : > { %v5935_v63 = vsel %vm1089_vm9, %v5919_v11, %v5903_v19  ;;  %v10861_v19 = vld [vmem:[#allocation36_spill] sm:$0xff]  ;;  %v5161_v11 = vsel %vm1440_vm8, %v8224_v58, 0 }
 0x34a   : > { %v6026_v54 = vsel %vm1423_vm10, %v5935_v63, %v10855_v50  ;;  %v4168_v33 = vsel %vm1089_vm9, %v4152_v14, %v10861_v19  ;;  %v10867_v14 = vld [vmem:[#allocation45_spill] sm:$0xff] }
 0x34b   : > { %7706 = vmatmul.mubr.msk.bf16.gmra.mrb[28].mxu1 %vm4590_vm11, %v6026_v54  ;;  %v4388_v45 = vpop.permute.xlu0 %4387 }
 0x34c   : > { %v4468_v10 = vsel %vm1072_vm7, %v10856_v35, %v4388_v45  ;;  %7713 = vmatprep.mubr.msk.bf16.mxu1 %vm1423_vm10, %v5617_v47  ;;  %v6516_v22 = vpop.permute.xlu1 %6515  ;;  %v10865_v45 = vld [vmem:[#allocation44_spill] sm:$0xff] }
 0x34d   : > { %v4484_v61 = vsel %vm1089_vm9, %v4468_v10, %v4452_v56  ;;  %v10866_v10 = vld [vmem:[#allocation34_spill] sm:$0xff] }
 0x34e   : > { %v4575_v29 = vsel %vm1423_vm10, %v4484_v61, %v10859_v51 }
 0x34f   : > { %7645 = vmatprep.mubr.msk.bf16.mxu0 %vm4590_vm11, %v4575_v29  ;;  %v5024_v31 = vpop.permute.xlu0 %5023  ;;  %v10868_v29 = vld [vmem:[#allocation40_spill] sm:$0xff] }
 0x350   : > { %7646 = vmatmul.mubr.msk.bf16.gmra.mrb[28].mxu0 %vm4590_vm11, %v4577_v57  ;;  %v5104_v47 = vsel %vm1072_vm7, %v10865_v45, %v5024_v31  ;;  %v6532_v31 = vsel %vm1072_vm7, %v10868_v29, %v10465_v1 }
 0x351   : > { %7653 = vmatprep.mubr.msk.bf16.mxu0 %vm1423_vm10, %v4168_v33  ;;  %v6548_v24 = vsel %vm1089_vm9, %v6532_v31, %v6516_v22 }
 0x353   : > { %7714 = vmatmul.mubr.msk.bf16.vlgmr.msra.gmra.mrb[16].mxu1 %vm1423_vm10, %v10241_v5  ;;  %v5026_v56 = vpop.permute.xlu0 %5025  ;;  %v6518_v5 = vpop.permute.xlu1 %6517 }
 0x354   : > { %7717 = vmatprep.mubr.msk.bf16.mxu1 %vm1423_vm10, %v10219_v6  ;;  %7730 = vmatpush3.bf16.msra.mxu1 %v10224_v0 }
 0x355   : > { %7886 = vmatprep.subr.msk.bf16.mxu1 %vm1440_vm8, %v8224_v58 }
 0x357   : > { %v6450_v7 = vpop.permute.xlu0 %6449 }
 0x358   : > { %7654 = vmatmul.mubr.msk.bf16.vlgmr.msra.gmra.mrb[16].mxu0 %vm1423_vm10, %v10205_v9  ;;  %7732 = vmatpush3.bf16.msra.mxu1 %v5161_v11  ;;  %v5611_v9 = vsel %vm1072_vm7, %v10862_v25, %v5531_v37  ;;  %v10864_v37 = vld [vmem:[#allocation23_spill] sm:$0xff]  ;;  %v6530_v61 = vsel %vm1072_vm7, %v10060_v42, %v6450_v7 }
 0x359   : > { %7657 = vmatprep.mubr.msk.bf16.mxu0 %vm1423_vm10, %v10231_v32  ;;  %7670 = vmatpush3.bf16.msra.mxu0 %v10224_v0  ;;  %v5627_v0 = vsel %vm1089_vm9, %v5611_v9, %v10382_v62  ;;  %v6456_v32 = vpop.permute.xlu1 %6455 }
 0x35a   : > { %7884 = vmatprep.subr.msk.bf16.mxu0 %vm1440_vm8, %v8224_v58  ;;  %v6536_v58 = vsel %vm1072_vm7, %v10049_v16, %v6456_v32 }
 0x35b   : > { %7718 = vmatmul.mubr.msk.bf16.gmra.mrb[20].mxu1 %vm1423_vm10, %v10387_v8  ;;  %v5090_v6 = vpop.permute.xlu0 %5089 }
 0x35c   : > { %7721 = vmatprep.mubr.msk.bf16.mxu1 %vm1423_vm10, %v10292_v2  ;;  %v10863_v2 = vld [vmem:[#allocation30_spill] sm:$0xff] }
 0x35d   : > { %7672 = vmatpush3.bf16.msra.mxu0 %v5161_v11  ;;  %v4162_v63 = vsel %vm1072_vm7, %v10863_v2, %v10436_v13  ;;  %v5096_v54 = vpop.permute.xlu1 %5095 }
 0x35f   : > { %v5028_v53 = vpop.permute.xlu0 %5027 }
 0x360   : > { %7658 = vmatmul.mubr.msk.bf16.gmra.mrb[20].mxu0 %vm1423_vm10, %v10375_v44  ;;  %v4164_v44 = vsel %vm1072_vm7, %v10864_v37, %v10421_v21 }
 0x361   : > { %7661 = vmatprep.mubr.msk.bf16.mxu0 %vm1423_vm10, %v10339_v49  ;;  %v4178_v49 = vsel %vm1089_vm9, %v4162_v63, %v10407_v55  ;;  %v4180_v62 = vsel %vm1089_vm9, %v4164_v44, %v10314_v34  ;;  %v6520_v21 = vpop.permute.xlu1 %6519  ;;  %v5120_v34 = vsel %vm1089_vm9, %v5104_v47, %v10448_v3  ;;  %v5108_v3 = vsel %vm1072_vm7, %v10081_v38, %v5028_v53  ;;  %v10611_v44 = vld [vmem:[%s10722_s4] ss:$0 sm:$0xff] }
 0x362   : > { %v6546_v38 = vsel %vm1089_vm9, %v6530_v61, %v10454_v40 }
 0x363   : > { %7722 = vmatmul.mubr.msk.bf16.gmra.mrb[24].mxu1 %vm1423_vm10, %v5627_v0  ;;  %v5030_v8 = vpop.permute.xlu0 %5029 }
 0x364   : > { %7725 = vmatprep.mubr.msk.bf16.mxu1 %vm1423_vm10, %v10398_v30  ;;  %v5110_v33 = vsel %vm1072_vm7, %v10129_v60, %v5030_v8  ;;  %v6552_v60 = vsel %vm1089_vm9, %v6536_v58, %v6520_v21 }
 0x365   : > { %v6522_v17 = vpop.permute.xlu1 %6521 }
 0x367   : > { %v6454_v50 = vpop.permute.xlu0 %6453 }
 0x368   : > { %7662 = vmatmul.mubr.msk.bf16.gmra.mrb[24].mxu0 %vm1423_vm10, %v4178_v49  ;;  %v6534_v1 = vsel %vm1072_vm7, %v10098_v43, %v6454_v50 }
 0x369   : > { %7665 = vmatprep.mubr.msk.bf16.mxu0 %vm1423_vm10, %v4180_v62  ;;  %v6460_v42 = vpop.permute.xlu1 %6459 }
 0x36a   : > { %v6540_v53 = vsel %vm1072_vm7, %v10145_v41, %v6460_v42 }
 0x36b   : > { %v4086_v13 = vpop.permute.xlu0 %4085 }
 0x36c   : > { %v4166_v30 = vsel %vm1072_vm7, %v10074_v28, %v4086_v13  ;;  %v6528_v28 = vsel %vm1072_vm7, %v10866_v10, %v10446_v52  ;;  %v5106_v52 = vsel %vm1072_vm7, %v10867_v14, %v5026_v56 }
 0x36d   : > { %v4182_v55 = vsel %vm1089_vm9, %v4166_v30, %v10452_v48  ;;  %v6544_v48 = vsel %vm1089_vm9, %v6528_v28, %v10450_v15  ;;  %v5124_v15 = vsel %vm1089_vm9, %v5108_v3, %v5092_v26  ;;  %v5100_v22 = vpop.permute.xlu1 %5099 }
 0x36f   : > { %v5535_v59 = vpop.permute.xlu0 %5534 }
 0x370   : > { %v5615_v35 = vsel %vm1072_vm7, %v10071_v23, %v5535_v59  ;;  %7666 = vmatmul.mubr.msk.bf16.gmra.mrb[28].mxu0 %vm1423_vm10, %v4182_v55 }
 0x371   : > { %7673 = vmatprep.mubr.msk.bf16.mxu0 %vm1423_vm10, %v5120_v34  ;;  %v5631_v20 = vsel %vm1089_vm9, %v5615_v35, %v10443_v46  ;;  %v5122_v46 = vsel %vm1089_vm9, %v5106_v52, %v5090_v6  ;;  %v6524_v6 = vpop.permute.xlu1 %6523 }
 0x372   : > { %7726 = vmatmul.mubr.msk.bf16.gmra.mrb[28].mxu1 %vm1423_vm10, %v5631_v20 }
 0x373   : > { %7733 = vmatprep.mubr.msk.bf16.mxu1 %vm1423_vm10, %v6544_v48  ;;  %v5094_v23 = vpop.permute.xlu0 %5093 }
 0x374   : > { %v5126_v40 = vsel %vm1089_vm9, %v5110_v33, %v5094_v23 }
 0x377   : > { %v5032_v51 = vpop.permute.xlu0 %5031 }
 0x378   : > { %7674 = vmatmul.mubr.msk.bf16.vlgmr.msra.gmra.mrb[16].mxu0 %vm1423_vm10, %v5122_v46  ;;  %v5112_v19 = vsel %vm1072_vm7, %v10266_v18, %v5032_v51  ;;  %v6550_v18 = vsel %vm1089_vm9, %v6534_v1, %v6518_v5 }
 0x379   : > { %7677 = vmatprep.mubr.msk.bf16.mxu0 %vm1423_vm10, %v5124_v15  ;;  %v5128_v56 = vsel %vm1089_vm9, %v5112_v19, %v5096_v54 }
 0x37a   : > { %7734 = vmatmul.mubr.msk.bf16.vlgmr.msra.gmra.mrb[16].mxu1 %vm1423_vm10, %v6546_v38 }
 0x37b   : > { %7737 = vmatprep.mubr.msk.bf16.mxu1 %vm1423_vm10, %v6548_v24  ;;  %v5098_v57 = vpop.permute.xlu0 %5097 }
 0x37f   : > { %v5036_v26 = vpop.permute.xlu0 %5035 }
 0x380   : > { %7678 = vmatmul.mubr.msk.bf16.gmra.mrb[20].mxu0 %vm1423_vm10, %v5126_v40  ;;  %v5116_v11 = vsel %vm1072_vm7, %v10296_v4, %v5036_v26  ;;  %v6556_v4 = vsel %vm1089_vm9, %v6540_v53, %v6524_v6 }
 0x381   : > { %7681 = vmatprep.mubr.msk.bf16.mxu0 %vm1423_vm10, %v5128_v56  ;;  %v5132_v9 = vsel %vm1089_vm9, %v5116_v11, %v5100_v22 }
 0x382   : > { %7738 = vmatmul.mubr.msk.bf16.gmra.mrb[20].mxu1 %vm1423_vm10, %v6550_v18 }
 0x383   : > { %7741 = vmatprep.mubr.msk.bf16.mxu1 %vm1423_vm10, %v6552_v60  ;;  %v5034_v43 = vpop.permute.xlu0 %5033 }
 0x384   : > { %v5114_v7 = vsel %vm1072_vm7, %v10309_v36, %v5034_v43 }
 0x385   : > { %v5130_v25 = vsel %vm1089_vm9, %v5114_v7, %v5098_v57 }
 0x387   : > { %v6458_v16 = vpop.permute.xlu0 %6457 }
 0x388   : > { %v6538_v5 = vsel %vm1072_vm7, %v10323_v12, %v6458_v16  ;;  %7682 = vmatmul.mubr.msk.bf16.gmra.mrb[24].mxu0 %vm1423_vm10, %v5130_v25  ;;  %v6526_v12 = vpop.permute.xlu1 %6525 }
 0x389   : > { %7685 = vmatprep.mubr.msk.bf16.mxu0 %vm1423_vm10, %v5132_v9  ;;  %v6554_v36 = vsel %vm1089_vm9, %v6538_v5, %v6522_v17 }
 0x38a   : > { %7742 = vmatmul.mubr.msk.bf16.gmra.mrb[24].mxu1 %vm1423_vm10, %v6554_v36 }
 0x38b   : > { %7745 = vmatprep.mubr.msk.bf16.mxu1 %vm1423_vm10, %v6556_v4  ;;  %v5038_v0 = vpop.permute.xlu0 %5037 }
 0x38c   : > { %v5118_v41 = vsel %vm1072_vm7, %v10352_v39, %v5038_v0 }
 0x38f   : > { %v6462_v32 = vpop.permute.xlu0 %6461 }
 0x390   : > { %v6542_v8 = vsel %vm1072_vm7, %v10361_v27, %v6462_v32 }
 0x391   : > { %v6558_v2 = vsel %vm1089_vm9, %v6542_v8, %v6526_v12 }
 0x392   : > { %7746 = vmatmul.mubr.msk.bf16.gmra.mrb[28].mxu1 %vm1423_vm10, %v6558_v2 }
 0x393   : > { %v5102_v63 = vpop.permute.xlu0 %5101 }
 0x394   : > { %v5134_v37 = vsel %vm1089_vm9, %v5118_v41, %v5102_v63 }
 0x395   : > { %7686 = vmatmul.mubr.msk.bf16.gmra.mrb[28].mxu0 %vm1423_vm10, %v5134_v37 }
 0x44b   : > { %v7675_v50 = vpop.f32.mrb[16].mxu0 }
 0x44c   : > { %v5278_v27 = vadd.f32 %v7675_v50, %v10611_v44  ;;  %v5197_v49 = vpop.f32.mrb[17].mxu0 }
 0x44d   : > { %v5276_v39 = vadd.f32 %v10611_v44, %v5197_v49  ;;  %v7676_v62 = vpop.f32.mrb[18].mxu0  ;;  %v7735_v54 = vpop.f32.mrb[16].mxu1 }
 0x44e   : > { %v5294_v13 = vmax.f32 %v5278_v27, 0.0  ;;  %v5279_v30 = vadd.f32 %v7676_v62, %v10611_v44  ;;  %v6690_v45 = vadd.f32 %v7735_v54, %v10611_v44  ;;  %v5200_v47 = vpop.f32.mrb[19].mxu0  ;;  %v6609_v21 = vpop.f32.mrb[17].mxu1 }
 0x44f   : > { %v5292_v59 = vmax.f32 %v5276_v39, 0.0  ;;  %v5277_v55 = vadd.f32 %v10611_v44, %v5200_v47  ;;  %v6688_v35 = vadd.f32 %v10611_v44, %v6609_v21  ;;  %v7736_v34 = vpop.f32.mrb[18].mxu1 }
 0x450   : > { %5312 = vst.msk [vmem:[%s10618_s10 + $0x10] sm:$0xff] %vm1072_vm7, %v5294_v13  ;;  %v5295_v10 = vmax.f32 %v5279_v30, 0.0  ;;  %v6706_v28 = vmax.f32 %v6690_v45, 0.0  ;;  %v6691_v20 = vadd.f32 %v7736_v34, %v10611_v44  ;;  %v6612_v48 = vpop.f32.mrb[19].mxu1 }
 0x451   : > { %5310 = vst.msk [vmem:[%s10618_s10] sm:$0xff] %vm1072_vm7, %v5292_v59  ;;  %v5293_v23 = vmax.f32 %v5277_v55, 0.0  ;;  %v6704_v3 = vmax.f32 %v6688_v35, 0.0  ;;  %v6689_v17 = vadd.f32 %v10611_v44, %v6612_v48 }
 0x452   : > { %5313 = vst.msk [vmem:[%s10618_s10 + $0x18] sm:$0xff] %vm1072_vm7, %v5295_v10  ;;  %7371 = vst.msk [vmem:[%s10618_s10 + $0x90] sm:$0xff] %vm1072_vm7, %v6706_v28  ;;  %v6707_v14 = vmax.f32 %v6691_v20, 0.0 }
 0x453   : > { %5311 = vst.msk [vmem:[%s10618_s10 + $0x8] sm:$0xff] %vm1072_vm7, %v5293_v23  ;;  %7369 = vst.msk [vmem:[%s10618_s10 + $0x80] sm:$0xff] %vm1072_vm7, %v6704_v3  ;;  %v6705_v52 = vmax.f32 %v6689_v17, 0.0  ;;  %v7679_v61 = vpop.f32.mrb[20].mxu0 }
 0x454   : > { %7372 = vst.msk [vmem:[%s10618_s10 + $0x98] sm:$0xff] %vm1072_vm7, %v6707_v14  ;;  %v5282_v46 = vadd.f32 %v7679_v61, %v10611_v44  ;;  %v5213_v51 = vpop.f32.mrb[21].mxu0 }
 0x455   : > { %7370 = vst.msk [vmem:[%s10618_s10 + $0x88] sm:$0xff] %vm1072_vm7, %v6705_v52  ;;  %v5280_v15 = vadd.f32 %v10611_v44, %v5213_v51  ;;  %v7680_v29 = vpop.f32.mrb[22].mxu0  ;;  %v7739_v31 = vpop.f32.mrb[20].mxu1 }
 0x456   : > { %v5298_v38 = vmax.f32 %v5282_v46, 0.0  ;;  %v5283_v24 = vadd.f32 %v7680_v29, %v10611_v44  ;;  %v6694_v42 = vadd.f32 %v7739_v31, %v10611_v44  ;;  %v5216_v57 = vpop.f32.mrb[23].mxu0  ;;  %v6625_v19 = vpop.f32.mrb[21].mxu1 }
 0x457   : > { %v5296_v33 = vmax.f32 %v5280_v15, 0.0  ;;  %v5281_v1 = vadd.f32 %v10611_v44, %v5216_v57  ;;  %v6692_v40 = vadd.f32 %v10611_v44, %v6625_v19  ;;  %v7740_v26 = vpop.f32.mrb[22].mxu1 }
 0x458   : > { %5316 = vst.msk [vmem:[%s10618_s10 + $0x30] sm:$0xff] %vm1072_vm7, %v5298_v38  ;;  %v5299_v56 = vmax.f32 %v5283_v24, 0.0  ;;  %v6710_v58 = vmax.f32 %v6694_v42, 0.0  ;;  %v6695_v22 = vadd.f32 %v7740_v26, %v10611_v44  ;;  %v6628_v18 = vpop.f32.mrb[23].mxu1 }
 0x459   : > { %5314 = vst.msk [vmem:[%s10618_s10 + $0x20] sm:$0xff] %vm1072_vm7, %v5296_v33  ;;  %v5297_v60 = vmax.f32 %v5281_v1, 0.0  ;;  %v6708_v43 = vmax.f32 %v6692_v40, 0.0  ;;  %v6693_v7 = vadd.f32 %v10611_v44, %v6628_v18 }
 0x45a   : > { %5317 = vst.msk [vmem:[%s10618_s10 + $0x38] sm:$0xff] %vm1072_vm7, %v5299_v56  ;;  %7375 = vst.msk [vmem:[%s10618_s10 + $0xb0] sm:$0xff] %vm1072_vm7, %v6710_v58  ;;  %v6711_v11 = vmax.f32 %v6695_v22, 0.0 }
 0x45b   : > { %5315 = vst.msk [vmem:[%s10618_s10 + $0x28] sm:$0xff] %vm1072_vm7, %v5297_v60  ;;  %7373 = vst.msk [vmem:[%s10618_s10 + $0xa0] sm:$0xff] %vm1072_vm7, %v6708_v43  ;;  %v6709_v6 = vmax.f32 %v6693_v7, 0.0  ;;  %v7683_v16 = vpop.f32.mrb[24].mxu0 }
 0x45c   : > { %7376 = vst.msk [vmem:[%s10618_s10 + $0xb8] sm:$0xff] %vm1072_vm7, %v6711_v11  ;;  %v5286_v25 = vadd.f32 %v7683_v16, %v10611_v44  ;;  %v5229_v5 = vpop.f32.mrb[25].mxu0 }
 0x45d   : > { %7374 = vst.msk [vmem:[%s10618_s10 + $0xa8] sm:$0xff] %vm1072_vm7, %v6709_v6  ;;  %v5284_v9 = vadd.f32 %v10611_v44, %v5229_v5  ;;  %v7684_v53 = vpop.f32.mrb[26].mxu0  ;;  %v7743_v36 = vpop.f32.mrb[24].mxu1 }
 0x45e   : > { %v5302_v4 = vmax.f32 %v5286_v25, 0.0  ;;  %v5287_v0 = vadd.f32 %v7684_v53, %v10611_v44  ;;  %v6698_v12 = vadd.f32 %v7743_v36, %v10611_v44  ;;  %v5232_v32 = vpop.f32.mrb[27].mxu0  ;;  %v6641_v8 = vpop.f32.mrb[25].mxu1 }
 0x45f   : > { %v5300_v2 = vmax.f32 %v5284_v9, 0.0  ;;  %v5285_v41 = vadd.f32 %v10611_v44, %v5232_v32  ;;  %v6696_v63 = vadd.f32 %v10611_v44, %v6641_v8  ;;  %v7744_v37 = vpop.f32.mrb[26].mxu1 }
 0x460   : > { %5320 = vst.msk [vmem:[%s10618_s10 + $0x50] sm:$0xff] %vm1072_vm7, %v5302_v4  ;;  %v5303_v50 = vmax.f32 %v5287_v0, 0.0  ;;  %v6714_v27 = vmax.f32 %v6698_v12, 0.0  ;;  %v6699_v49 = vadd.f32 %v7744_v37, %v10611_v44  ;;  %v6644_v39 = vpop.f32.mrb[27].mxu1 }
 0x461   : > { %5318 = vst.msk [vmem:[%s10618_s10 + $0x40] sm:$0xff] %vm1072_vm7, %v5300_v2  ;;  %v5301_v62 = vmax.f32 %v5285_v41, 0.0  ;;  %v6712_v54 = vmax.f32 %v6696_v63, 0.0  ;;  %v6697_v13 = vadd.f32 %v10611_v44, %v6644_v39 }
 0x462   : > { %5321 = vst.msk [vmem:[%s10618_s10 + $0x58] sm:$0xff] %vm1072_vm7, %v5303_v50  ;;  %7379 = vst.msk [vmem:[%s10618_s10 + $0xd0] sm:$0xff] %vm1072_vm7, %v6714_v27  ;;  %v6715_v30 = vmax.f32 %v6699_v49, 0.0 }
 0x463   : > { %5319 = vst.msk [vmem:[%s10618_s10 + $0x48] sm:$0xff] %vm1072_vm7, %v5301_v62  ;;  %7377 = vst.msk [vmem:[%s10618_s10 + $0xc0] sm:$0xff] %vm1072_vm7, %v6712_v54  ;;  %v6713_v45 = vmax.f32 %v6697_v13, 0.0 }
 0x464   : > { %7380 = vst.msk [vmem:[%s10618_s10 + $0xd8] sm:$0xff] %vm1072_vm7, %v6715_v30 }
 0x465   : > { %7378 = vst.msk [vmem:[%s10618_s10 + $0xc8] sm:$0xff] %vm1072_vm7, %v6713_v45  ;;  %v7747_v47 = vpop.f32.mrb[28].mxu1 }
 0x466   : > { %v6702_v21 = vadd.f32 %v7747_v47, %v10611_v44  ;;  %v6657_v59 = vpop.f32.mrb[29].mxu1 }
 0x467   : > { %v6700_v55 = vadd.f32 %v10611_v44, %v6657_v59  ;;  %v7748_v35 = vpop.f32.mrb[30].mxu1 }
 0x468   : > { %v6718_v34 = vmax.f32 %v6702_v21, 0.0  ;;  %v6703_v10 = vadd.f32 %v7748_v35, %v10611_v44  ;;  %v7687_v28 = vpop.f32.mrb[28].mxu0  ;;  %v6660_v20 = vpop.f32.mrb[31].mxu1 }
 0x469   : > { %v6716_v48 = vmax.f32 %v6700_v55, 0.0  ;;  %v5290_v23 = vadd.f32 %v7687_v28, %v10611_v44  ;;  %v6701_v3 = vadd.f32 %v10611_v44, %v6660_v20  ;;  %v5245_v17 = vpop.f32.mrb[29].mxu0 }
 0x46a   : > { %7383 = vst.msk [vmem:[%s10618_s10 + $0xf0] sm:$0xff] %vm1072_vm7, %v6718_v34  ;;  %v6719_v14 = vmax.f32 %v6703_v10, 0.0  ;;  %v5288_v52 = vadd.f32 %v10611_v44, %v5245_v17  ;;  %v7688_v61 = vpop.f32.mrb[30].mxu0 }
 0x46b   : > { %7381 = vst.msk [vmem:[%s10618_s10 + $0xe0] sm:$0xff] %vm1072_vm7, %v6716_v48  ;;  %v5306_v46 = vmax.f32 %v5290_v23, 0.0  ;;  %v6717_v51 = vmax.f32 %v6701_v3, 0.0  ;;  %v5291_v15 = vadd.f32 %v7688_v61, %v10611_v44  ;;  %v5248_v29 = vpop.f32.mrb[31].mxu0 }
 0x46c   : > { %7384 = vst.msk [vmem:[%s10618_s10 + $0xf8] sm:$0xff] %vm1072_vm7, %v6719_v14  ;;  %v5304_v31 = vmax.f32 %v5288_v52, 0.0  ;;  %v5289_v38 = vadd.f32 %v10611_v44, %v5248_v29 }
 0x46d   : > { %5324 = vst.msk [vmem:[%s10618_s10 + $0x70] sm:$0xff] %vm1072_vm7, %v5306_v46  ;;  %7382 = vst.msk [vmem:[%s10618_s10 + $0xe8] sm:$0xff] %vm1072_vm7, %v6717_v51  ;;  %v5307_v24 = vmax.f32 %v5291_v15, 0.0 }
 0x46e   : > { %5322 = vst.msk [vmem:[%s10618_s10 + $0x60] sm:$0xff] %vm1072_vm7, %v5304_v31  ;;  %v5305_v42 = vmax.f32 %v5289_v38, 0.0 }
 0x46f   : > { %5325 = vst.msk [vmem:[%s10618_s10 + $0x78] sm:$0xff] %vm1072_vm7, %v5307_v24 }
 0x470   : > { %5323 = vst.msk [vmem:[%s10618_s10 + $0x68] sm:$0xff] %vm1072_vm7, %v5305_v42 }
 0x471 PF: > { %s15_s18 = sadd.s32 1, %s8231_s18  }
 0x472   : > { %p12_p4 = scmp.ge.s32.totalorder %s15_s18, 4  }
 0x474   :  { %14 = sbr.rel (!%p12_p4) target bundleno = 1 (0x1), region = 93 }

</bundles_post_ra>
